<compile_context>
chip_gen: v6e
topology: v6e:2x2x1
jax: 0.10.0
libtpu: 0.0.40
codegen_flags: <defaults>
</compile_context>

<pallas_src>
import functools
from collections import namedtuple

import numpy as np
import jax
import jax.numpy as jnp
from jax.experimental import pallas as pl
from jax.experimental.pallas import tpu as pltpu


# ---------------------------------------------------------------------------
# Geometry of the flattened row domain
# ---------------------------------------------------------------------------
_Geom = namedtuple(
    "_Geom", "N Hp1 Wp1 R1 R1s P1 Hq1 Wq1 Hp2 Wp2 R2 R2s P2 Hq2 Wq2")


def _round_up(x, m):
    return (x + m - 1) // m * m


def _geometry(N, H, W):
    # conv1: 3x3, pad 2  -> padded grid (Hp1, Wp1), valid output (Hp1-2, Wp1-2)
    Hp1, Wp1 = H + 4, W + 4
    Ho1, Wo1 = Hp1 - 2, Wp1 - 2
    assert Ho1 % 2 == 0 and Wo1 % 2 == 0, "conv1 output must be 2x2-poolable"
    R1 = N * Hp1 * Wp1                       # flattened padded rows
    R1s = _round_up(R1 + 2 * Wp1 + 2, 8)     # + slack for the 9 window shifts
    Hq1, Wq1 = Ho1 // 2, Wo1 // 2            # after pool1
    # pooled-conv1 rows needed (valid pool bases live at n*Hp1*Wp1+2h*Wp1+2w)
    P1 = (N - 1) * Hp1 * Wp1 + 2 * (Hq1 - 1) * Wp1 + 2 * (Wq1 - 1) + 1
    # conv2: 3x3, pad 1 -> padded grid (Hp2, Wp2)
    assert Hq1 % 2 == 0 and Wq1 % 2 == 0, "conv2 output must be 2x2-poolable"
    Hp2, Wp2 = Hq1 + 2, Wq1 + 2
    R2 = N * Hp2 * Wp2
    R2s = _round_up(R2 + 2 * Wp2 + 2, 8)
    Hq2, Wq2 = Hq1 // 2, Wq1 // 2            # after pool2
    P2 = (N - 1) * Hp2 * Wp2 + 2 * (Hq2 - 1) * Wp2 + 2 * (Wq2 - 1) + 1
    # Wrap-around invariant (per correctness review): conv rows on the last
    # two columns/rows of each padded (Hp, Wp) image compute wrap-around
    # garbage; pool bases (+1 for the pool window) must never touch them.
    assert 2 * (Wq1 - 1) + 1 <= Wp1 - 3 and 2 * (Hq1 - 1) + 1 <= Hp1 - 3
    assert 2 * (Wq2 - 1) + 1 <= Wp2 - 3 and 2 * (Hq2 - 1) + 1 <= Hp2 - 3
    return _Geom(N, Hp1, Wp1, R1, R1s, P1, Hq1, Wq1, Hp2, Wp2, R2, R2s, P2,
                 Hq2, Wq2)


# ---------------------------------------------------------------------------
# Constant 0/1 gather matrix: pooled-conv1 rows -> zero-padded conv2 rows.
# Cached per geometry so it is built once on the host, not at every trace.
# ---------------------------------------------------------------------------
@functools.lru_cache(maxsize=None)
def _gather_matrix(N, H, W):
    g = _geometry(N, H, W)
    s1 = np.zeros((g.R2s, g.P1), np.float32)
    for n in range(N):
        for hh in range(1, g.Hp2 - 1):
            for ww in range(1, g.Wp2 - 1):
                dst = n * g.Hp2 * g.Wp2 + hh * g.Wp2 + ww
                src = n * g.Hp1 * g.Wp1 + 2 * (hh - 1) * g.Wp1 + 2 * (ww - 1)
                s1[dst, src] = 1.0
    return s1


# ---------------------------------------------------------------------------
# The fused kernel
# ---------------------------------------------------------------------------
def _class_net_kernel(x_ref, w1_ref, b1_ref, s1_ref, w2_ref, b2_ref,
                      fw1_ref, fb1_ref, fw2_ref, fb2_ref, o_ref,
                      im1_s, out1_s, x2_s, im2_s, out2_s, pool2_s, feat_s,
                      *, g):
    f32, bf16 = jnp.float32, jnp.bfloat16
    c1in_p = x_ref.shape[1]          # conv1 in-channels, padded to 32
    c1out = b1_ref.shape[1]
    c2in = x2_s.shape[1]
    c2out = b2_ref.shape[1]

    # ---- conv1 (+bias+ReLU): build an in-VMEM im2col (R1, 9*32) from 9
    #      shifted row-windows of the flattened bf16 input, then ONE wide-K
    #      GEMM.  (No per-tap casts; input is already bf16.)
    for t in range(9):
        di, dj = divmod(t, 3)
        im1_s[:, t * c1in_p:(t + 1) * c1in_p] = \
            x_ref[pl.ds(di * g.Wp1 + dj, g.R1), :]
    out1_s[...] = jnp.maximum(
        jnp.dot(im1_s[...], w1_ref[...], preferred_element_type=f32)
        + b1_ref[...], 0.0)

    # ---- 2x2/2 max-pool in the flattened row domain (shifts {0,1,Wp1,Wp1+1})
    p1 = jnp.maximum(
        jnp.maximum(out1_s[pl.ds(0, g.P1), :], out1_s[pl.ds(1, g.P1), :]),
        jnp.maximum(out1_s[pl.ds(g.Wp1, g.P1), :],
                    out1_s[pl.ds(g.Wp1 + 1, g.P1), :]))
    # Gather valid pooled rows + zero padding into conv2's flattened layout
    # with one constant 0/1 GEMM (S1 @ p1) on the MXU; cast to bf16 ONCE on
    # the store so conv2's im2col needs no further casts.
    x2_s[...] = jnp.dot(s1_ref[...], p1.astype(bf16),
                        preferred_element_type=f32).astype(bf16)

    # ---- conv2 (+bias+ReLU): im2col (R2, 9*32) + ONE wide-K GEMM
    for t in range(9):
        di, dj = divmod(t, 3)
        im2_s[:, t * c2in:(t + 1) * c2in] = \
            x2_s[pl.ds(di * g.Wp2 + dj, g.R2), :]
    out2_s[...] = jnp.maximum(
        jnp.dot(im2_s[...], w2_ref[...], preferred_element_type=f32)
        + b2_ref[...], 0.0)

    # ---- pool2 (shifts {0,1,Wp2,Wp2+1})
    pool2_s[...] = jnp.maximum(
        jnp.maximum(out2_s[pl.ds(0, g.P2), :], out2_s[pl.ds(1, g.P2), :]),
        jnp.maximum(out2_s[pl.ds(g.Wp2, g.P2), :],
                    out2_s[pl.ds(g.Wp2 + 1, g.P2), :]))

    # ---- batched FC head: gather all pooled features into one (N, 256) bf16
    #      buffer (tiny VMEM->VMEM row copies; no MXU involvement), then a
    #      single fc1 GEMM, a single fc2 GEMM, and one full-block lane-dense
    #      output store.  (The flatten permutation is folded into fw1.)
    spatial = g.Hq2 * g.Wq2
    for n in range(g.N):
        for p in range(spatial):
            ho, wo = divmod(p, g.Wq2)
            row = n * g.Hp2 * g.Wp2 + 2 * ho * g.Wp2 + 2 * wo
            feat_s[n:n + 1, p * c2out:(p + 1) * c2out] = \
                pool2_s[pl.ds(row, 1), :].astype(bf16)
    h = jnp.maximum(
        jnp.dot(feat_s[...], fw1_ref[...], preferred_element_type=f32)
        + fb1_ref[...], 0.0).astype(bf16)
    o_ref[...] = (jnp.dot(h, fw2_ref[...], preferred_element_type=f32)
                  + fb2_ref[...])


def _full_spec(shape):
    zeros = (0,) * len(shape)
    return pl.BlockSpec(shape, lambda i, _z=zeros: _z)


# ---------------------------------------------------------------------------
# Forward wrapper (one pallas_call; weights already re-laid-out)
# ---------------------------------------------------------------------------
@functools.partial(jax.jit, static_argnames=("num_class",))
def class_net_forward(x_nchw, prep, num_class=4):
    w1w, b1r, w2w, b2r, fw1f, fb1r, fw2p, fb2p = prep
    N, Cin, H, W = x_nchw.shape
    c1in_p = w1w.shape[0] // 9       # conv1 in-channels padded to 32
    c1out = b1r.shape[1]
    c2out = b2r.shape[1]
    g = _geometry(N, H, W)
    assert fw1f.shape[0] == g.Hq2 * g.Wq2 * c2out, \
        "fc1 in-features must equal the flattened conv feature count"

    # flatten the zero-padded NHWC input (row = n*Hp1*Wp1 + h*Wp1 + w),
    # zero-pad channels 18->32 and cast to bf16 ONCE here.
    x = jnp.transpose(x_nchw, (0, 2, 3, 1))
    x = jnp.pad(x, ((0, 0), (2, 2), (2, 2), (0, c1in_p - Cin)))
    xf = jnp.pad(x.reshape(g.R1, c1in_p),
                 ((0, g.R1s - g.R1), (0, 0))).astype(jnp.bfloat16)

    s1 = jnp.asarray(_gather_matrix(N, H, W), jnp.bfloat16)

    out = pl.pallas_call(
        functools.partial(_class_net_kernel, g=g),
        out_shape=jax.ShapeDtypeStruct((N, fw2p.shape[1]), jnp.float32),
        grid=(1,),
        in_specs=[_full_spec(a.shape) for a in
                  (xf, w1w, b1r, s1, w2w, b2r, fw1f, fb1r, fw2p, fb2p)],
        out_specs=pl.BlockSpec((N, fw2p.shape[1]), lambda i: (0, 0)),
        scratch_shapes=[
            pltpu.VMEM((g.R1, 9 * c1in_p), jnp.bfloat16),   # conv1 im2col
            pltpu.VMEM((g.R1, c1out), jnp.float32),          # conv1+ReLU
            pltpu.VMEM((g.R2s, c1out), jnp.bfloat16),        # conv2 input
            pltpu.VMEM((g.R2, 9 * c1out), jnp.bfloat16),     # conv2 im2col
            pltpu.VMEM((g.R2, c2out), jnp.float32),          # conv2+ReLU
            pltpu.VMEM((g.P2, c2out), jnp.float32),          # pool2
            pltpu.VMEM((N, g.Hq2 * g.Wq2 * c2out), jnp.bfloat16),  # fc feats
        ],
        # TODO(synk): at production batch sizes switch to a batch-tiled grid
        # with dimension_semantics=("parallel", ...) for v7x megacore + DMA
        # pipelining; at N=2 a single program is optimal.
        compiler_params=pltpu.CompilerParams(
            dimension_semantics=("arbitrary",)),
    )(xf, w1w, b1r, s1, w2w, b2r, fw1f, fb1r, fw2p, fb2p)
    return out[:, :num_class]


# ---------------------------------------------------------------------------
# One-time parameter re-layout (hoisted out of the per-call graph)
# ---------------------------------------------------------------------------
def prepare_params(params):
    w1, b1, w2, b2, fw1, fb1, fw2, fb2 = params
    f32, bf16 = jnp.float32, jnp.bfloat16
    c1o, c1i = w1.shape[0], w1.shape[1]
    c2o, c2i = w2.shape[0], w2.shape[1]
    c1i_p = _round_up(c1i, 32)
    # conv weights (Cout, Cin, 3, 3) -> im2col layout (9*Cin_pad, Cout),
    # feature index = (3*di + dj)*Cin_pad + c, matching the kernel's im2col.
    w1t = jnp.transpose(w1, (2, 3, 1, 0))                       # (3,3,Cin,Cout)
    w1t = jnp.pad(w1t, ((0, 0), (0, 0), (0, c1i_p - c1i), (0, 0)))
    w1w = w1t.reshape(9 * c1i_p, c1o).astype(bf16)
    w2w = jnp.transpose(w2, (2, 3, 1, 0)).reshape(9 * c2i, c2o).astype(bf16)
    b1r = b1.reshape(1, c1o).astype(f32)
    b2r = b2.reshape(1, c2o).astype(f32)
    # fc1: torch flattens NCHW (feature = c*spatial + p); re-order to the
    # kernel's spatial-major packing (feature = p*c2o + c).
    hidden, feat = fw1.shape
    spatial = feat // c2o
    fw1f = jnp.transpose(fw1.reshape(hidden, c2o, spatial),
                         (2, 1, 0)).reshape(spatial * c2o, hidden).astype(bf16)
    fb1r = fb1.reshape(1, hidden).astype(f32)
    # fc2: pre-transpose and pad outputs to 128 lanes (lane-dense HBM store).
    nc = fw2.shape[0]
    assert nc <= 128
    fw2p = jnp.zeros((hidden, 128), f32).at[:, :nc].set(fw2.T).astype(bf16)
    fb2p = jnp.zeros((1, 128), f32).at[0, :nc].set(fb2.astype(f32))
    return (w1w, b1r, w2w, b2r, fw1f, fb1r, fw2p, fb2p)


# ---------------------------------------------------------------------------
# Deterministic parameter init (PyTorch-like uniform fan-in bounds)
# ---------------------------------------------------------------------------
def init_params(key, num_class=4):
    ks = jax.random.split(key, 8)

    def u(k, shape, fan_in):
        bound = 1.0 / jnp.sqrt(float(fan_in))
        return jax.random.uniform(k, shape, jnp.float32, -bound, bound)

    w1 = u(ks[0], (32, 18, 3, 3), 18 * 9)
    b1 = u(ks[1], (32,), 18 * 9)
    w2 = u(ks[2], (64, 32, 3, 3), 32 * 9)
    b2 = u(ks[3], (64,), 32 * 9)
    fw1 = u(ks[4], (128, 256), 256)        # fc1: Linear(256, 128)
    fb1 = u(ks[5], (128,), 256)
    fw2 = u(ks[6], (num_class, 128), 128)  # fc2: Linear(128, num_class)
    fb2 = u(ks[7], (num_class,), 128)
    return (w1, b1, w2, b2, fw1, fb1, fw2, fb2)


# ---------------------------------------------------------------------------
# Pure-JAX reference.  mxu_dtype=bfloat16 mirrors the kernel's bf16 MXU
# operands with f32 accumulation; mxu_dtype=float32 is the full-precision spec.
# ---------------------------------------------------------------------------
def reference_forward(x_nchw, params, mxu_dtype=jnp.float32):
    w1, b1, w2, b2, fw1, fb1, fw2, fb2 = params
    dn = ("NCHW", "OIHW", "NCHW")
    f32 = jnp.float32

    def conv(x, w, pad):
        return jax.lax.conv_general_dilated(
            x.astype(mxu_dtype), w.astype(mxu_dtype), (1, 1),
            [(pad, pad), (pad, pad)], dimension_numbers=dn,
            preferred_element_type=f32)

    def pool(y):
        return jax.lax.reduce_window(y, -jnp.inf, jax.lax.max,
                                     (1, 1, 2, 2), (1, 1, 2, 2), "VALID")

    y = pool(jax.nn.relu(conv(x_nchw, w1, 2) + b1[None, :, None, None]))
    y = pool(jax.nn.relu(conv(y, w2, 1) + b2[None, :, None, None]))
    y = y.reshape(y.shape[0], -1)
    y = jax.nn.relu(jnp.dot(y.astype(mxu_dtype), fw1.T.astype(mxu_dtype),
                            preferred_element_type=f32) + fb1)
    return jnp.dot(y.astype(mxu_dtype), fw2.T.astype(mxu_dtype),
                   preferred_element_type=f32) + fb2


if __name__ == "__main__":
    key = jax.random.PRNGKey(0)
    pkey, xkey = jax.random.split(key)
    params = init_params(pkey, num_class=4)
    prep = prepare_params(params)

    # Input N=2, C=18, H=W=6 so that conv(pad=2)->pool->conv(pad=1)->pool gives
    # 64*2*2 = 256 flattened features, matching fc1 = Linear(256, 128).
    x = jax.random.normal(xkey, (2, 18, 6, 6), jnp.float32)

    out = jax.block_until_ready(class_net_forward(x, prep, num_class=4))
    assert out.shape == (2, 4), out.shape

    # Tight check vs a bf16-MXU / f32-accumulation matched reference.
    ref_bf16 = reference_forward(x, params, mxu_dtype=jnp.bfloat16)
    assert jnp.allclose(out, ref_bf16, rtol=1e-3, atol=1e-3), (out, ref_bf16)
    # Loose check vs the full-f32 spec (bounds the bf16 rounding impact).
    ref_f32 = reference_forward(x, params, mxu_dtype=jnp.float32)
    assert jnp.allclose(out, ref_f32, rtol=5e-2, atol=5e-2), (out, ref_f32)

    print("KERNEL_OK")
</pallas_src>

<mosaic_0001>
module attributes {stable_mosaic.version = 11 : i64} {
  func.func @_class_net_kernel(%arg0: i32, %arg1: memref<224x32xbf16, #tpu.memory_space<vmem>>, %arg2: memref<288x32xbf16, #tpu.memory_space<vmem>>, %arg3: memref<1x32xf32, #tpu.memory_space<vmem>>, %arg4: memref<88x167xbf16, #tpu.memory_space<vmem>>, %arg5: memref<288x64xbf16, #tpu.memory_space<vmem>>, %arg6: memref<1x64xf32, #tpu.memory_space<vmem>>, %arg7: memref<256x128xbf16, #tpu.memory_space<vmem>>, %arg8: memref<1x128xf32, #tpu.memory_space<vmem>>, %arg9: memref<128x128xbf16, #tpu.memory_space<vmem>>, %arg10: memref<1x128xf32, #tpu.memory_space<vmem>>, %arg11: memref<2x128xf32, #tpu.memory_space<vmem>>, %arg12: memref<200x288xbf16, #tpu.memory_space<vmem>>, %arg13: memref<200x32xf32, #tpu.memory_space<vmem>>, %arg14: memref<88x32xbf16, #tpu.memory_space<vmem>>, %arg15: memref<72x288xbf16, #tpu.memory_space<vmem>>, %arg16: memref<72x64xf32, #tpu.memory_space<vmem>>, %arg17: memref<51x64xf32, #tpu.memory_space<vmem>>, %arg18: memref<2x256xbf16, #tpu.memory_space<vmem>>) attributes {dimension_semantics = [#tpu.dimension_semantics<arbitrary>], iteration_bounds = array<i64: 1>, scalar_prefetch = 0 : i64, scratch_operands = 7 : i64, tpu.core_type = #tpu.core_type<tc>, window_params = [{pipeline_mode = #tpu.pipeline_mode<synchronous>, transform_indices = @transform_0, window_bounds = array<i64: 224, 32>}, {pipeline_mode = #tpu.pipeline_mode<synchronous>, transform_indices = @transform_1, window_bounds = array<i64: 288, 32>}, {pipeline_mode = #tpu.pipeline_mode<synchronous>, transform_indices = @transform_2, window_bounds = array<i64: 1, 32>}, {pipeline_mode = #tpu.pipeline_mode<synchronous>, transform_indices = @transform_3, window_bounds = array<i64: 88, 167>}, {pipeline_mode = #tpu.pipeline_mode<synchronous>, transform_indices = @transform_4, window_bounds = array<i64: 288, 64>}, {pipeline_mode = #tpu.pipeline_mode<synchronous>, transform_indices = @transform_5, window_bounds = array<i64: 1, 64>}, {pipeline_mode = #tpu.pipeline_mode<synchronous>, transform_indices = @transform_6, window_bounds = array<i64: 256, 128>}, {pipeline_mode = #tpu.pipeline_mode<synchronous>, transform_indices = @transform_7, window_bounds = array<i64: 1, 128>}, {pipeline_mode = #tpu.pipeline_mode<synchronous>, transform_indices = @transform_8, window_bounds = array<i64: 128, 128>}, {pipeline_mode = #tpu.pipeline_mode<synchronous>, transform_indices = @transform_9, window_bounds = array<i64: 1, 128>}, {pipeline_mode = #tpu.pipeline_mode<synchronous>, transform_indices = @transform_10, window_bounds = array<i64: 2, 128>}]} {
    %c0 = arith.constant 0 : index
    %c0_0 = arith.constant 0 : index
    %0 = vector.load %arg1[%c0, %c0_0] : memref<224x32xbf16, #tpu.memory_space<vmem>>, vector<200x32xbf16>
    %c0_1 = arith.constant 0 : index
    %c0_2 = arith.constant 0 : index
    %1 = vector.load %arg12[%c0_1, %c0_2] : memref<200x288xbf16, #tpu.memory_space<vmem>>, vector<200x32xbf16>
    tpu.vector_store %arg12[%c0_1, %c0_2], %0 {strides = array<i32>} : memref<200x288xbf16, #tpu.memory_space<vmem>>, vector<200x32xbf16>,
    %c1 = arith.constant 1 : index
    %c0_3 = arith.constant 0 : index
    %2 = vector.load %arg1[%c1, %c0_3] : memref<224x32xbf16, #tpu.memory_space<vmem>>, vector<200x32xbf16>
    %c0_4 = arith.constant 0 : index
    %c32 = arith.constant 32 : index
    %3 = vector.load %arg12[%c0_4, %c32] : memref<200x288xbf16, #tpu.memory_space<vmem>>, vector<200x32xbf16>
    tpu.vector_store %arg12[%c0_4, %c32], %2 {strides = array<i32>} : memref<200x288xbf16, #tpu.memory_space<vmem>>, vector<200x32xbf16>,
    %c2 = arith.constant 2 : index
    %c0_5 = arith.constant 0 : index
    %4 = vector.load %arg1[%c2, %c0_5] : memref<224x32xbf16, #tpu.memory_space<vmem>>, vector<200x32xbf16>
    %c0_6 = arith.constant 0 : index
    %c64 = arith.constant 64 : index
    %5 = vector.load %arg12[%c0_6, %c64] : memref<200x288xbf16, #tpu.memory_space<vmem>>, vector<200x32xbf16>
    tpu.vector_store %arg12[%c0_6, %c64], %4 {strides = array<i32>} : memref<200x288xbf16, #tpu.memory_space<vmem>>, vector<200x32xbf16>,
    %c10 = arith.constant 10 : index
    %c0_7 = arith.constant 0 : index
    %6 = vector.load %arg1[%c10, %c0_7] : memref<224x32xbf16, #tpu.memory_space<vmem>>, vector<200x32xbf16>
    %c0_8 = arith.constant 0 : index
    %c96 = arith.constant 96 : index
    %7 = vector.load %arg12[%c0_8, %c96] : memref<200x288xbf16, #tpu.memory_space<vmem>>, vector<200x32xbf16>
    tpu.vector_store %arg12[%c0_8, %c96], %6 {strides = array<i32>} : memref<200x288xbf16, #tpu.memory_space<vmem>>, vector<200x32xbf16>,
    %c11 = arith.constant 11 : index
    %c0_9 = arith.constant 0 : index
    %8 = vector.load %arg1[%c11, %c0_9] : memref<224x32xbf16, #tpu.memory_space<vmem>>, vector<200x32xbf16>
    %c0_10 = arith.constant 0 : index
    %c128 = arith.constant 128 : index
    %9 = vector.load %arg12[%c0_10, %c128] : memref<200x288xbf16, #tpu.memory_space<vmem>>, vector<200x32xbf16>
    tpu.vector_store %arg12[%c0_10, %c128], %8 {strides = array<i32>} : memref<200x288xbf16, #tpu.memory_space<vmem>>, vector<200x32xbf16>,
    %c12 = arith.constant 12 : index
    %c0_11 = arith.constant 0 : index
    %10 = vector.load %arg1[%c12, %c0_11] : memref<224x32xbf16, #tpu.memory_space<vmem>>, vector<200x32xbf16>
    %c0_12 = arith.constant 0 : index
    %c160 = arith.constant 160 : index
    %11 = vector.load %arg12[%c0_12, %c160] : memref<200x288xbf16, #tpu.memory_space<vmem>>, vector<200x32xbf16>
    tpu.vector_store %arg12[%c0_12, %c160], %10 {strides = array<i32>} : memref<200x288xbf16, #tpu.memory_space<vmem>>, vector<200x32xbf16>,
    %c20 = arith.constant 20 : index
    %c0_13 = arith.constant 0 : index
    %12 = vector.load %arg1[%c20, %c0_13] : memref<224x32xbf16, #tpu.memory_space<vmem>>, vector<200x32xbf16>
    %c0_14 = arith.constant 0 : index
    %c192 = arith.constant 192 : index
    %13 = vector.load %arg12[%c0_14, %c192] : memref<200x288xbf16, #tpu.memory_space<vmem>>, vector<200x32xbf16>
    tpu.vector_store %arg12[%c0_14, %c192], %12 {strides = array<i32>} : memref<200x288xbf16, #tpu.memory_space<vmem>>, vector<200x32xbf16>,
    %c21 = arith.constant 21 : index
    %c0_15 = arith.constant 0 : index
    %14 = vector.load %arg1[%c21, %c0_15] : memref<224x32xbf16, #tpu.memory_space<vmem>>, vector<200x32xbf16>
    %c0_16 = arith.constant 0 : index
    %c224 = arith.constant 224 : index
    %15 = vector.load %arg12[%c0_16, %c224] : memref<200x288xbf16, #tpu.memory_space<vmem>>, vector<200x32xbf16>
    tpu.vector_store %arg12[%c0_16, %c224], %14 {strides = array<i32>} : memref<200x288xbf16, #tpu.memory_space<vmem>>, vector<200x32xbf16>,
    %c22 = arith.constant 22 : index
    %c0_17 = arith.constant 0 : index
    %16 = vector.load %arg1[%c22, %c0_17] : memref<224x32xbf16, #tpu.memory_space<vmem>>, vector<200x32xbf16>
    %c0_18 = arith.constant 0 : index
    %c256 = arith.constant 256 : index
    %17 = vector.load %arg12[%c0_18, %c256] : memref<200x288xbf16, #tpu.memory_space<vmem>>, vector<200x32xbf16>
    tpu.vector_store %arg12[%c0_18, %c256], %16 {strides = array<i32>} : memref<200x288xbf16, #tpu.memory_space<vmem>>, vector<200x32xbf16>,
    %c0_19 = arith.constant 0 : index
    %c0_20 = arith.constant 0 : index
    %18 = vector.load %arg12[%c0_19, %c0_20] : memref<200x288xbf16, #tpu.memory_space<vmem>>, vector<200x288xbf16>
    %c0_21 = arith.constant 0 : index
    %c0_22 = arith.constant 0 : index
    %19 = vector.load %arg2[%c0_21, %c0_22] : memref<288x32xbf16, #tpu.memory_space<vmem>>, vector<288x32xbf16>
    %cst = arith.constant dense<0.000000e+00> : vector<200x32xf32>
    %20 = tpu.matmul %18, %19, %cst {dimension_numbers = #tpu.dot_dimension_numbers<[1], [0], [0], [1], [0, 0, 1, 1], [], []>} : vector<200x288xbf16>, vector<288x32xbf16>, vector<200x32xf32> -> vector<200x32xf32>
    %c0_23 = arith.constant 0 : index
    %c0_24 = arith.constant 0 : index
    %21 = vector.load %arg3[%c0_23, %c0_24] : memref<1x32xf32, #tpu.memory_space<vmem>>, vector<1x32xf32>
    %22 = vector.broadcast %21 : vector<1x32xf32> to vector<200x32xf32>
    %23 = arith.addf %20, %22 : vector<200x32xf32>
    %cst_25 = arith.constant 0.000000e+00 : f32
    %24 = vector.broadcast %cst_25 : f32 to vector<200x32xf32>
    %25 = arith.maximumf %23, %24 : vector<200x32xf32>
    %c0_26 = arith.constant 0 : index
    %c0_27 = arith.constant 0 : index
    %26 = vector.load %arg13[%c0_26, %c0_27] : memref<200x32xf32, #tpu.memory_space<vmem>>, vector<200x32xf32>
    tpu.vector_store %arg13[%c0_26, %c0_27], %25 {strides = array<i32>} : memref<200x32xf32, #tpu.memory_space<vmem>>, vector<200x32xf32>,
    %c0_28 = arith.constant 0 : index
    %c0_29 = arith.constant 0 : index
    %27 = vector.load %arg13[%c0_28, %c0_29] : memref<200x32xf32, #tpu.memory_space<vmem>>, vector<167x32xf32>
    %c1_30 = arith.constant 1 : index
    %c0_31 = arith.constant 0 : index
    %28 = vector.load %arg13[%c1_30, %c0_31] : memref<200x32xf32, #tpu.memory_space<vmem>>, vector<167x32xf32>
    %29 = arith.maximumf %27, %28 : vector<167x32xf32>
    %c10_32 = arith.constant 10 : index
    %c0_33 = arith.constant 0 : index
    %30 = vector.load %arg13[%c10_32, %c0_33] : memref<200x32xf32, #tpu.memory_space<vmem>>, vector<167x32xf32>
    %c11_34 = arith.constant 11 : index
    %c0_35 = arith.constant 0 : index
    %31 = vector.load %arg13[%c11_34, %c0_35] : memref<200x32xf32, #tpu.memory_space<vmem>>, vector<167x32xf32>
    %32 = arith.maximumf %30, %31 : vector<167x32xf32>
    %33 = arith.maximumf %29, %32 : vector<167x32xf32>
    %c0_36 = arith.constant 0 : index
    %c0_37 = arith.constant 0 : index
    %34 = vector.load %arg4[%c0_36, %c0_37] : memref<88x167xbf16, #tpu.memory_space<vmem>>, vector<88x167xbf16>
    %35 = arith.truncf %33 : vector<167x32xf32> to vector<167x32xbf16>
    %cst_38 = arith.constant dense<0.000000e+00> : vector<88x32xf32>
    %36 = tpu.matmul %34, %35, %cst_38 {dimension_numbers = #tpu.dot_dimension_numbers<[1], [0], [0], [1], [0, 0, 1, 1], [], []>} : vector<88x167xbf16>, vector<167x32xbf16>, vector<88x32xf32> -> vector<88x32xf32>
    %37 = arith.truncf %36 : vector<88x32xf32> to vector<88x32xbf16>
    %c0_39 = arith.constant 0 : index
    %c0_40 = arith.constant 0 : index
    %38 = vector.load %arg14[%c0_39, %c0_40] : memref<88x32xbf16, #tpu.memory_space<vmem>>, vector<88x32xbf16>
    tpu.vector_store %arg14[%c0_39, %c0_40], %37 {strides = array<i32>} : memref<88x32xbf16, #tpu.memory_space<vmem>>, vector<88x32xbf16>,
    %c0_41 = arith.constant 0 : index
    %c0_42 = arith.constant 0 : index
    %39 = vector.load %arg14[%c0_41, %c0_42] : memref<88x32xbf16, #tpu.memory_space<vmem>>, vector<72x32xbf16>
    %c0_43 = arith.constant 0 : index
    %c0_44 = arith.constant 0 : index
    %40 = vector.load %arg15[%c0_43, %c0_44] : memref<72x288xbf16, #tpu.memory_space<vmem>>, vector<72x32xbf16>
    tpu.vector_store %arg15[%c0_43, %c0_44], %39 {strides = array<i32>} : memref<72x288xbf16, #tpu.memory_space<vmem>>, vector<72x32xbf16>,
    %c1_45 = arith.constant 1 : index
    %c0_46 = arith.constant 0 : index
    %41 = vector.load %arg14[%c1_45, %c0_46] : memref<88x32xbf16, #tpu.memory_space<vmem>>, vector<72x32xbf16>
    %c0_47 = arith.constant 0 : index
    %c32_48 = arith.constant 32 : index
    %42 = vector.load %arg15[%c0_47, %c32_48] : memref<72x288xbf16, #tpu.memory_space<vmem>>, vector<72x32xbf16>
    tpu.vector_store %arg15[%c0_47, %c32_48], %41 {strides = array<i32>} : memref<72x288xbf16, #tpu.memory_space<vmem>>, vector<72x32xbf16>,
    %c2_49 = arith.constant 2 : index
    %c0_50 = arith.constant 0 : index
    %43 = vector.load %arg14[%c2_49, %c0_50] : memref<88x32xbf16, #tpu.memory_space<vmem>>, vector<72x32xbf16>
    %c0_51 = arith.constant 0 : index
    %c64_52 = arith.constant 64 : index
    %44 = vector.load %arg15[%c0_51, %c64_52] : memref<72x288xbf16, #tpu.memory_space<vmem>>, vector<72x32xbf16>
    tpu.vector_store %arg15[%c0_51, %c64_52], %43 {strides = array<i32>} : memref<72x288xbf16, #tpu.memory_space<vmem>>, vector<72x32xbf16>,
    %c6 = arith.constant 6 : index
    %c0_53 = arith.constant 0 : index
    %45 = vector.load %arg14[%c6, %c0_53] : memref<88x32xbf16, #tpu.memory_space<vmem>>, vector<72x32xbf16>
    %c0_54 = arith.constant 0 : index
    %c96_55 = arith.constant 96 : index
    %46 = vector.load %arg15[%c0_54, %c96_55] : memref<72x288xbf16, #tpu.memory_space<vmem>>, vector<72x32xbf16>
    tpu.vector_store %arg15[%c0_54, %c96_55], %45 {strides = array<i32>} : memref<72x288xbf16, #tpu.memory_space<vmem>>, vector<72x32xbf16>,
    %c7 = arith.constant 7 : index
    %c0_56 = arith.constant 0 : index
    %47 = vector.load %arg14[%c7, %c0_56] : memref<88x32xbf16, #tpu.memory_space<vmem>>, vector<72x32xbf16>
    %c0_57 = arith.constant 0 : index
    %c128_58 = arith.constant 128 : index
    %48 = vector.load %arg15[%c0_57, %c128_58] : memref<72x288xbf16, #tpu.memory_space<vmem>>, vector<72x32xbf16>
    tpu.vector_store %arg15[%c0_57, %c128_58], %47 {strides = array<i32>} : memref<72x288xbf16, #tpu.memory_space<vmem>>, vector<72x32xbf16>,
    %c8 = arith.constant 8 : index
    %c0_59 = arith.constant 0 : index
    %49 = vector.load %arg14[%c8, %c0_59] : memref<88x32xbf16, #tpu.memory_space<vmem>>, vector<72x32xbf16>
    %c0_60 = arith.constant 0 : index
    %c160_61 = arith.constant 160 : index
    %50 = vector.load %arg15[%c0_60, %c160_61] : memref<72x288xbf16, #tpu.memory_space<vmem>>, vector<72x32xbf16>
    tpu.vector_store %arg15[%c0_60, %c160_61], %49 {strides = array<i32>} : memref<72x288xbf16, #tpu.memory_space<vmem>>, vector<72x32xbf16>,
    %c12_62 = arith.constant 12 : index
    %c0_63 = arith.constant 0 : index
    %51 = vector.load %arg14[%c12_62, %c0_63] : memref<88x32xbf16, #tpu.memory_space<vmem>>, vector<72x32xbf16>
    %c0_64 = arith.constant 0 : index
    %c192_65 = arith.constant 192 : index
    %52 = vector.load %arg15[%c0_64, %c192_65] : memref<72x288xbf16, #tpu.memory_space<vmem>>, vector<72x32xbf16>
    tpu.vector_store %arg15[%c0_64, %c192_65], %51 {strides = array<i32>} : memref<72x288xbf16, #tpu.memory_space<vmem>>, vector<72x32xbf16>,
    %c13 = arith.constant 13 : index
    %c0_66 = arith.constant 0 : index
    %53 = vector.load %arg14[%c13, %c0_66] : memref<88x32xbf16, #tpu.memory_space<vmem>>, vector<72x32xbf16>
    %c0_67 = arith.constant 0 : index
    %c224_68 = arith.constant 224 : index
    %54 = vector.load %arg15[%c0_67, %c224_68] : memref<72x288xbf16, #tpu.memory_space<vmem>>, vector<72x32xbf16>
    tpu.vector_store %arg15[%c0_67, %c224_68], %53 {strides = array<i32>} : memref<72x288xbf16, #tpu.memory_space<vmem>>, vector<72x32xbf16>,
    %c14 = arith.constant 14 : index
    %c0_69 = arith.constant 0 : index
    %55 = vector.load %arg14[%c14, %c0_69] : memref<88x32xbf16, #tpu.memory_space<vmem>>, vector<72x32xbf16>
    %c0_70 = arith.constant 0 : index
    %c256_71 = arith.constant 256 : index
    %56 = vector.load %arg15[%c0_70, %c256_71] : memref<72x288xbf16, #tpu.memory_space<vmem>>, vector<72x32xbf16>
    tpu.vector_store %arg15[%c0_70, %c256_71], %55 {strides = array<i32>} : memref<72x288xbf16, #tpu.memory_space<vmem>>, vector<72x32xbf16>,
    %c0_72 = arith.constant 0 : index
    %c0_73 = arith.constant 0 : index
    %57 = vector.load %arg15[%c0_72, %c0_73] : memref<72x288xbf16, #tpu.memory_space<vmem>>, vector<72x288xbf16>
    %c0_74 = arith.constant 0 : index
    %c0_75 = arith.constant 0 : index
    %58 = vector.load %arg5[%c0_74, %c0_75] : memref<288x64xbf16, #tpu.memory_space<vmem>>, vector<288x64xbf16>
    %cst_76 = arith.constant dense<0.000000e+00> : vector<72x64xf32>
    %59 = tpu.matmul %57, %58, %cst_76 {dimension_numbers = #tpu.dot_dimension_numbers<[1], [0], [0], [1], [0, 0, 1, 1], [], []>} : vector<72x288xbf16>, vector<288x64xbf16>, vector<72x64xf32> -> vector<72x64xf32>
    %c0_77 = arith.constant 0 : index
    %c0_78 = arith.constant 0 : index
    %60 = vector.load %arg6[%c0_77, %c0_78] : memref<1x64xf32, #tpu.memory_space<vmem>>, vector<1x64xf32>
    %61 = vector.broadcast %60 : vector<1x64xf32> to vector<72x64xf32>
    %62 = arith.addf %59, %61 : vector<72x64xf32>
    %cst_79 = arith.constant 0.000000e+00 : f32
    %63 = vector.broadcast %cst_79 : f32 to vector<72x64xf32>
    %64 = arith.maximumf %62, %63 : vector<72x64xf32>
    %c0_80 = arith.constant 0 : index
    %c0_81 = arith.constant 0 : index
    %65 = vector.load %arg16[%c0_80, %c0_81] : memref<72x64xf32, #tpu.memory_space<vmem>>, vector<72x64xf32>
    tpu.vector_store %arg16[%c0_80, %c0_81], %64 {strides = array<i32>} : memref<72x64xf32, #tpu.memory_space<vmem>>, vector<72x64xf32>,
    %c0_82 = arith.constant 0 : index
    %c0_83 = arith.constant 0 : index
    %66 = vector.load %arg16[%c0_82, %c0_83] : memref<72x64xf32, #tpu.memory_space<vmem>>, vector<51x64xf32>
    %c1_84 = arith.constant 1 : index
    %c0_85 = arith.constant 0 : index
    %67 = vector.load %arg16[%c1_84, %c0_85] : memref<72x64xf32, #tpu.memory_space<vmem>>, vector<51x64xf32>
    %68 = arith.maximumf %66, %67 : vector<51x64xf32>
    %c6_86 = arith.constant 6 : index
    %c0_87 = arith.constant 0 : index
    %69 = vector.load %arg16[%c6_86, %c0_87] : memref<72x64xf32, #tpu.memory_space<vmem>>, vector<51x64xf32>
    %c7_88 = arith.constant 7 : index
    %c0_89 = arith.constant 0 : index
    %70 = vector.load %arg16[%c7_88, %c0_89] : memref<72x64xf32, #tpu.memory_space<vmem>>, vector<51x64xf32>
    %71 = arith.maximumf %69, %70 : vector<51x64xf32>
    %72 = arith.maximumf %68, %71 : vector<51x64xf32>
    %c0_90 = arith.constant 0 : index
    %c0_91 = arith.constant 0 : index
    %73 = vector.load %arg17[%c0_90, %c0_91] : memref<51x64xf32, #tpu.memory_space<vmem>>, vector<51x64xf32>
    tpu.vector_store %arg17[%c0_90, %c0_91], %72 {strides = array<i32>} : memref<51x64xf32, #tpu.memory_space<vmem>>, vector<51x64xf32>,
    %c0_92 = arith.constant 0 : index
    %c0_93 = arith.constant 0 : index
    %74 = vector.load %arg17[%c0_92, %c0_93] : memref<51x64xf32, #tpu.memory_space<vmem>>, vector<1x64xf32>
    %75 = arith.truncf %74 : vector<1x64xf32> to vector<1x64xbf16>
    %c0_94 = arith.constant 0 : index
    %c0_95 = arith.constant 0 : index
    %76 = vector.load %arg18[%c0_94, %c0_95] : memref<2x256xbf16, #tpu.memory_space<vmem>>, vector<1x64xbf16>
    tpu.vector_store %arg18[%c0_94, %c0_95], %75 {strides = array<i32>} : memref<2x256xbf16, #tpu.memory_space<vmem>>, vector<1x64xbf16>,
    %c2_96 = arith.constant 2 : index
    %c0_97 = arith.constant 0 : index
    %77 = vector.load %arg17[%c2_96, %c0_97] : memref<51x64xf32, #tpu.memory_space<vmem>>, vector<1x64xf32>
    %78 = arith.truncf %77 : vector<1x64xf32> to vector<1x64xbf16>
    %c0_98 = arith.constant 0 : index
    %c64_99 = arith.constant 64 : index
    %79 = vector.load %arg18[%c0_98, %c64_99] : memref<2x256xbf16, #tpu.memory_space<vmem>>, vector<1x64xbf16>
    tpu.vector_store %arg18[%c0_98, %c64_99], %78 {strides = array<i32>} : memref<2x256xbf16, #tpu.memory_space<vmem>>, vector<1x64xbf16>,
    %c12_100 = arith.constant 12 : index
    %c0_101 = arith.constant 0 : index
    %80 = vector.load %arg17[%c12_100, %c0_101] : memref<51x64xf32, #tpu.memory_space<vmem>>, vector<1x64xf32>
    %81 = arith.truncf %80 : vector<1x64xf32> to vector<1x64xbf16>
    %c0_102 = arith.constant 0 : index
    %c128_103 = arith.constant 128 : index
    %82 = vector.load %arg18[%c0_102, %c128_103] : memref<2x256xbf16, #tpu.memory_space<vmem>>, vector<1x64xbf16>
    tpu.vector_store %arg18[%c0_102, %c128_103], %81 {strides = array<i32>} : memref<2x256xbf16, #tpu.memory_space<vmem>>, vector<1x64xbf16>,
    %c14_104 = arith.constant 14 : index
    %c0_105 = arith.constant 0 : index
    %83 = vector.load %arg17[%c14_104, %c0_105] : memref<51x64xf32, #tpu.memory_space<vmem>>, vector<1x64xf32>
    %84 = arith.truncf %83 : vector<1x64xf32> to vector<1x64xbf16>
    %c0_106 = arith.constant 0 : index
    %c192_107 = arith.constant 192 : index
    %85 = vector.load %arg18[%c0_106, %c192_107] : memref<2x256xbf16, #tpu.memory_space<vmem>>, vector<1x64xbf16>
    tpu.vector_store %arg18[%c0_106, %c192_107], %84 {strides = array<i32>} : memref<2x256xbf16, #tpu.memory_space<vmem>>, vector<1x64xbf16>,
    %c36 = arith.constant 36 : index
    %c0_108 = arith.constant 0 : index
    %86 = vector.load %arg17[%c36, %c0_108] : memref<51x64xf32, #tpu.memory_space<vmem>>, vector<1x64xf32>
    %87 = arith.truncf %86 : vector<1x64xf32> to vector<1x64xbf16>
    %c1_109 = arith.constant 1 : index
    %c0_110 = arith.constant 0 : index
    %88 = vector.load %arg18[%c1_109, %c0_110] : memref<2x256xbf16, #tpu.memory_space<vmem>>, vector<1x64xbf16>
    tpu.vector_store %arg18[%c1_109, %c0_110], %87 {strides = array<i32>} : memref<2x256xbf16, #tpu.memory_space<vmem>>, vector<1x64xbf16>,
    %c38 = arith.constant 38 : index
    %c0_111 = arith.constant 0 : index
    %89 = vector.load %arg17[%c38, %c0_111] : memref<51x64xf32, #tpu.memory_space<vmem>>, vector<1x64xf32>
    %90 = arith.truncf %89 : vector<1x64xf32> to vector<1x64xbf16>
    %c1_112 = arith.constant 1 : index
    %c64_113 = arith.constant 64 : index
    %91 = vector.load %arg18[%c1_112, %c64_113] : memref<2x256xbf16, #tpu.memory_space<vmem>>, vector<1x64xbf16>
    tpu.vector_store %arg18[%c1_112, %c64_113], %90 {strides = array<i32>} : memref<2x256xbf16, #tpu.memory_space<vmem>>, vector<1x64xbf16>,
    %c48 = arith.constant 48 : index
    %c0_114 = arith.constant 0 : index
    %92 = vector.load %arg17[%c48, %c0_114] : memref<51x64xf32, #tpu.memory_space<vmem>>, vector<1x64xf32>
    %93 = arith.truncf %92 : vector<1x64xf32> to vector<1x64xbf16>
    %c1_115 = arith.constant 1 : index
    %c128_116 = arith.constant 128 : index
    %94 = vector.load %arg18[%c1_115, %c128_116] : memref<2x256xbf16, #tpu.memory_space<vmem>>, vector<1x64xbf16>
    tpu.vector_store %arg18[%c1_115, %c128_116], %93 {strides = array<i32>} : memref<2x256xbf16, #tpu.memory_space<vmem>>, vector<1x64xbf16>,
    %c50 = arith.constant 50 : index
    %c0_117 = arith.constant 0 : index
    %95 = vector.load %arg17[%c50, %c0_117] : memref<51x64xf32, #tpu.memory_space<vmem>>, vector<1x64xf32>
    %96 = arith.truncf %95 : vector<1x64xf32> to vector<1x64xbf16>
    %c1_118 = arith.constant 1 : index
    %c192_119 = arith.constant 192 : index
    %97 = vector.load %arg18[%c1_118, %c192_119] : memref<2x256xbf16, #tpu.memory_space<vmem>>, vector<1x64xbf16>
    tpu.vector_store %arg18[%c1_118, %c192_119], %96 {strides = array<i32>} : memref<2x256xbf16, #tpu.memory_space<vmem>>, vector<1x64xbf16>,
    %c0_120 = arith.constant 0 : index
    %c0_121 = arith.constant 0 : index
    %98 = vector.load %arg18[%c0_120, %c0_121] : memref<2x256xbf16, #tpu.memory_space<vmem>>, vector<2x256xbf16>
    %c0_122 = arith.constant 0 : index
    %c0_123 = arith.constant 0 : index
    %99 = vector.load %arg7[%c0_122, %c0_123] : memref<256x128xbf16, #tpu.memory_space<vmem>>, vector<256x128xbf16>
    %cst_124 = arith.constant dense<0.000000e+00> : vector<2x128xf32>
    %100 = tpu.matmul %98, %99, %cst_124 {dimension_numbers = #tpu.dot_dimension_numbers<[1], [0], [0], [1], [0, 0, 1, 1], [], []>} : vector<2x256xbf16>, vector<256x128xbf16>, vector<2x128xf32> -> vector<2x128xf32>
    %c0_125 = arith.constant 0 : index
    %c0_126 = arith.constant 0 : index
    %101 = vector.load %arg8[%c0_125, %c0_126] : memref<1x128xf32, #tpu.memory_space<vmem>>, vector<1x128xf32>
    %102 = vector.broadcast %101 : vector<1x128xf32> to vector<2x128xf32>
    %103 = arith.addf %100, %102 : vector<2x128xf32>
    %cst_127 = arith.constant 0.000000e+00 : f32
    %104 = vector.broadcast %cst_127 : f32 to vector<2x128xf32>
    %105 = arith.maximumf %103, %104 : vector<2x128xf32>
    %106 = arith.truncf %105 : vector<2x128xf32> to vector<2x128xbf16>
    %c0_128 = arith.constant 0 : index
    %c0_129 = arith.constant 0 : index
    %107 = vector.load %arg9[%c0_128, %c0_129] : memref<128x128xbf16, #tpu.memory_space<vmem>>, vector<128x128xbf16>
    %cst_130 = arith.constant dense<0.000000e+00> : vector<2x128xf32>
    %108 = tpu.matmul %106, %107, %cst_130 {dimension_numbers = #tpu.dot_dimension_numbers<[1], [0], [0], [1], [0, 0, 1, 1], [], []>} : vector<2x128xbf16>, vector<128x128xbf16>, vector<2x128xf32> -> vector<2x128xf32>
    %c0_131 = arith.constant 0 : index
    %c0_132 = arith.constant 0 : index
    %109 = vector.load %arg10[%c0_131, %c0_132] : memref<1x128xf32, #tpu.memory_space<vmem>>, vector<1x128xf32>
    %110 = vector.broadcast %109 : vector<1x128xf32> to vector<2x128xf32>
    %111 = arith.addf %108, %110 : vector<2x128xf32>
    %c0_133 = arith.constant 0 : index
    %c0_134 = arith.constant 0 : index
    %112 = vector.load %arg11[%c0_133, %c0_134] : memref<2x128xf32, #tpu.memory_space<vmem>>, vector<2x128xf32>
    tpu.vector_store %arg11[%c0_133, %c0_134], %111 {strides = array<i32>} : memref<2x128xf32, #tpu.memory_space<vmem>>, vector<2x128xf32>,
    return
  }
  func.func @transform_0(%arg0: i32) -> (i32, i32) {
    %c0_i32 = arith.constant 0 : i32
    %c0_i32_0 = arith.constant 0 : i32
    %c0_i32_1 = arith.constant 0 : i32
    return %c0_i32, %c0_i32_0 : i32, i32
  }
  func.func @transform_1(%arg0: i32) -> (i32, i32) {
    %c0_i32 = arith.constant 0 : i32
    %c0_i32_0 = arith.constant 0 : i32
    %c0_i32_1 = arith.constant 0 : i32
    return %c0_i32, %c0_i32_0 : i32, i32
  }
  func.func @transform_2(%arg0: i32) -> (i32, i32) {
    %c0_i32 = arith.constant 0 : i32
    %c0_i32_0 = arith.constant 0 : i32
    %c0_i32_1 = arith.constant 0 : i32
    return %c0_i32, %c0_i32_0 : i32, i32
  }
  func.func @transform_3(%arg0: i32) -> (i32, i32) {
    %c0_i32 = arith.constant 0 : i32
    %c0_i32_0 = arith.constant 0 : i32
    %c0_i32_1 = arith.constant 0 : i32
    return %c0_i32, %c0_i32_0 : i32, i32
  }
  func.func @transform_4(%arg0: i32) -> (i32, i32) {
    %c0_i32 = arith.constant 0 : i32
    %c0_i32_0 = arith.constant 0 : i32
    %c0_i32_1 = arith.constant 0 : i32
    return %c0_i32, %c0_i32_0 : i32, i32
  }
  func.func @transform_5(%arg0: i32) -> (i32, i32) {
    %c0_i32 = arith.constant 0 : i32
    %c0_i32_0 = arith.constant 0 : i32
    %c0_i32_1 = arith.constant 0 : i32
    return %c0_i32, %c0_i32_0 : i32, i32
  }
  func.func @transform_6(%arg0: i32) -> (i32, i32) {
    %c0_i32 = arith.constant 0 : i32
    %c0_i32_0 = arith.constant 0 : i32
    %c0_i32_1 = arith.constant 0 : i32
    return %c0_i32, %c0_i32_0 : i32, i32
  }
  func.func @transform_7(%arg0: i32) -> (i32, i32) {
    %c0_i32 = arith.constant 0 : i32
    %c0_i32_0 = arith.constant 0 : i32
    %c0_i32_1 = arith.constant 0 : i32
    return %c0_i32, %c0_i32_0 : i32, i32
  }
  func.func @transform_8(%arg0: i32) -> (i32, i32) {
    %c0_i32 = arith.constant 0 : i32
    %c0_i32_0 = arith.constant 0 : i32
    %c0_i32_1 = arith.constant 0 : i32
    return %c0_i32, %c0_i32_0 : i32, i32
  }
  func.func @transform_9(%arg0: i32) -> (i32, i32) {
    %c0_i32 = arith.constant 0 : i32
    %c0_i32_0 = arith.constant 0 : i32
    %c0_i32_1 = arith.constant 0 : i32
    return %c0_i32, %c0_i32_0 : i32, i32
  }
  func.func @transform_10(%arg0: i32) -> (i32, i32) {
    %c0_i32 = arith.constant 0 : i32
    %c0_i32_0 = arith.constant 0 : i32
    %c0_i32_1 = arith.constant 0 : i32
    return %c0_i32, %c0_i32_0 : i32, i32
  }
}

</mosaic_0001>

<bundles_post_ra>
// kernel: class_net_forward.1
= control target key start
LH: loop header
LB: loop body
LE: loop exit
PB: predicated region body
PF: predicated region fallthrough
CT: control target
= control target key end

     0   :  { %vm1322_vm0 = vcmask 1041408   ;;  %vm1323_vm1 = vcmask 1045508   ;;  %vm524_vm2 = vcmask 1042432   ;;  %vm525_vm4 = vcmask 1046532   ;;  %s5840_s25 = smov 32   ;;  %s5841_s30 = smov 64   ;;  %s9588_s0 = inlined_call_operand.vmem [shape: bf16[224,32], index: 0, kind: input, shape index: {}]   ;;  %s9589_s1 = inlined_call_operand.vmem [shape: bf16[288,32], index: 1, kind: input, shape index: {}]   ;;  %s9590_s2 = inlined_call_operand.vmem [shape: f32[1,32], index: 2, kind: input, shape index: {}]   ;;  %s9591_s3 = inlined_call_operand.vmem [shape: bf16[88,167], index: 3, kind: input, shape index: {}]   ;;  %s9592_s4 = inlined_call_operand.vmem [shape: bf16[288,64], index: 4, kind: input, shape index: {}]   ;;  %s9593_s5 = inlined_call_operand.vmem [shape: f32[1,64], index: 5, kind: input, shape index: {}]   ;;  %s9594_s6 = inlined_call_operand.vmem [shape: bf16[256,128], index: 6, kind: input, shape index: {}]   ;;  %s9595_s7 = inlined_call_operand.vmem [shape: f32[1,128], index: 7, kind: input, shape index: {}]   ;;  %s9596_s8 = inlined_call_operand.vmem [shape: bf16[128,128], index: 8, kind: input, shape index: {}]   ;;  %s9597_s9 = inlined_call_operand.vmem [shape: f32[1,128], index: 9, kind: input, shape index: {}]   ;;  %s9598_s10 = inlined_call_operand.hbm [shape: f32[2,128], index: 10, kind: output, shape index: {}]  }
   0x1   :  { %v1270_v0 = vld [vmem:[%s9588_s0 + $0x4] sm:$0xc]  ;;  %v1271_v1 = vld [vmem:[%s9588_s0 + $0x8] sm:$0xf]  ;;  %v472_v4 = vld [vmem:[%s9588_s0] sm:$0xe] }
   0x2   :  { %v5190_v2 = vrot.slane %v1270_v0, 10  ;;  %v1327_v3 = vrot.slane %v1271_v1, 6  ;;  %vm5913_vm3 = vmor %vm1322_vm0, %vm1323_vm1  ;;  %v473_v6 = vld [vmem:[%s9588_s0 + $0x4] sm:$0xf]  ;;  %v5188_v7 = vrot.slane %v472_v4, 9  ;;  %v5682_v26 = vld [vmem:[%s9589_s1 + $0x78] sm:$0xff]  }
   0x3   :  { %vm5923_vm5 = vmor %vm524_vm2, %vm525_vm4  ;;  %v529_v10 = vrot.slane %v473_v6, 5  ;;  %v5930_v11 = vld [vmem:[%s9588_s0 + $0xc] sm:$0xf]  ;;  %v88_v13 = vld [vmem:[%s9588_s0] sm:$0xf]  ;;  %5375 = vmatprep.subr.bf16.mxu0 %v5682_v26  ;;  %s5842_s13 = smov 96  }
   0x4   :  { %v1328_v8 = vsel %vm5913_vm3, %v5190_v2, %v1327_v3  ;;  %v1329_v12 = vrot.slane %v1327_v3, 4  ;;  %v1330_v14 = vrot.slane %v5930_v11, 6  ;;  %v89_v15 = vld [vmem:[%s9588_s0 + $0x4] sm:$0xf]  ;;  %vm114_vm6 = vsmask.f32 3328 }
   0x5   :  { %1401 = vrot.lane.b32.xlu1 %v1328_v8, %s5840_s25  ;;  %v118_v16 = vshrl.u32 %v88_v13, 16  ;;  %v530_v17 = vsel %vm5923_vm5, %v5188_v7, %v529_v10  ;;  %vm115_vm7 = vsmask.f32 7440  ;;  %v121_v18 = vshll.u32 %v88_v13, 16  ;;  %v5945_v20 = vld [vmem:[%s9588_s0 + $0x8] sm:$0xf] }
   0x6   :  { %v127_v19 = vshll.u32 %v89_v15, 16  ;;  %603 = vrot.lane.b32.xlu0 %v530_v17, %s5841_s30  ;;  %v1331_v21 = vsel %vm5913_vm3, %v1329_v12, %v1330_v14  ;;  %v131_v23 = vshrl.u32 %v89_v15, 16  ;;  %v531_v24 = vrot.slane %v529_v10, 4  ;;  %v5955_v25 = vld [vmem:[%s9588_s0 + $0x8] sm:$0xf]  ;;  %vm5992_vm8 = vmor %vm114_vm6, %vm115_vm7  ;;  %v5683_v48 = vld [vmem:[%s9589_s1 + $0x38] sm:$0xff]  }
   0x7   :  { %v120_v22 = vrot.slane %v118_v16, 4  ;;  %v123_v27 = vrot.slane %v121_v18, 5  ;;  %v532_v29 = vrot.slane %v5945_v20, 5  ;;  %v137_v30 = vshll.u32 %v5955_v25, 16  ;;  %v5965_v31 = vld [vmem:[%s9588_s0 + $0xc] sm:$0xf]  ;;  %5376 = vmatpush3.bf16.msra.mxu0 %v5683_v48 }
   0x8   :  { %v129_v28 = vrot.slane %v127_v19, 5  ;;  %v133_v32 = vrot.slane %v131_v23, 4  ;;  %v141_v33 = vshrl.u32 %v5955_v25, 16  ;;  %v5972_v34 = vld [vmem:[%s9588_s0 + $0x10] sm:$0xf]  ;;  %v1555_v35 = vrot.slane %v5965_v31, 6 }
   0x9   :  { %1403 = vrot.lane.b32.xlu1 %v1331_v21, %s5840_s25  ;;  %v124_v36 = vor.u32 %v123_v27, %v120_v22  ;;  %v533_v37 = vsel %vm5923_vm5, %v531_v24, %v532_v29  ;;  %v5979_v38 = vrot.slane %v137_v30, 5  ;;  %v1558_v39 = vrot.slane %v5972_v34, 6  ;;  %v1501_v40 = vld [vmem:[%s9588_s0 + $0x8] sm:$0xc]  ;;  %v5999_v46 = vld [vmem:[%s9588_s0 + $0xc] sm:$0xf] }
   0xa   :  { %v5988_v41 = vld [vmem:[%s9588_s0 + $0x8] sm:$0xf]  ;;  %v134_v43 = vor.u32 %v133_v32, %v129_v28  ;;  %v1557_v44 = vrot.slane %v1555_v35, 4  ;;  %v5191_v45 = vrot.slane %v1501_v40, 10  ;;  %v761_v50 = vrot.slane %v5999_v46, 5  ;;  %v5684_v60 = vld [vmem:[%s9589_s1 + $0x70] sm:$0xff]  }
   0xb   :  { %v758_v47 = vrot.slane %v5988_v41, 5  ;;  %v125_v49 = vrot.slane %v124_v36, 4  ;;  %v6009_v51 = vld [vmem:[%s9588_s0 + $0x4] sm:$0xe]  ;;  %v1730_v52 = vld [vmem:[%s9588_s0 + $0xc] sm:$0xf]  ;;  %5377 = vmatprep.subr.bf16.mxu0 %v5684_v60 }
   0xc   :  { %v135_v53 = vrot.slane %v134_v43, 4  ;;  %v1731_v55 = vld [vmem:[%s9588_s0 + $0x10] sm:$0xf]  ;;  %v1729_v56 = vld [vmem:[%s9588_s0 + $0x8] sm:$0xc]  ;;  %v1559_v58 = vsel %vm5913_vm3, %v1557_v44, %v1558_v39  ;;  %v5189_v59 = vrot.slane %v6009_v51, 9  ;;  %v1556_v27 = vsel %vm5913_vm3, %v5191_v45, %v1555_v35 }
   0xd   :  { %605 = vrot.lane.b32.xlu1 %v533_v37, %s5841_s30  ;;  %v760_v54 = vrot.slane %v758_v47, 4  ;;  %v130_v57 = vsel %vm5992_vm8, %v125_v49, %v129_v28  ;;  %vm1755_vm9 = vsmask.f32 1280  ;;  %vm1756_vm10 = vsmask.f32 5392  ;;  %v5685_v7 = vld [vmem:[%s9589_s1 + $0x30] sm:$0xff]  }
   0xe   :  { %371 = vrot.lane.b32.xlu0 %v130_v57, %s5840_s25  ;;  %v140_v61 = vsel %vm5992_vm8, %v135_v53, %v5979_v38  ;;  %v1768_v62 = vshrl.u32 %v1730_v52, 16  ;;  %v1771_v63 = vshll.u32 %v1730_v52, 16  ;;  %v91_v0 = vld [vmem:[%s9588_s0 + $0xc] sm:$0xf]  ;;  %v1778_v2 = vshrl.u32 %v1731_v55, 16  ;;  %5378 = vmatpush3.bf16.msra.mxu0 %v5685_v7  ;;  %vm6069_vm11 = vmor %vm1755_vm9, %vm1756_vm10  ;;  %v5688_v25 = vld [vmem:[%s9589_s1 + $0x60] sm:$0xff]  }
   0xf   :  { %v762_v1 = vsel %vm5923_vm5, %v760_v54, %v761_v50  ;;  %v1781_v3 = vshll.u32 %v1731_v55, 16  ;;  %v1759_v4 = vshrl.u32 %v1729_v56, 16  ;;  %v6047_v6 = vld [vmem:[%s9588_s0 + $0x10] sm:$0xf]  ;;  %v1762_v12 = vshll.u32 %v1729_v56, 16  ;;  %v5686_v26 = vld [vmem:[%s9589_s1 + $0x68] sm:$0xff]  }
  0x10   :  { %v1770_v8 = vrot.slane %v1768_v62, 6  ;;  %v1773_v10 = vrot.slane %v1771_v63, 7  ;;  %v147_v13 = vshll.u32 %v91_v0, 16  ;;  %v1780_v15 = vrot.slane %v1778_v2, 6  ;;  %v6060_v24 = vld [vmem:[%s9588_s0 + $0x10] sm:$0xf]  ;;  %5379 = vmatprep.subr.bf16.mxu0 %v5686_v26 }
  0x11   :  { %1631 = vrot.lane.b32.xlu1 %v1559_v58, %s5841_s30  ;;  %v1783_v16 = vrot.slane %v1781_v3, 7  ;;  %v1761_v17 = vrot.slane %v1759_v4, 6  ;;  %v151_v18 = vshrl.u32 %v91_v0, 16  ;;  %v1764_v21 = vrot.slane %v1762_v12, 7  ;;  %v5687_v36 = vld [vmem:[%s9589_s1 + $0x28] sm:$0xff]   ;;  %v5689_v58 = vld [vmem:[%s9589_s1 + $0x20] sm:$0xff]  }
  0x12   :  { %373 = vrot.lane.b32.xlu0 %v140_v61, %s5840_s25  ;;  %v1774_v19 = vor.u32 %v1773_v10, %v1770_v8  ;;  %v6054_v22 = vrot.slane %v147_v13, 5  ;;  %v157_v23 = vshll.u32 %v6047_v6, 16  ;;  %v143_v32 = vrot.slane %v141_v33, 4  ;;  %v6084_v40 = vld [vmem:[%s9588_s0 + $0xc] sm:$0xf]  ;;  %5380 = vmatpush3.bf16.msra.mxu0 %v5687_v36  ;;  %v5691_v10 = vld [vmem:[%s9589_s1 + $0x18] sm:$0xff]  }
  0x13   :  { %v6073_v30 = vor.u32 %v1783_v16, %v1780_v15  ;;  %v153_v31 = vrot.slane %v151_v18, 4  ;;  %v1765_v37 = vor.u32 %v1764_v21, %v1761_v17  ;;  %v1333_v44 = vrot.slane %v6060_v24, 6  ;;  %v6104_v49 = vld [vmem:[%s9588_s0 + $0x14] sm:$0xf]  ;;  %5381 = vmatprep.subr.bf16.mxu0 %v5688_v25  ;;  %v6112_v41 = vld [vmem:[%s9588_s0 + $0x10] sm:$0xf] }
  0x14   :  { %v1776_v35 = vrot.slane %v1774_v19, 4  ;;  %v6090_v43 = vrot.slane %v157_v23, 5  ;;  %v759_v45 = vsel %vm5923_vm5, %v5189_v59, %v758_v47  ;;  %v144_v53 = vor.u32 %v143_v32, %v5979_v38  ;;  %v6117_v47 = vld [vmem:[%s9588_s0 + $0x14] sm:$0xf]  ;;  %v5690_v59 = vld [vmem:[%s9589_s1 + $0x58] sm:$0xff]   ;;  %v5694_v32 = vld [vmem:[%s9589_s1 + $0x48] sm:$0xff]  }
  0x15   :  { %834 = vrot.lane.b32.xlu1 %v762_v1, %s5842_s13  ;;  %v154_v33 = vor.u32 %v153_v31, %v6054_v22  ;;  %v1766_v51 = vrot.slane %v1765_v37, 4  ;;  %v535_v54 = vrot.slane %v6084_v40, 5  ;;  %v1335_v56 = vrot.slane %v1333_v44, 4  ;;  %v1732_v57 = vld [vmem:[%s9588_s0 + $0x14] sm:$0xf] }
  0x16   :  { %1629 = vrot.lane.b32.xlu0 %v1556_v27, %s5841_s30  ;;  %v1785_v48 = vsel %vm6069_vm11, %v1776_v35, %v6073_v30  ;;  %v1336_v38 = vrot.slane %v6104_v49, 6  ;;  %v145_v61 = vrot.slane %v144_v53, 4  ;;  %v538_v63 = vrot.slane %v6112_v41, 5  ;;  %5382 = vmatpush3.bf16.msra.mxu0 %v5689_v58  ;;  %v6142_v0 = vld [vmem:[%s9588_s0 + $0x18] sm:$0xf]  ;;  %v5692_v13 = vld [vmem:[%s9589_s1 + $0x50] sm:$0xff]  }
  0x17   :  { %v155_v52 = vrot.slane %v154_v33, 4  ;;  %v1775_v60 = vsel %vm6069_vm11, %v1766_v51, %v1774_v19  ;;  %v537_v62 = vrot.slane %v535_v54, 4  ;;  %v1561_v1 = vrot.slane %v6117_v47, 6  ;;  %5383 = vmatprep.subr.bf16.mxu0 %v5690_v59  ;;  %v6152_v4 = vld [vmem:[%s9588_s0 + $0x10] sm:$0xf] }
  0x18   :  { %v1788_v2 = vshrl.u32 %v1732_v57, 16  ;;  %v1337_v3 = vsel %vm5913_vm3, %v1335_v56, %v1336_v38  ;;  %v1733_v7 = vld [vmem:[%s9588_s0 + $0x18] sm:$0xf]  ;;  %v1791_v8 = vshll.u32 %v1732_v57, 16  ;;  %v93_v12 = vld [vmem:[%s9588_s0 + $0x14] sm:$0xf]  ;;  %v150_v15 = vsel %vm5992_vm8, %v145_v61, %v6054_v22 }
  0x19   :  { %2018 = vrot.lane.b32.xlu1 %v1785_v48, %s5842_s13  ;;  %v160_v55 = vsel %vm5992_vm8, %v155_v52, %v6090_v43  ;;  %v1332_v16 = vrot.slane %v1330_v14, 4  ;;  %v539_v17 = vsel %vm5923_vm5, %v537_v62, %v538_v63  ;;  %v1564_v18 = vrot.slane %v6142_v0, 6  ;;  %v5693_v19 = vld [vmem:[%s9589_s1 + $0x10] sm:$0xff]   ;;  %v5696_v52 = vld [vmem:[%s9589_s1 + $0x40] sm:$0xff]   ;;  %v6213_v53 = vld [vmem:[%s9588_s0 + $0x18] sm:$0xf] }
  0x1a   :  { %832 = vrot.lane.b32.xlu0 %v759_v45, %s5842_s13  ;;  %5384 = vmatpush3.bf16.msra.mxu0 %v5691_v10  ;;  %v1563_v21 = vrot.slane %v1561_v1, 4  ;;  %v764_v22 = vrot.slane %v6152_v4, 5  ;;  %v1790_v23 = vrot.slane %v1788_v2, 6  ;;  %v1798_v11 = vshrl.u32 %v1733_v7, 16  ;;  %v6185_v14 = vld [vmem:[%s9588_s0 + $0x14] sm:$0xf] }
  0x1b   :  { %5385 = vmatprep.subr.bf16.mxu0 %v5692_v13  ;;  %v1793_v24 = vrot.slane %v1791_v8, 7  ;;  %v1801_v26 = vshll.u32 %v1733_v7, 16  ;;  %v167_v27 = vshll.u32 %v93_v12, 16  ;;  %v171_v31 = vshrl.u32 %v93_v12, 16  ;;  %v477_v7 = vld [vmem:[%s9588_s0 + $0x14] sm:$0xf] }
  0x1c   :  { %v1334_v36 = vsel %vm5913_vm3, %v1332_v16, %v1333_v44  ;;  %v534_v35 = vrot.slane %v532_v29, 4  ;;  %v1565_v37 = vsel %vm5913_vm3, %v1563_v21, %v1564_v18  ;;  %v766_v25 = vrot.slane %v764_v22, 4  ;;  %v5695_v44 = vld [vmem:[%s9589_s1 + $0x8] sm:$0xff]   ;;  %v6255_v46 = vld [vmem:[%s9588_s0 + $0x1c] sm:$0xf] }
  0x1d   :  { %377 = vrot.lane.b32.xlu1 %v160_v55, %s5840_s25  ;;  %v767_v33 = vrot.slane %v6185_v14, 5  ;;  %v1800_v45 = vrot.slane %v1798_v11, 6  ;;  %v1794_v48 = vor.u32 %v1793_v24, %v1790_v23  ;;  %v1803_v20 = vrot.slane %v1801_v26, 7  ;;  %v6265_v12 = vld [vmem:[%s9588_s0 + $0x1c] sm:$0xf] }
  0x1e   :  { %2016 = vrot.lane.b32.xlu0 %v1775_v60, %s5842_s13  ;;  %5386 = vmatpush3.bf16.msra.mxu0 %v5693_v19  ;;  %v6204_v29 = vrot.slane %v167_v27, 5  ;;  %v173_v51 = vrot.slane %v171_v31, 4  ;;  %v161_v47 = vshrl.u32 %v6047_v6, 16  ;;  %v536_v55 = vsel %vm5923_vm5, %v534_v35, %v535_v54  ;;  %v5697_v6 = vld [vmem:[%s9589_s1] sm:$0xff]   ;;  %v6297_v31 = vld [vmem:[%s9588_s0 + $0x18] sm:$0xf] }
  0x1f   :  { %5387 = vmatprep.subr.bf16.mxu0 %v5694_v32  ;;  %v1560_v56 = vrot.slane %v1558_v39, 4  ;;  %v768_v57 = vsel %vm5923_vm5, %v766_v25, %v767_v33  ;;  %v1796_v40 = vrot.slane %v1794_v48, 4  ;;  %v6230_v58 = vor.u32 %v1803_v20, %v1800_v45  ;;  %v1275_v39 = vld [vmem:[%s9588_s0 + $0x18] sm:$0xf]  ;;  %v6285_v21 = vld [vmem:[%s9588_s0 + $0x20] sm:$0xf] }
  0x20   :  { %v174_v54 = vor.u32 %v173_v51, %v6204_v29  ;;  %v177_v34 = vshll.u32 %v6213_v53, 16  ;;  %v763_v60 = vrot.slane %v761_v50, 4  ;;  %v163_v61 = vrot.slane %v161_v47, 4  ;;  %v1735_v32 = vld [vmem:[%s9588_s0 + $0x20] sm:$0xf] }
  0x21   :  { %1407 = vrot.lane.b32.xlu1 %v1337_v3, %s5840_s25  ;;  %v1562_v59 = vsel %vm5913_vm3, %v1560_v56, %v1561_v1  ;;  %v1805_v62 = vsel %vm6069_vm11, %v1796_v40, %v6230_v58  ;;  %v1339_v4 = vrot.slane %v1275_v39, 6  ;;  %v1786_v1 = vrot.slane %v6073_v30, 4  ;;  %v6274_v30 = vld [vmem:[%s9588_s0 + $0x18] sm:$0xf]  ;;  %v933_v0 = vld [vmem:[%s9588_s0 + $0x4] sm:$0xe] }
  0x22   :  { %375 = vrot.lane.b32.xlu0 %v150_v15, %s5840_s25  ;;  %5388 = vmatpush3.bf16.msra.mxu0 %v5695_v44  ;;  %v175_v2 = vrot.slane %v174_v54, 4  ;;  %v6246_v3 = vrot.slane %v177_v34, 5  ;;  %v765_v50 = vsel %vm5923_vm5, %v763_v60, %v764_v22  ;;  %v164_v8 = vor.u32 %v163_v61, %v6090_v43  ;;  %v1734_v43 = vld [vmem:[%s9588_s0 + $0x1c] sm:$0xf] }
  0x23   :  { %5389 = vmatprep.subr.bf16.mxu0 %v5696_v52  ;;  %v541_v10 = vrot.slane %v477_v7, 5  ;;  %v1341_v15 = vrot.slane %v1339_v4, 4  ;;  %v1342_v16 = vrot.slane %v6255_v46, 6  ;;  %v1567_v22 = vrot.slane %v6265_v12, 6  ;;  %v38_v12 = vld [vmem:[%s9588_s0 + $0x4] sm:$0xf] }
  0x24   :  { %v180_v13 = vsel %vm5992_vm8, %v175_v2, %v6246_v3  ;;  %v165_v19 = vrot.slane %v164_v8, 4  ;;  %v544_v11 = vrot.slane %v6274_v30, 5  ;;  %v1808_v24 = vshrl.u32 %v1734_v43, 16 }
  0x25   :  { %609 = vrot.lane.b32.xlu1 %v539_v17, %s5841_s30  ;;  %v1795_v17 = vsel %vm6069_vm11, %v1786_v1, %v1794_v48  ;;  %v543_v23 = vrot.slane %v541_v10, 4  ;;  %v1811_v26 = vshll.u32 %v1734_v43, 16  ;;  %v1343_v27 = vsel %vm5913_vm3, %v1341_v15, %v1342_v16  ;;  %v934_v1 = vld [vmem:[%s9588_s0 + $0x8] sm:$0xf]  ;;  %v6388_v15 = vld [vmem:[%s9588_s0 + $0x24] sm:$0xf] }
  0x26   :  { %1405 = vrot.lane.b32.xlu0 %v1334_v36, %s5840_s25  ;;  %5390 = vmatpush3.bf16.msra.mxu0 %v5697_v6  ;;  %v95_v36 = vld [vmem:[%s9588_s0 + $0x1c] sm:$0xf]  ;;  %v170_v35 = vsel %vm5992_vm8, %v165_v19, %v6204_v29  ;;  %v1569_v25 = vrot.slane %v1567_v22, 4  ;;  %v1570_v45 = vrot.slane %v6285_v21, 6  ;;  %v770_v48 = vrot.slane %v6297_v31, 5 }
  0x27   :  { %v545_v44 = vsel %vm5923_vm5, %v543_v23, %v544_v11  ;;  %v1810_v20 = vrot.slane %v1808_v24, 6  ;;  %v1813_v51 = vrot.slane %v1811_v26, 7  ;;  %v6321_v29 = vld [vmem:[%s9588_s0 + $0x1c] sm:$0xf]  ;;  %v1818_v49 = vshrl.u32 %v1735_v32, 16 }
  0x28   :  { %v187_v52 = vshll.u32 %v95_v36, 16  ;;  %v191_v47 = vshrl.u32 %v95_v36, 16  ;;  %v6332_v6 = vld [vmem:[%s9588_s0 + $0x20] sm:$0xf]  ;;  %v1571_v40 = vsel %vm5913_vm3, %v1569_v25, %v1570_v45  ;;  %v773_v54 = vrot.slane %v6321_v29, 5 }
  0x29   :  { %1635 = vrot.lane.b32.xlu1 %v1565_v37, %s5841_s30  ;;  %v1338_v37 = vrot.slane %v1336_v38, 4  ;;  %v1821_v38 = vshll.u32 %v1735_v32, 16  ;;  %v6342_v34 = vor.u32 %v1813_v51, %v1810_v20  ;;  %v1820_v41 = vrot.slane %v1818_v49, 6  ;;  %v6395_v19 = vld [vmem:[%s9588_s0 + $0x1c] sm:$0xf] }
  0x2a   :  { %607 = vrot.lane.b32.xlu0 %v536_v55, %s5841_s30  ;;  %v181_v55 = vshrl.u32 %v6213_v53, 16  ;;  %v772_v53 = vrot.slane %v770_v48, 4  ;;  %v6344_v39 = vrot.slane %v187_v52, 5  ;;  %v1566_v60 = vrot.slane %v1564_v18, 4  ;;  %v935_v26 = vld [vmem:[%s9588_s0 + $0xc] sm:$0xf] }
  0x2b   :  { %v1340_v56 = vsel %vm5913_vm3, %v1338_v37, %v1339_v4  ;;  %v197_v2 = vshll.u32 %v6332_v6, 16  ;;  %v6357_v4 = vld [vmem:[%s9588_s0 + $0x20] sm:$0xf]  ;;  %v1816_v7 = vrot.slane %v6342_v34, 4  ;;  %vm959_vm12 = vsmask.f32 2304 }
  0x2c   :  { %v774_v18 = vsel %vm5923_vm5, %v772_v53, %v773_v54  ;;  %v1568_v8 = vsel %vm5913_vm3, %v1566_v60, %v1567_v22  ;;  %v1345_v43 = vrot.slane %v6357_v4, 6  ;;  %v966_v22 = vshll.u32 %v933_v0, 16  ;;  %v6415_v49 = vld [vmem:[%s9588_s0 + $0x20] sm:$0xf]  ;;  %v6574_v29 = vld [vmem:[%s9588_s0 + $0x24] sm:$0xf] }
  0x2d   :  { %838 = vrot.lane.b32.xlu1 %v768_v57, %s5842_s13  ;;  %v540_v57 = vrot.slane %v538_v63, 4  ;;  %v1823_v63 = vrot.slane %v1821_v38, 7  ;;  %v972_v23 = vshrl.u32 %v934_v1, 16  ;;  %v975_v24 = vshll.u32 %v934_v1, 16 }
  0x2e   :  { %1633 = vrot.lane.b32.xlu0 %v1562_v59, %s5841_s30  ;;  %v193_v59 = vrot.slane %v191_v47, 4  ;;  %vm62_vm13 = vcmask 257024   ;;  %vm960_vm14 = vsmask.f32 6416  ;;  %v968_v37 = vrot.slane %v966_v22, 6 }
  0x2f   :  { %v542_v61 = vsel %vm5923_vm5, %v540_v57, %v541_v10  ;;  %v6368_v14 = vor.u32 %v1823_v63, %v1820_v41  ;;  %v37_v10 = vld [vmem:[%s9588_s0] sm:$0xf]  ;;  %64 = vst.msk [vmem:[#allocation2 + $0xc] sm:$0xf] %vm62_vm13, %v38_v12  ;;  %v974_v25 = vrot.slane %v972_v23, 5  ;;  %v1348_v38 = vrot.slane %v6388_v15, 6  ;;  %vm6435_vm15 = vmor %vm959_vm12, %vm960_vm14 }
  0x30   :  { %63 = vst.msk [vmem:[#allocation2] sm:$0xf] %vm62_vm13, %v37_v10  ;;  %v982_v47 = vshrl.u32 %v935_v26, 16  ;;  %v6446_v41 = vld [vmem:[%s9588_s0 + $0x28] sm:$0xf]  ;;  %v1344_v12 = vrot.slane %v1342_v16, 4 }
  0x31   :  { %2022 = vrot.lane.b32.xlu1 %v1805_v62, %s5842_s13  ;;  %v769_v62 = vrot.slane %v767_v33, 4  ;;  %v194_v33 = vor.u32 %v193_v59, %v6344_v39  ;;  %v6451_v63 = vld [vmem:[%s9588_s0 + $0x20] sm:$0xf]  ;;  %v97_v22 = vld [vmem:[%s9588_s0 + $0x24] sm:$0xf]  ;;  %vm5844_vm0 = vmmov 0  }
  0x32   :  { %836 = vrot.lane.b32.xlu0 %v765_v50, %s5842_s13  ;;  %v183_v50 = vrot.slane %v181_v55, 4  ;;  %v547_v55 = vrot.slane %v6395_v19, 5  ;;  %v984_v60 = vrot.slane %v982_v47, 5  ;;  %v6554_v19 = vld [vmem:[%s9588_s0 + $0x28] sm:$0xf]  ;;  %vm2168_vm1 = vcmask 1040384  }
  0x33   :  { %v195_v32 = vrot.slane %v194_v33, 4  ;;  %v771_v20 = vsel %vm5923_vm5, %v769_v62, %v770_v48  ;;  %v1347_v48 = vrot.slane %v1345_v43, 4  ;;  %v550_v62 = vrot.slane %v6415_v49, 5 }
  0x34   :  { %v184_v51 = vor.u32 %v183_v50, %v6246_v3  ;;  %v549_v33 = vrot.slane %v547_v55, 4  ;;  %vm2169_vm4 = vcmask 1044484   ;;  %vm2688_vm7 = vcmask 261120  }
  0x35   :  { %381 = vrot.lane.b32.xlu1 %v180_v13, %s5840_s25  ;;  %v6383_v13 = vrot.slane %v197_v2, 5  ;;  %vm6668_vm6 = vmor %vm2168_vm1, %vm2169_vm4  ;;  %vm446_vm9 = vcmask 519424   ;;  %vm678_vm10 = vcmask 781824   ;;  %vm907_vm12 = vcmask 1044224  }
  0x36   :  { %2020 = vrot.lane.b32.xlu0 %v1795_v17, %s5842_s13  ;;  %v963_v17 = vshrl.u32 %v933_v0, 16 }
  0x37   :  { %v200_v3 = vsel %vm5992_vm8, %v195_v32, %v6383_v13 }
  0x38   :  { %v965_v36 = vrot.slane %v963_v17, 5  ;;  %v6476_v17 = vld [vmem:[%s9588_s0 + $0x24] sm:$0xf] }
  0x39   :  { %1411 = vrot.lane.b32.xlu1 %v1343_v27, %s5840_s25  ;;  %v1825_v27 = vsel %vm6069_vm11, %v1816_v7, %v6368_v14 }
  0x3a   :  { %379 = vrot.lane.b32.xlu0 %v170_v35, %s5840_s25  ;;  %v1806_v35 = vrot.slane %v6230_v58, 4  ;;  %v6422_v58 = vld [vmem:[%s9588_s0 + $0x24] sm:$0xf]  ;;  %v969_v31 = vor.u32 %v968_v37, %v965_v36 }
  0x3b   :  { %v1573_v1 = vrot.slane %v6422_v58, 6 }
  0x3c   :  { %v1815_v53 = vsel %vm6069_vm11, %v1806_v35, %v6342_v34  ;;  %v970_v59 = vrot.slane %v969_v31, 4  ;;  %v551_v35 = vsel %vm5923_vm5, %v549_v33, %v550_v62  ;;  %v779_v31 = vrot.slane %v6476_v17, 5 }
  0x3d   :  { %613 = vrot.lane.b32.xlu1 %v545_v44, %s5841_s30  ;;  %v977_v44 = vrot.slane %v975_v24, 6  ;;  %v1576_v24 = vrot.slane %v6446_v41, 6  ;;  %v1575_v37 = vrot.slane %v1573_v1, 4 }
  0x3e   :  { %1409 = vrot.lane.b32.xlu0 %v1340_v56, %s5840_s25  ;;  %v1736_v56 = vld [vmem:[%s9588_s0 + $0x24] sm:$0xf] }
  0x3f   :  { %v978_v52 = vor.u32 %v977_v44, %v974_v25  ;;  %v1828_v34 = vshrl.u32 %v1736_v56, 16  ;;  %v1831_v50 = vshll.u32 %v1736_v56, 16  ;;  %v207_v25 = vshll.u32 %v97_v22, 16  ;;  %v936_v56 = vld [vmem:[%s9588_s0 + $0x10] sm:$0xf] }
  0x40   :  { %v211_v44 = vshrl.u32 %v97_v22, 16  ;;  %v1577_v30 = vsel %vm5913_vm3, %v1575_v37, %v1576_v24 }
  0x41   :  { %1639 = vrot.lane.b32.xlu1 %v1571_v40, %s5841_s30  ;;  %v985_v40 = vshll.u32 %v935_v26, 16  ;;  %v980_v2 = vrot.slane %v978_v52, 4  ;;  %v979_v0 = vsel %vm6435_vm15, %v970_v59, %v978_v52  ;;  %v776_v26 = vrot.slane %v6451_v63, 5  ;;  %v39_v52 = vld [vmem:[%s9588_s0 + $0x8] sm:$0xf] }
  0x42   :  { %611 = vrot.lane.b32.xlu0 %v542_v61, %s5841_s30  ;;  %v185_v61 = vrot.slane %v184_v51, 4  ;;  %1245 = vst.msk [vmem:[#allocation2 + $0x4] sm:$0xf] %vm62_vm13, %v979_v0  ;;  %v1830_v16 = vrot.slane %v1828_v34, 6  ;;  %v546_v51 = vrot.slane %v544_v11, 4 }
  0x43   :  { %v987_v7 = vrot.slane %v985_v40, 6  ;;  %v778_v58 = vrot.slane %v776_v26, 4  ;;  %65 = vst.msk [vmem:[#allocation2 + $0x18] sm:$0xf] %vm62_vm13, %v39_v52  ;;  %v6523_v11 = vld [vmem:[%s9588_s0 + $0x28] sm:$0xf] }
  0x44   :  { %v190_v23 = vsel %vm5992_vm8, %v185_v61, %v6344_v39  ;;  %v40_v39 = vld [vmem:[%s9588_s0 + $0xc] sm:$0xf]  ;;  %v201_v40 = vshrl.u32 %v6332_v6, 16  ;;  %v937_v59 = vld [vmem:[%s9588_s0 + $0x14] sm:$0xf] }
  0x45   :  { %842 = vrot.lane.b32.xlu1 %v774_v18, %s5842_s13  ;;  %v1349_v18 = vsel %vm5913_vm3, %v1347_v48, %v1348_v38  ;;  %v6468_v10 = vor.u32 %v987_v7, %v984_v60  ;;  %66 = vst.msk [vmem:[#allocation2 + $0x24] sm:$0xf] %vm62_vm13, %v40_v39  ;;  %v213_v48 = vrot.slane %v211_v44, 4  ;;  %v548_v60 = vsel %vm5923_vm5, %v546_v51, %v547_v55  ;;  %v6601_v63 = vld [vmem:[%s9588_s0 + $0x28] sm:$0xf] }
  0x46   :  { %1637 = vrot.lane.b32.xlu0 %v1568_v8, %s5841_s30  ;;  %v1737_v8 = vld [vmem:[%s9588_s0 + $0x28] sm:$0xf]  ;;  %v780_v61 = vsel %vm5923_vm5, %v778_v58, %v779_v31  ;;  %v995_v55 = vshll.u32 %v936_v56, 16  ;;  %v1002_v34 = vshrl.u32 %v937_v59, 16  ;;  %v1826_v44 = vrot.slane %v6368_v14, 4 }
  0x47   :  { %v989_v46 = vsel %vm6435_vm15, %v980_v2, %v6468_v10  ;;  %v1838_v32 = vshrl.u32 %v1737_v8, 16  ;;  %v1841_v36 = vshll.u32 %v1737_v8, 16  ;;  %v992_v2 = vshrl.u32 %v936_v56, 16  ;;  %v2116_v56 = vld [vmem:[%s9588_s0 + $0x8] sm:$0x8] }
  0x48   :  { %1246 = vst.msk [vmem:[#allocation2 + $0x10] sm:$0xf] %vm62_vm13, %v989_v46  ;;  %v775_v8 = vrot.slane %v773_v54, 4  ;;  %v1004_v22 = vrot.slane %v1002_v34, 5  ;;  %v990_v37 = vrot.slane %v6468_v10, 4  ;;  %v9599_v51 = vmov 0.0  }
  0x49   :  { %2026 = vrot.lane.b32.xlu1 %v1825_v27, %s5842_s13  ;;  %v1833_v27 = vrot.slane %v1831_v50, 7  ;;  %v1840_v4 = vrot.slane %v1838_v32, 6  ;;  %v1005_v50 = vshll.u32 %v937_v59, 16  ;;  %v994_v33 = vrot.slane %v992_v2, 5  ;;  %5568 = vmatprep.subr.bf16.mxu1 %v9599_v51  ;;  %v2117_v59 = vld [vmem:[%s9588_s0 + $0xc] sm:$0xf] }
  0x4a   :  { %840 = vrot.lane.b32.xlu0 %v771_v20, %s5842_s13  ;;  %v1346_v20 = vsel %vm5913_vm3, %v1344_v12, %v1345_v43  ;;  %v6525_v43 = vrot.slane %v207_v25, 5  ;;  %v997_v12 = vrot.slane %v995_v55, 6  ;;  %v777_v25 = vsel %vm5923_vm5, %v775_v8, %v776_v26  ;;  %v5702_v26 = vld [vmem:[%s9589_s1 + $0x80] sm:$0xff]   ;;  %5572 = vmatprep.mubr.msk.bf16.mxu1 %vm5844_vm0, %v9599_v51  ;;  %v6653_v2 = vld [vmem:[%s9588_s0 + $0x10] sm:$0xf] }
  0x4b   :  { %v6513_v47 = vor.u32 %v1833_v27, %v1830_v16  ;;  %v1351_v16 = vrot.slane %v6554_v19, 6  ;;  %v5701_v27 = vld [vmem:[%s9589_s1 + $0x88] sm:$0xff]   ;;  %v553_v10 = vrot.slane %v6574_v29, 5  ;;  %v939_v19 = vld [vmem:[%s9588_s0 + $0x1c] sm:$0xf] }
  0x4c   :  { %v214_v7 = vor.u32 %v213_v48, %v6525_v43  ;;  %v998_v54 = vor.u32 %v997_v12, %v994_v33  ;;  %5569 = vmatpush3.bf16.msra.mxu1 %v5701_v27 }
  0x4d   :  { %385 = vrot.lane.b32.xlu1 %v200_v3, %s5840_s25  ;;  %v1843_v3 = vrot.slane %v1841_v36, 7  ;;  %v1836_v6 = vrot.slane %v6513_v47, 4  ;;  %v1353_v52 = vrot.slane %v1351_v16, 4  ;;  %5570 = vmatprep.subr.bf16.mxu1 %v9599_v51  ;;  %v555_v15 = vrot.slane %v553_v10, 4 }
  0x4e   :  { %2024 = vrot.lane.b32.xlu0 %v1815_v53, %s5842_s13  ;;  %v1572_v53 = vrot.slane %v1570_v45, 4  ;;  %v217_v45 = vshll.u32 %v6523_v11, 16  ;;  %v215_v32 = vrot.slane %v214_v7, 4  ;;  %v999_v14 = vsel %vm6435_vm15, %v990_v37, %v998_v54 }
  0x4f   :  { %v6547_v21 = vor.u32 %v1843_v3, %v1840_v4  ;;  %v6618_v3 = vld [vmem:[%s9588_s0 + $0x30] sm:$0xf]  ;;  %1247 = vst.msk [vmem:[#allocation2 + $0x1c] sm:$0xf] %vm62_vm13, %v999_v14 }
  0x50   :  { %v1574_v0 = vsel %vm5913_vm3, %v1572_v53, %v1573_v1  ;;  %v6562_v46 = vrot.slane %v217_v45, 5  ;;  %v6646_v45 = vld [vmem:[%s9588_s0 + $0x28] sm:$0xf]  ;;  %5571 = vmatpush3.bf16.msra.mxu1 %v5702_v26  ;;  %v1582_v12 = vrot.slane %v6618_v3, 6 }
  0x51   :  { %1415 = vrot.lane.b32.xlu1 %v1349_v18, %s5840_s25  ;;  %v203_v18 = vrot.slane %v201_v40, 4  ;;  %v1845_v1 = vsel %vm6069_vm11, %v1836_v6, %v6547_v21  ;;  %v556_v6 = vrot.slane %v6601_v63, 5  ;;  %v782_v27 = vrot.slane %v6646_v45, 5  ;;  %v44_v45 = vld [vmem:[%s9588_s0 + $0x1c] sm:$0xf] }
  0x52   :  { %383 = vrot.lane.b32.xlu0 %v190_v23, %s5840_s25  ;;  %v1007_v23 = vrot.slane %v1005_v50, 6  ;;  %v220_v58 = vsel %vm5992_vm8, %v215_v32, %v6562_v46  ;;  %v99_v50 = vld [vmem:[%s9588_s0 + $0x2c] sm:$0xf]  ;;  %70 = vst.msk [vmem:[#allocation2 + $0x54] sm:$0xf] %vm62_vm13, %v44_v45 }
  0x53   :  { %v204_v39 = vor.u32 %v203_v18, %v6383_v13  ;;  %v1000_v13 = vrot.slane %v998_v54, 4  ;;  %v2173_v18 = vrot.slane %v2117_v59, 7  ;;  %v557_v37 = vsel %vm5923_vm5, %v555_v15, %v556_v6 }
  0x54   :  { %v6576_v36 = vor.u32 %v1007_v23, %v1004_v22  ;;  %v6682_v22 = vld [vmem:[%s9588_s0 + $0x2c] sm:$0xf]  ;;  %v2176_v23 = vrot.slane %v6653_v2, 7  ;;  %v1022_v15 = vshrl.u32 %v939_v19, 16 }
  0x55   :  { %617 = vrot.lane.b32.xlu1 %v551_v35, %s5841_s30  ;;  %v6583_v35 = vld [vmem:[%s9588_s0 + $0x2c] sm:$0xf]  ;;  %v205_v40 = vrot.slane %v204_v39, 4  ;;  %v2175_v54 = vrot.slane %v2173_v18, 4  ;;  %v221_v39 = vshrl.u32 %v6523_v11, 16 }
  0x56   :  { %1413 = vrot.lane.b32.xlu0 %v1346_v20, %s5840_s25  ;;  %v6594_v20 = vld [vmem:[%s9588_s0 + $0x2c] sm:$0xf]  ;;  %v1354_v4 = vrot.slane %v6583_v35, 6  ;;  %v1009_v48 = vsel %vm6435_vm15, %v1000_v13, %v6576_v36  ;;  %v1010_v17 = vrot.slane %v6576_v36, 4 }
  0x57   :  { %v1579_v53 = vrot.slane %v6594_v20, 6  ;;  %1248 = vst.msk [vmem:[#allocation2 + $0x28] sm:$0xf] %vm62_vm13, %v1009_v48  ;;  %v210_v33 = vsel %vm5992_vm8, %v205_v40, %v6525_v43  ;;  %v42_v43 = vld [vmem:[%s9588_s0 + $0x14] sm:$0xf]  ;;  %v2177_v11 = vsel %vm6668_vm6, %v2175_v54, %v2176_v23  ;;  %v785_v48 = vrot.slane %v6682_v22, 5 }
  0x58   :  { %v1355_v7 = vsel %vm5913_vm3, %v1353_v52, %v1354_v4  ;;  %68 = vst.msk [vmem:[#allocation2 + $0x3c] sm:$0xf] %vm62_vm13, %v42_v43  ;;  %2273 = vst.msk [vmem:[#allocation2 + $0x14] sm:$0xf] %vm62_vm13, %v2177_v11  ;;  %v223_v54 = vrot.slane %v221_v39, 4 }
  0x59   :  { %1643 = vrot.lane.b32.xlu1 %v1577_v30, %s5841_s30  ;;  %v1738_v30 = vld [vmem:[%s9588_s0 + $0x2c] sm:$0xf]  ;;  %v1581_v8 = vrot.slane %v1579_v53, 4  ;;  %v6768_v39 = vld [vmem:[%s9588_s0 + $0x34] sm:$0xf] }
  0x5a   :  { %615 = vrot.lane.b32.xlu0 %v548_v60, %s5841_s30  ;;  %v1835_v60 = vsel %vm6069_vm11, %v1826_v44, %v6513_v47  ;;  %v5192_v47 = vrot.slane %v2116_v56, 11  ;;  %v1848_v55 = vshrl.u32 %v1738_v30, 16  ;;  %v1851_v34 = vshll.u32 %v1738_v30, 16  ;;  %v938_v56 = vld [vmem:[%s9588_s0 + $0x18] sm:$0xf] }
  0x5b   :  { %v231_v44 = vshrl.u32 %v99_v50, 16  ;;  %v552_v30 = vrot.slane %v550_v62, 4  ;;  %v1583_v49 = vsel %vm5913_vm3, %v1581_v8, %v1582_v12  ;;  %v784_v62 = vrot.slane %v782_v27, 4 }
  0x5c   :  { %v2174_v32 = vsel %vm6668_vm6, %v5192_v47, %v2173_v18  ;;  %v1850_v13 = vrot.slane %v1848_v55, 6  ;;  %v1853_v14 = vrot.slane %v1851_v34, 7  ;;  %v1012_v40 = vshrl.u32 %v938_v56, 16  ;;  %v6746_v18 = vld [vmem:[%s9588_s0 + $0x30] sm:$0xf] }
  0x5d   :  { %846 = vrot.lane.b32.xlu1 %v780_v61, %s5842_s13  ;;  %v1350_v61 = vrot.slane %v1348_v38, 4  ;;  %v1739_v38 = vld [vmem:[%s9588_s0 + $0x30] sm:$0xf]  ;;  %2272 = vst.msk [vmem:[#allocation2 + $0x8] sm:$0xf] %vm62_vm13, %v2174_v32  ;;  %v1025_v34 = vshll.u32 %v939_v19, 16  ;;  %v786_v32 = vsel %vm5923_vm5, %v784_v62, %v785_v48  ;;  %v224_v11 = vor.u32 %v223_v54, %v6562_v46 }
  0x5e   :  { %1641 = vrot.lane.b32.xlu0 %v1574_v0, %s5841_s30  ;;  %v1861_v26 = vshll.u32 %v1739_v38, 16  ;;  %v1014_v55 = vrot.slane %v1012_v40, 5  ;;  %v1024_v8 = vrot.slane %v1022_v15, 5  ;;  %v1846_v62 = vrot.slane %v6547_v21, 4  ;;  %v1740_v15 = vld [vmem:[%s9588_s0 + $0x34] sm:$0xf] }
  0x5f   :  { %v1352_v52 = vsel %vm5913_vm3, %v1350_v61, %v1351_v16  ;;  %v1015_v61 = vshll.u32 %v938_v56, 16  ;;  %v1027_v29 = vrot.slane %v1025_v34, 6  ;;  %v6804_v56 = vld [vmem:[%s9588_s0 + $0x18] sm:$0xf]  ;;  %v1868_v54 = vshrl.u32 %v1740_v15, 16 }
  0x60   :  { %v1863_v47 = vrot.slane %v1861_v26, 7 }
  0x61   :  { %2030 = vrot.lane.b32.xlu1 %v1845_v1, %s5842_s13  ;;  %v1858_v1 = vshrl.u32 %v1739_v38, 16  ;;  %v6731_v38 = vor.u32 %v1853_v14, %v1850_v13  ;;  %v6762_v13 = vor.u32 %v1027_v29, %v1024_v8  ;;  %v1357_v14 = vrot.slane %v6746_v18, 6 }
  0x62   :  { %844 = vrot.lane.b32.xlu0 %v777_v25, %s5842_s13  ;;  %v227_v25 = vshll.u32 %v99_v50, 16  ;;  %v554_v50 = vsel %vm5923_vm5, %v552_v30, %v553_v10  ;;  %v2119_v30 = vld [vmem:[%s9588_s0 + $0x14] sm:$0xf]  ;;  %v2182_v8 = vrot.slane %v6804_v56, 7  ;;  %v1871_v29 = vshll.u32 %v1740_v15, 16 }
  0x63   :  { %v1860_v16 = vrot.slane %v1858_v1, 6  ;;  %v1578_v1 = vrot.slane %v1576_v24, 4  ;;  %v1856_v41 = vrot.slane %v6731_v38, 4  ;;  %v1359_v21 = vrot.slane %v1357_v14, 4 }
  0x64   :  { %v6729_v59 = vrot.slane %v227_v25, 5  ;;  %v781_v25 = vrot.slane %v779_v31, 4 }
  0x65   :  { %389 = vrot.lane.b32.xlu1 %v220_v58, %s5840_s25  ;;  %v41_v58 = vld [vmem:[%s9588_s0 + $0x10] sm:$0xf]  ;;  %v6760_v24 = vor.u32 %v1863_v47, %v1860_v16  ;;  %v1580_v31 = vsel %vm5913_vm3, %v1578_v1, %v1579_v53  ;;  %v6817_v16 = vld [vmem:[%s9588_s0 + $0x34] sm:$0xf]  ;;  %v2178_v47 = vrot.slane %v2176_v23, 4  ;;  %v6856_v23 = vrot.slane %v1354_v4, 4 }
  0x66   :  { %2028 = vrot.lane.b32.xlu0 %v1835_v60, %s5842_s13  ;;  %67 = vst.msk [vmem:[#allocation2 + $0x30] sm:$0xf] %vm62_vm13, %v41_v58  ;;  %v233_v60 = vrot.slane %v231_v44, 4  ;;  %v5703_v44 = vld [vmem:[#allocation2 + $0x8] ss:$12 sps:$4 sm:$0xff]   ;;  %v783_v19 = vsel %vm5923_vm5, %v781_v25, %v782_v27  ;;  %v1855_v25 = vsel %vm6069_vm11, %v1846_v62, %v6731_v38  ;;  %v1873_v62 = vrot.slane %v1871_v29, 7 }
  0x67   :  { %v6780_v58 = vld [vmem:[%s9588_s0 + $0x2c] sm:$0xf]  ;;  %5573 = vmatmul.mubr.msk.bf16.vlgmr.msra.gmra.mxu1 %vm2688_vm7, %v5703_v44  ;;  %v558_v44 = vrot.slane %v556_v6, 4  ;;  %v940_v38 = vld [vmem:[%s9588_s0 + $0x20] sm:$0xf] }
  0x68   :  { %v234_v10 = vor.u32 %v233_v60, %v6729_v59  ;;  %5576 = vmatprep.mubr.msk.bf16.mxu1 %vm5844_vm0, %v9599_v51  ;;  %v1360_v60 = vrot.slane %v6768_v39, 6  ;;  %v559_v34 = vrot.slane %v6780_v58, 5  ;;  %v1035_v15 = vshll.u32 %v940_v38, 16 }
  0x69   :  { %1419 = vrot.lane.b32.xlu1 %v1355_v7, %s5840_s25  ;;  %v6736_v7 = vld [vmem:[%s9588_s0 + $0x30] sm:$0xf]  ;;  %v1030_v58 = vrot.slane %v6762_v13, 4 }
  0x6a   :  { %387 = vrot.lane.b32.xlu0 %v210_v33, %s5840_s25  ;;  %v1017_v33 = vrot.slane %v1015_v61, 6  ;;  %v237_v43 = vshll.u32 %v6736_v7, 16  ;;  %v235_v36 = vrot.slane %v234_v10, 4  ;;  %v241_v40 = vshrl.u32 %v6736_v7, 16  ;;  %v6832_v61 = vld [vmem:[%s9588_s0 + $0x38] sm:$0xf] }
  0x6b   :  { %v101_v10 = vld [vmem:[%s9588_s0 + $0x34] sm:$0xf]  ;;  %v561_v6 = vrot.slane %v559_v34, 4 }
  0x6c   :  { %v6789_v20 = vrot.slane %v237_v43, 5 }
  0x6d   :  { %621 = vrot.lane.b32.xlu1 %v557_v37, %s5841_s30  ;;  %v1018_v37 = vor.u32 %v1017_v33, %v1014_v55  ;;  %v6841_v55 = vrot.slane %v224_v11, 4  ;;  %v2179_v33 = vrot.slane %v2119_v30, 7  ;;  %v247_v30 = vshll.u32 %v101_v10, 16 }
  0x6e   :  { %1417 = vrot.lane.b32.xlu0 %v1352_v52, %s5840_s25  ;;  %v6785_v52 = vld [vmem:[%s9588_s0 + $0x30] sm:$0xf]  ;;  %v240_v2 = vsel %vm5992_vm8, %v235_v36, %v6789_v20  ;;  %v941_v36 = vld [vmem:[%s9588_s0 + $0x24] sm:$0xf] }
  0x6f   :  { %v1020_v26 = vrot.slane %v1018_v37, 4  ;;  %v1019_v53 = vsel %vm6435_vm15, %v1010_v17, %v1018_v37  ;;  %v562_v1 = vrot.slane %v6785_v52, 5  ;;  %v2180_v43 = vsel %vm6668_vm6, %v2178_v47, %v2179_v33  ;;  %v1741_v17 = vld [vmem:[%s9588_s0 + $0x38] sm:$0xf]  ;;  %v7098_v52 = vld [vmem:[%s9588_s0 + $0x3c] sm:$0xf] }
  0x70   :  { %1249 = vst.msk [vmem:[#allocation2 + $0x34] sm:$0xf] %vm62_vm13, %v1019_v53  ;;  %v2181_v37 = vrot.slane %v2179_v33, 4  ;;  %2274 = vst.msk [vmem:[#allocation2 + $0x20] sm:$0xf] %vm62_vm13, %v2180_v43  ;;  %v230_v63 = vsel %vm5992_vm8, %v6841_v55, %v6729_v59  ;;  %v6904_v59 = vrot.slane %v1582_v12, 4 }
  0x71   :  { %1647 = vrot.lane.b32.xlu1 %v1583_v49, %s5841_s30  ;;  %v1029_v46 = vsel %vm6435_vm15, %v1020_v26, %v6762_v13  ;;  %v1865_v49 = vsel %vm6069_vm11, %v1856_v41, %v6760_v24  ;;  %v1361_v41 = vsel %vm5913_vm3, %v1359_v21, %v1360_v60  ;;  %v1585_v26 = vrot.slane %v6817_v16, 6  ;;  %v6982_v13 = vld [vmem:[%s9588_s0 + $0x3c] sm:$0xf]  ;;  %v7024_v16 = vld [vmem:[%s9588_s0 + $0x20] sm:$0xf] }
  0x72   :  { %619 = vrot.lane.b32.xlu0 %v554_v50, %s5841_s30  ;;  %1250 = vst.msk [vmem:[#allocation2 + $0x40] sm:$0xf] %vm62_vm13, %v1029_v46  ;;  %v6847_v50 = vld [vmem:[%s9588_s0 + $0x30] sm:$0xf]  ;;  %v2183_v11 = vsel %vm6668_vm6, %v2181_v37, %v2182_v8  ;;  %v6909_v46 = vld [vmem:[%s9588_s0 + $0x34] sm:$0xf]  ;;  %v563_v22 = vsel %vm5923_vm5, %v561_v6, %v562_v1 }
  0x73   :  { %v788_v53 = vrot.slane %v6847_v50, 5  ;;  %2275 = vst.msk [vmem:[#allocation2 + $0x2c] sm:$0xf] %vm62_vm13, %v2183_v11  ;;  %v1878_v45 = vshrl.u32 %v1741_v17, 16  ;;  %v1587_v12 = vrot.slane %v1585_v26, 4  ;;  %v1881_v21 = vshll.u32 %v1741_v17, 16 }
  0x74   :  { %v1042_v47 = vshrl.u32 %v941_v36, 16  ;;  %v791_v55 = vrot.slane %v6909_v46, 5  ;;  %v6919_v33 = vrot.slane %v785_v48, 4  ;;  %v1037_v37 = vrot.slane %v1035_v15, 6  ;;  %v6939_v17 = vld [vmem:[%s9588_s0 + $0x38] sm:$0xf] }
  0x75   :  { %850 = vrot.lane.b32.xlu1 %v786_v32, %s5842_s13  ;;  %v43_v32 = vld [vmem:[%s9588_s0 + $0x18] sm:$0xf]  ;;  %v1883_v11 = vrot.slane %v1881_v21, 7  ;;  %v243_v6 = vrot.slane %v241_v40, 4  ;;  %v7150_v46 = vld [vmem:[%s9588_s0 + $0x40] sm:$0xf] }
  0x76   :  { %1645 = vrot.lane.b32.xlu0 %v1580_v31, %s5841_s30  ;;  %69 = vst.msk [vmem:[#allocation2 + $0x48] sm:$0xf] %vm62_vm13, %v43_v32  ;;  %v1588_v31 = vrot.slane %v6832_v61, 6 }
  0x77   :  { %v1402_v27 = vpop.permute.xlu1 %1401  ;;  %v244_v21 = vor.u32 %v243_v6, %v6789_v20  ;;  %v45_v20 = vld [vmem:[%s9588_s0 + $0x20] sm:$0xf]  ;;  %v2184_v6 = vrot.slane %v2182_v8, 4  ;;  %v7082_v8 = vrot.slane %v562_v1, 4 }
  0x78   :  { %1476 = vst.msk [vmem:[#allocation2 + $0x4] sm:$0xf] %vm446_vm9, %v1402_v27  ;;  %v604_v35 = vpop.permute.xlu0 %603  ;;  %v1032_v27 = vshrl.u32 %v940_v38, 16 }
  0x79   :  { %2034 = vrot.lane.b32.xlu1 %v1865_v49, %s5842_s13  ;;  %v1870_v49 = vrot.slane %v1868_v54, 6  ;;  %v1045_v54 = vshll.u32 %v941_v36, 16  ;;  %71 = vst.msk [vmem:[#allocation2 + $0x60] sm:$0xf] %vm62_vm13, %v45_v20 }
  0x7a   :  { %848 = vrot.lane.b32.xlu0 %v783_v19, %s5842_s13  ;;  %v251_v19 = vshrl.u32 %v101_v10, 16  ;;  %v1034_v32 = vrot.slane %v1032_v27, 5  ;;  %v6927_v10 = vrot.slane %v247_v30, 5  ;;  %v5706_v7 = vld [vmem:[#allocation2 + $0x20] ss:$12 sps:$4 sm:$0xff]   ;;  %v1866_v27 = vrot.slane %v6760_v24, 4 }
  0x7b   :  { %v1404_v4 = vpop.permute.xlu1 %1403  ;;  %v6934_v48 = vor.u32 %v1873_v62, %v1870_v49  ;;  %v790_v62 = vrot.slane %v788_v53, 4  ;;  %5577 = vmatmul.mubr.msk.bf16.gmra.mxu1 %vm2688_vm7, %v5706_v7  ;;  %v6992_v24 = vld [vmem:[%s9588_s0 + $0x38] sm:$0xf] }
  0x7c   :  { %1477 = vst.msk [vmem:[#allocation2 + $0x10] sm:$0xf] %vm446_vm9, %v1404_v4  ;;  %v253_v43 = vrot.slane %v251_v19, 4  ;;  %v1044_v4 = vrot.slane %v1042_v47, 5  ;;  %v1038_v30 = vor.u32 %v1037_v37, %v1034_v32  ;;  %v1358_v19 = vsel %vm5913_vm3, %v6856_v23, %v1357_v14  ;;  %5580 = vmatprep.mubr.msk.bf16.mxu1 %vm5844_vm0, %v9599_v51  ;;  %v2121_v37 = vld [vmem:[%s9588_s0 + $0x1c] sm:$0xf] }
  0x7d   :  { %393 = vrot.lane.b32.xlu1 %v240_v2, %s5840_s25  ;;  %v6924_v2 = vld [vmem:[%s9588_s0 + $0x38] sm:$0xf]  ;;  %v1363_v14 = vrot.slane %v6939_v17, 6  ;;  %v568_v39 = vrot.slane %v6992_v24, 5  ;;  %v7078_v56 = vsel %vm6069_vm11, %v1866_v27, %v6934_v48  ;;  %v1743_v27 = vld [vmem:[%s9588_s0 + $0x40] sm:$0xf] }
  0x7e   :  { %2032 = vrot.lane.b32.xlu0 %v1855_v25, %s5842_s13  ;;  %v1880_v25 = vrot.slane %v1878_v45, 6  ;;  %v257_v36 = vshll.u32 %v6924_v2, 16  ;;  %v254_v18 = vor.u32 %v253_v43, %v6927_v10  ;;  %v1040_v23 = vrot.slane %v1038_v30, 4 }
  0x7f   :  { %v606_v3 = vpop.permute.xlu1 %605  ;;  %v1876_v45 = vrot.slane %v6934_v48, 4  ;;  %v1039_v32 = vsel %vm6435_vm15, %v1030_v58, %v1038_v30  ;;  %v261_v43 = vshrl.u32 %v6924_v2, 16  ;;  %v7064_v30 = vrot.slane %v244_v21, 4  ;;  %v942_v21 = vld [vmem:[%s9588_s0 + $0x28] sm:$0xf] }
  0x80   :  { %v372_v29 = vpop.permute.xlu0 %371  ;;  %1251 = vst.msk [vmem:[#allocation2 + $0x4c] sm:$0xf] %vm62_vm13, %v1039_v32  ;;  %v943_v32 = vld [vmem:[%s9588_s0 + $0x2c] sm:$0xf] }
  0x81   :  { %1423 = vrot.lane.b32.xlu1 %v1361_v41, %s5840_s25  ;;  %447 = vst.msk [vmem:[#allocation2] sm:$0xf] %vm446_vm9, %v372_v29  ;;  %v1047_v41 = vrot.slane %v1045_v54, 6  ;;  %v7011_v54 = vor.u32 %v1883_v11, %v1880_v25  ;;  %v7013_v29 = vrot.slane %v257_v36, 5  ;;  %v1362_v25 = vrot.slane %v1360_v60, 4 }
  0x82   :  { %391 = vrot.lane.b32.xlu0 %v230_v63, %s5840_s25  ;;  %679 = vst.msk [vmem:[#allocation2] sm:$0xf] %vm678_vm10, %v604_v35  ;;  %v560_v35 = vsel %vm5923_vm5, %v558_v44, %v559_v34  ;;  %v6959_v63 = vld [vmem:[%s9588_s0 + $0x34] sm:$0xf]  ;;  %v46_v34 = vld [vmem:[%s9588_s0 + $0x24] sm:$0xf]  ;;  %v1589_v44 = vsel %vm5913_vm3, %v1587_v12, %v1588_v31  ;;  %v789_v11 = vsel %vm5923_vm5, %v6919_v33, %v788_v53 }
  0x83   :  { %v1632_v38 = vpop.permute.xlu1 %1631  ;;  %v6961_v40 = vor.u32 %v1047_v41, %v1044_v4  ;;  %72 = vst.msk [vmem:[#allocation2 + $0x6c] sm:$0xf] %vm62_vm13, %v46_v34  ;;  %v565_v15 = vrot.slane %v6959_v63, 5  ;;  %v7032_v4 = vrot.slane %v1363_v14, 4  ;;  %v7040_v41 = vld [vmem:[%s9588_s0 + $0x3c] sm:$0xf]  ;;  %v1885_v7 = vsel %vm6069_vm11, %v1876_v45, %v7011_v54 }
  0x84   :  { %1705 = vst.msk [vmem:[#allocation2 + $0x10] sm:$0xf] %vm678_vm10, %v1632_v38  ;;  %v374_v49 = vpop.permute.xlu0 %373  ;;  %v792_v38 = vsel %vm5923_vm5, %v790_v62, %v791_v55  ;;  %v7056_v60 = vld [vmem:[%s9588_s0 + $0x40] sm:$0xf]  ;;  %v1742_v36 = vld [vmem:[%s9588_s0 + $0x3c] sm:$0xf]  ;;  %v7111_v62 = vsel %vm5913_vm3, %v1362_v25, %v1363_v14 }
  0x85   :  { %625 = vrot.lane.b32.xlu1 %v563_v22, %s5841_s30  ;;  %448 = vst.msk [vmem:[#allocation2 + $0xc] sm:$0xf] %vm446_vm9, %v374_v49  ;;  %v1049_v47 = vsel %vm6435_vm15, %v1040_v23, %v6961_v40  ;;  %v1366_v22 = vrot.slane %v6982_v13, 6  ;;  %v7068_v53 = vrot.slane %v565_v15, 4  ;;  %v2185_v33 = vrot.slane %v2121_v37, 7 }
  0x86   :  { %680 = vst.msk [vmem:[#allocation2 + $0xc] sm:$0xf] %vm678_vm10, %v606_v3  ;;  %1421 = vrot.lane.b32.xlu0 %v1358_v19, %s5840_s25  ;;  %v1586_v3 = vsel %vm5913_vm3, %v6904_v59, %v1585_v26  ;;  %v7028_v59 = vrot.slane %v254_v18, 4  ;;  %v2188_v19 = vrot.slane %v7024_v16, 7  ;;  %v7088_v49 = vld [vmem:[%s9588_s0 + $0x38] sm:$0xf] }
  0x87   :  { %v835_v12 = vpop.permute.xlu1 %834  ;;  %1252 = vst.msk [vmem:[#allocation2 + $0x58] sm:$0xf] %vm62_vm13, %v1049_v47  ;;  %v103_v18 = vld [vmem:[%s9588_s0 + $0x3c] sm:$0xf]  ;;  %v1594_v48 = vrot.slane %v7056_v60, 6  ;;  %v1888_v1 = vshrl.u32 %v1742_v36, 16  ;;  %v2186_v58 = vsel %vm6668_vm6, %v2184_v6, %v2185_v33 }
  0x88   :  { %909 = vst.msk [vmem:[#allocation2 + $0xc] sm:$0xf] %vm907_vm12, %v835_v12  ;;  %v1630_v26 = vpop.permute.xlu0 %1629  ;;  %v2187_v34 = vrot.slane %v2185_v33, 4  ;;  %v7115_v45 = vrot.slane %v1588_v31, 4  ;;  %v1891_v12 = vshll.u32 %v1742_v36, 16  ;;  %v794_v14 = vrot.slane %v7088_v49, 5 }
  0x89   :  { %1651 = vrot.lane.b32.xlu1 %v1589_v44, %s5841_s30  ;;  %1704 = vst.msk [vmem:[#allocation2 + $0x4] sm:$0xf] %vm678_vm10, %v1630_v26  ;;  %v260_v44 = vsel %vm5992_vm8, %v7028_v59, %v7013_v29  ;;  %v267_v47 = vshll.u32 %v103_v18, 16  ;;  %v271_v61 = vshrl.u32 %v103_v18, 16  ;;  %v7141_v37 = vrot.slane %v791_v55, 4 }
  0x8a   :  { %623 = vrot.lane.b32.xlu0 %v560_v35, %s5841_s30  ;;  %v1591_v35 = vrot.slane %v7040_v41, 6  ;;  %2276 = vst.msk [vmem:[#allocation2 + $0x38] sm:$0xf] %vm62_vm13, %v2186_v58  ;;  %v2189_v31 = vsel %vm6668_vm6, %v2187_v34, %v2188_v19  ;;  %v1886_v26 = vrot.slane %v7011_v54, 4  ;;  %v1890_v25 = vrot.slane %v1888_v1, 6 }
  0x8b   :  { %v2019_v50 = vpop.permute.xlu1 %2018  ;;  %2277 = vst.msk [vmem:[#allocation2 + $0x44] sm:$0xf] %vm62_vm13, %v2189_v31  ;;  %v1901_v36 = vshll.u32 %v1743_v27, 16  ;;  %v1052_v6 = vshrl.u32 %v942_v21, 16  ;;  %v1055_v55 = vshll.u32 %v942_v21, 16  ;;  %v1062_v33 = vshrl.u32 %v943_v32, 16 }
  0x8c   :  { %2092 = vst.msk [vmem:[#allocation2 + $0x10] sm:$0xf] %vm907_vm12, %v2019_v50  ;;  %v833_v23 = vpop.permute.xlu0 %832  ;;  %v7136_v20 = vrot.slane %v1591_v35, 4  ;;  %v1893_v50 = vrot.slane %v1891_v12, 7  ;;  %v1065_v18 = vshll.u32 %v943_v32, 16  ;;  %v7158_v1 = vrot.slane %v267_v47, 5 }
  0x8d   :  { %854 = vrot.lane.b32.xlu1 %v792_v38, %s5842_s13  ;;  %908 = vst.msk [vmem:[#allocation2] sm:$0xf] %vm907_vm12, %v833_v23  ;;  %v1898_v38 = vshrl.u32 %v1743_v27, 16  ;;  %v273_v58 = vrot.slane %v271_v61, 4  ;;  %v1054_v34 = vrot.slane %v1052_v6, 5  ;;  %v1057_v12 = vrot.slane %v1055_v55, 6 }
  0x8e   :  { %1649 = vrot.lane.b32.xlu0 %v1586_v3, %s5841_s30  ;;  %v797_v3 = vrot.slane %v7098_v52, 5  ;;  %v48_v27 = vld [vmem:[%s9588_s0 + $0x2c] sm:$0xf]  ;;  %v1064_v21 = vrot.slane %v1062_v33, 5  ;;  %v250_v61 = vsel %vm5992_vm8, %v7064_v30, %v6927_v10  ;;  %v796_v31 = vrot.slane %v794_v14, 4 }
  0x8f   :  { %v378_v17 = vpop.permute.xlu1 %377  ;;  %74 = vst.msk [vmem:[#allocation2 + $0x84] sm:$0xf] %vm62_vm13, %v48_v27  ;;  %v1900_v32 = vrot.slane %v1898_v38, 6  ;;  %v7188_v10 = vor.u32 %v1893_v50, %v1890_v25  ;;  %v1903_v30 = vrot.slane %v1901_v36, 7  ;;  %v1058_v38 = vor.u32 %v1057_v12, %v1054_v34  ;;  %v7277_v54 = vld [vmem:[%s9588_s0 + $0x28] sm:$0xf] }
  0x90   :  { %450 = vst.msk [vmem:[#allocation2 + $0x24] sm:$0xf] %vm446_vm9, %v378_v17  ;;  %v2017_v59 = vpop.permute.xlu0 %2016  ;;  %v1050_v17 = vrot.slane %v6961_v40, 4  ;;  %v569_v40 = vsel %vm5923_vm5, %v7068_v53, %v568_v39  ;;  %v7193_v53 = vld [vmem:[%s9588_s0 + $0x44] sm:$0xf]  ;;  %v7209_v25 = vsel %vm5923_vm5, %v7082_v8, %v565_v15  ;;  %v7216_v36 = vsel %vm5913_vm3, %v7115_v45, %v1591_v35 }
  0x91   :  { %2038 = vrot.lane.b32.xlu1 %v1885_v7, %s5842_s13  ;;  %2091 = vst.msk [vmem:[#allocation2 + $0x4] sm:$0xf] %vm907_vm12, %v2017_v59  ;;  %v1367_v7 = vsel %vm5913_vm3, %v7032_v4, %v1366_v22  ;;  %v47_v4 = vld [vmem:[%s9588_s0 + $0x28] sm:$0xf]  ;;  %v7184_v59 = vld [vmem:[%s9588_s0 + $0x40] sm:$0xf]  ;;  %v274_v50 = vor.u32 %v273_v58, %v7158_v1  ;;  %v1595_v2 = vsel %vm5913_vm3, %v7136_v20, %v1594_v48 }
  0x92   :  { %852 = vrot.lane.b32.xlu0 %v789_v11, %s5842_s13  ;;  %v1067_v11 = vrot.slane %v1065_v18, 6  ;;  %73 = vst.msk [vmem:[#allocation2 + $0x78] sm:$0xf] %vm62_vm13, %v47_v4  ;;  %v277_v33 = vshll.u32 %v7150_v46, 16  ;;  %v7223_v63 = vrot.slane %v261_v43, 4  ;;  %v1369_v15 = vrot.slane %v7184_v59, 6 }
  0x93   :  { %v1408_v23 = vpop.permute.xlu1 %1407  ;;  %v1060_v8 = vrot.slane %v1058_v38, 4  ;;  %v1059_v41 = vsel %vm6435_vm15, %v1050_v17, %v1058_v38  ;;  %v2123_v35 = vld [vmem:[%s9588_s0 + $0x24] sm:$0xf]  ;;  %v7241_v43 = vsel %vm5923_vm5, %v796_v31, %v797_v3  ;;  %v7248_v58 = vsel %vm5923_vm5, %v7141_v37, %v794_v14  ;;  %v7267_v14 = vld [vmem:[%s9588_s0 + $0x40] sm:$0xf] }
  0x94   :  { %1479 = vst.msk [vmem:[#allocation2 + $0x28] sm:$0xf] %vm446_vm9, %v1408_v23  ;;  %v376_v47 = vpop.permute.xlu0 %375  ;;  %v7200_v6 = vor.u32 %v1067_v11, %v1064_v21  ;;  %v5698_v18 = vld [vmem:[#allocation2] ss:$12 sps:$4 sm:$0xff]   ;;  %v1896_v20 = vrot.slane %v7188_v10, 4  ;;  %v7255_v34 = vor.u32 %v1903_v30, %v1900_v32  ;;  %v7262_v49 = vsel %vm6069_vm11, %v1886_v26, %v7188_v10 }
  0x95   :  { %397 = vrot.lane.b32.xlu1 %v260_v44, %s5840_s25  ;;  %449 = vst.msk [vmem:[#allocation2 + $0x18] sm:$0xf] %vm446_vm9, %v376_v47  ;;  %v7198_v44 = vld [vmem:[%s9588_s0 + $0x3c] sm:$0xf]  ;;  %v7280_v27 = vrot.slane %v274_v50, 4  ;;  %v7282_v12 = vrot.slane %v277_v33, 5  ;;  %v264_v4 = vor.u32 %v7223_v63, %v7013_v29 }
  0x96   :  { %2036 = vrot.lane.b32.xlu0 %v7078_v56, %s5842_s13  ;;  %v5709_v56 = vld [vmem:[#allocation2 + $0x38] ss:$12 sps:$4 sm:$0xff]   ;;  %1253 = vst.msk [vmem:[#allocation2 + $0x64] sm:$0xf] %vm62_vm13, %v1059_v41  ;;  %v1069_v37 = vsel %vm6435_vm15, %v1060_v8, %v7200_v6  ;;  %v1372_v21 = vrot.slane %v7193_v53, 6  ;;  %v1368_v11 = vrot.slane %v1366_v22, 4 }
  0x97   :  { %v610_v55 = vpop.permute.xlu1 %609  ;;  %5581 = vmatmul.mubr.msk.bf16.gmra.mxu1 %vm2688_vm7, %v5709_v56  ;;  %v7290_v17 = vld [vmem:[%s9588_s0 + $0x44] sm:$0xf]  ;;  %1254 = vst.msk [vmem:[#allocation2 + $0x70] sm:$0xf] %vm62_vm13, %v1069_v37  ;;  %v1371_v47 = vrot.slane %v1369_v15, 4  ;;  %v2190_v13 = vrot.slane %v2188_v19, 4  ;;  %v280_v33 = vsel %vm5992_vm8, %v7280_v27, %v7282_v12 }
  0x98   :  { %682 = vst.msk [vmem:[#allocation2 + $0x24] sm:$0xf] %vm678_vm10, %v610_v55  ;;  %v1406_v45 = vpop.permute.xlu0 %1405  ;;  %v5700_v23 = vld [vmem:[#allocation2 + $0x4] ss:$12 sps:$4 sm:$0xff]   ;;  %5584 = vmatprep.mubr.msk.bf16.mxu1 %vm5844_vm0, %v9599_v51  ;;  %v2191_v22 = vrot.slane %v2123_v35, 7  ;;  %v574_v59 = vrot.slane %v7267_v14, 5 }
  0x99   :  { %1427 = vrot.lane.b32.xlu1 %v1367_v7, %s5840_s25  ;;  %v571_v7 = vrot.slane %v7198_v44, 5  ;;  %1478 = vst.msk [vmem:[#allocation2 + $0x1c] sm:$0xf] %vm446_vm9, %v1406_v45  ;;  %2760 = vmatprep.mubr.bf16.mxu0 %v5700_v23  ;;  %v570_v10 = vrot.slane %v568_v39, 4  ;;  %v2194_v29 = vrot.slane %v7277_v54, 7  ;;  %v281_v30 = vshrl.u32 %v7150_v46, 16 }
  0x9a   :  { %395 = vrot.lane.b32.xlu0 %v250_v61, %s5840_s25  ;;  %2761 = vmatmul.mubr.bf16.vlgmr.msra.gmra.mxu0 %v5698_v18  ;;  %v1744_v61 = vld [vmem:[%s9588_s0 + $0x44] sm:$0xf]  ;;  %v1597_v44 = vrot.slane %v7290_v17, 6  ;;  %v2192_v19 = vsel %vm6668_vm6, %v2190_v13, %v2191_v22  ;;  %v7319_v39 = vsel %vm6069_vm11, %v1896_v20, %v7255_v34  ;;  %v7323_v46 = vsel %vm5913_vm3, %v1368_v11, %v1369_v15  ;;  %v7328_v38 = vld [vmem:[%s9588_s0 + $0x48] sm:$0xf] }
  0x9b   :  { %v1636_v26 = vpop.permute.xlu1 %1635  ;;  %v573_v32 = vrot.slane %v571_v7, 4  ;;  %v105_v16 = vld [vmem:[%s9588_s0 + $0x44] sm:$0xf]  ;;  %v7333_v55 = vld [vmem:[%s9588_s0 + $0x40] sm:$0xf]  ;;  %v1911_v50 = vshll.u32 %v1744_v61, 16  ;;  %v7347_v63 = vsel %vm5913_vm3, %v1371_v47, %v1372_v21  ;;  %v7370_v18 = vsel %vm5923_vm5, %v570_v10, %v571_v7 }
  0x9c   :  { %1707 = vst.msk [vmem:[#allocation2 + $0x28] sm:$0xf] %vm678_vm10, %v1636_v26  ;;  %v608_v31 = vpop.permute.xlu0 %607  ;;  %v7341_v56 = vrot.slane %v264_v4, 4  ;;  %v7352_v15 = vld [vmem:[%s9588_s0 + $0x44] sm:$0xf]  ;;  %v287_v20 = vshll.u32 %v105_v16, 16 }
  0x9d   :  { %629 = vrot.lane.b32.xlu1 %v569_v40, %s5841_s30  ;;  %681 = vst.msk [vmem:[#allocation2 + $0x18] sm:$0xf] %vm678_vm10, %v608_v31  ;;  %v2193_v40 = vrot.slane %v2191_v22, 4  ;;  %v944_v41 = vld [vmem:[%s9588_s0 + $0x30] sm:$0xf]  ;;  %v7366_v45 = vsel %vm5923_vm5, %v573_v32, %v574_v59  ;;  %v291_v37 = vshrl.u32 %v105_v16, 16 }
  0x9e   :  { %1425 = vrot.lane.b32.xlu0 %v7111_v62, %s5840_s25  ;;  %v1908_v62 = vshrl.u32 %v1744_v61, 16  ;;  %2278 = vst.msk [vmem:[#allocation2 + $0x50] sm:$0xf] %vm62_vm13, %v2192_v19  ;;  %v7375_v23 = vld [vmem:[%s9588_s0 + $0x48] sm:$0xf]  ;;  %v7384_v26 = vrot.slane %v1597_v44, 4 }
  0x9f   :  { %v839_v24 = vpop.permute.xlu1 %838  ;;  %v2195_v8 = vsel %vm6668_vm6, %v2193_v40, %v2194_v29  ;;  %v1600_v7 = vrot.slane %v7328_v38, 6  ;;  %v1596_v11 = vrot.slane %v1594_v48, 4  ;;  %v800_v4 = vrot.slane %v7333_v55, 5  ;;  %v50_v32 = vld [vmem:[%s9588_s0 + $0x34] sm:$0xf] }
  0xa0   :  { %911 = vst.msk [vmem:[#allocation2 + $0x24] sm:$0xf] %vm907_vm12, %v839_v24  ;;  %v1634_v35 = vpop.permute.xlu0 %1633  ;;  %v803_v61 = vrot.slane %v7352_v15, 5  ;;  %v1910_v13 = vrot.slane %v1908_v62, 6  ;;  %v1913_v22 = vrot.slane %v1911_v50, 7  ;;  %v1072_v31 = vshrl.u32 %v944_v41, 16 }
  0xa1   :  { %1655 = vrot.lane.b32.xlu1 %v1595_v2, %s5841_s30  ;;  %2279 = vst.msk [vmem:[#allocation2 + $0x5c] sm:$0xf] %vm62_vm13, %v2195_v8  ;;  %v945_v2 = vld [vmem:[%s9588_s0 + $0x34] sm:$0xf]  ;;  %v7399_v60 = vrot.slane %v797_v3, 4  ;;  %v1918_v48 = vshrl.u32 %v7375_v23, 16 }
  0xa2   :  { %1706 = vst.msk [vmem:[#allocation2 + $0x1c] sm:$0xf] %vm678_vm10, %v1634_v35  ;;  %627 = vrot.lane.b32.xlu0 %v7209_v25, %s5841_s30  ;;  %v1075_v10 = vshll.u32 %v944_v41, 16  ;;  %v1082_v25 = vshrl.u32 %v945_v2, 16  ;;  %v49_v16 = vld [vmem:[%s9588_s0 + $0x30] sm:$0xf] }
  0xa3   :  { %v2023_v47 = vpop.permute.xlu1 %2022  ;;  %76 = vst.msk [vmem:[#allocation2 + $0x9c] sm:$0xf] %vm62_vm13, %v50_v32  ;;  %v106_v52 = vld [vmem:[%s9588_s0 + $0x48] sm:$0xf]  ;;  %v7411_v3 = vrot.slane %v287_v20, 5  ;;  %v293_v40 = vrot.slane %v291_v37, 4  ;;  %v270_v20 = vsel %vm5992_vm8, %v7341_v56, %v7158_v1  ;;  %v7422_v37 = vor.u32 %v1913_v22, %v1910_v13 }
  0xa4   :  { %2094 = vst.msk [vmem:[#allocation2 + $0x28] sm:$0xf] %vm907_vm12, %v2023_v47  ;;  %v837_v19 = vpop.permute.xlu0 %836  ;;  %v1074_v24 = vrot.slane %v1072_v31, 5  ;;  %v1085_v62 = vshll.u32 %v945_v2, 16  ;;  %v283_v50 = vrot.slane %v281_v30, 4  ;;  %v1077_v8 = vrot.slane %v1075_v10, 6 }
  0xa5   :  { %858 = vrot.lane.b32.xlu1 %v7241_v43, %s5842_s13  ;;  %75 = vst.msk [vmem:[#allocation2 + $0x90] sm:$0xf] %vm62_vm13, %v49_v16  ;;  %v1084_v41 = vrot.slane %v1082_v25, 5  ;;  %v1070_v35 = vrot.slane %v7200_v6, 4  ;;  %v1921_v2 = vshll.u32 %v7375_v23, 16  ;;  %v7440_v47 = vsel %vm5913_vm3, %v1596_v11, %v1597_v44 }
  0xa6   :  { %910 = vst.msk [vmem:[#allocation2 + $0x18] sm:$0xf] %vm907_vm12, %v837_v19  ;;  %1653 = vrot.lane.b32.xlu0 %v7216_v36, %s5841_s30  ;;  %v7428_v30 = vld [vmem:[%s9588_s0 + $0x48] sm:$0xf]  ;;  %v7433_v6 = vld [vmem:[%s9588_s0 + $0x44] sm:$0xf]  ;;  %v1078_v31 = vor.u32 %v1077_v8, %v1074_v24  ;;  %v294_v17 = vor.u32 %v293_v40, %v7411_v3  ;;  %v284_v16 = vor.u32 %v283_v50, %v7282_v12 }
  0xa7   :  { %v382_v43 = vpop.permute.xlu1 %381  ;;  %v1087_v36 = vrot.slane %v1085_v62, 6  ;;  %v297_v23 = vshll.u32 %v106_v52, 16  ;;  %v301_v13 = vshrl.u32 %v106_v52, 16  ;;  %v7446_v10 = vrot.slane %v800_v4, 4  ;;  %v7454_v44 = vld [vmem:[%s9588_s0 + $0x4c] sm:$0xf] }
  0xa8   :  { %452 = vst.msk [vmem:[#allocation2 + $0x3c] sm:$0xf] %vm446_vm9, %v382_v43  ;;  %v5712_v22 = vld [vmem:[#allocation2 + $0x50] ss:$12 sps:$4 sm:$0xff]   ;;  %v2021_v32 = vpop.permute.xlu0 %2020  ;;  %v7448_v25 = vrot.slane %v1918_v48, 6  ;;  %v1080_v52 = vrot.slane %v1078_v31, 4  ;;  %v1079_v40 = vsel %vm6435_vm15, %v1070_v35, %v1078_v31 }
  0xa9   :  { %2042 = vrot.lane.b32.xlu1 %v7319_v39, %s5842_s13  ;;  %v7456_v11 = vor.u32 %v1087_v36, %v1084_v41  ;;  %2093 = vst.msk [vmem:[#allocation2 + $0x1c] sm:$0xf] %vm907_vm12, %v2021_v32  ;;  %v9602_v39 = vrot.slane %v7428_v30, 6  ;;  %v7464_v48 = vld [vmem:[%s9588_s0 + $0x48] sm:$0xf]  ;;  %5585 = vmatmul.mubr.msk.bf16.gmra.mxu1 %vm2688_vm7, %v5712_v22  ;;  %v1923_v50 = vrot.slane %v1921_v2, 7 }
  0xaa   :  { %v1746_v19 = vld [vmem:[%s9588_s0 + $0x4c] sm:$0xf]  ;;  %856 = vrot.lane.b32.xlu0 %v7248_v58, %s5842_s13  ;;  %v1906_v8 = vrot.slane %v7255_v34, 4  ;;  %v9601_v41 = vrot.slane %v7433_v6, 5  ;;  %1255 = vst.msk [vmem:[#allocation2 + $0x7c] sm:$0xf] %vm62_vm13, %v1079_v40  ;;  %5588 = vmatprep.mubr.msk.bf16.mxu1 %vm5844_vm0, %v9599_v51 }
  0xab   :  { %v1412_v24 = vpop.permute.xlu1 %1411  ;;  %v7480_v43 = vld [vmem:[%s9588_s0 + $0x4c] sm:$0xf]  ;;  %v7489_v35 = vrot.slane %v297_v23, 5  ;;  %v7491_v2 = vrot.slane %v301_v13, 4  ;;  %v1089_v22 = vsel %vm6435_vm15, %v1080_v52, %v7456_v11  ;;  %v7500_v31 = vld [vmem:[%s9588_s0 + $0x30] sm:$0xf] }
  0xac   :  { %v2125_v58 = vld [vmem:[%s9588_s0 + $0x2c] sm:$0xf]  ;;  %1481 = vst.msk [vmem:[#allocation2 + $0x40] sm:$0xf] %vm446_vm9, %v1412_v24  ;;  %v380_v32 = vpop.permute.xlu0 %379  ;;  %v7508_v23 = vrot.slane %v294_v17, 4  ;;  %v7512_v13 = vrot.slane %v1372_v21, 4  ;;  %v7621_v38 = vsel %vm6069_vm11, %v1906_v8, %v7422_v37 }
  0xad   :  { %401 = vrot.lane.b32.xlu1 %v280_v33, %s5840_s25  ;;  %v7517_v52 = vld [vmem:[%s9588_s0 + $0x48] sm:$0xf]  ;;  %v1928_v40 = vshrl.u32 %v1746_v19, 16  ;;  %v1931_v24 = vshll.u32 %v1746_v19, 16  ;;  %1256 = vst.msk [vmem:[#allocation2 + $0x88] sm:$0xf] %vm62_vm13, %v1089_v22 }
  0xae   :  { %451 = vst.msk [vmem:[#allocation2 + $0x30] sm:$0xf] %vm446_vm9, %v380_v32  ;;  %v7521_v51 = vrot.slane %v284_v16, 4  ;;  %v7525_v27 = vrot.slane %v9602_v39, 4  ;;  %v7530_v53 = vld [vmem:[%s9588_s0 + $0x50] sm:$0xf]  ;;  %2040 = vrot.lane.b32.xlu0 %v7262_v49, %s5842_s13 }
  0xaf   :  { %v2196_v12 = vrot.slane %v2194_v29, 4  ;;  %v2197_v21 = vrot.slane %v2125_v58, 7  ;;  %v614_v33 = vpop.permute.xlu1 %613  ;;  %v7538_v17 = vrot.slane %v9601_v41, 4  ;;  %v7543_v19 = vrot.slane %v574_v59, 4  ;;  %v107_v54 = vld [vmem:[%s9588_s0 + $0x4c] sm:$0xf] }
  0xb0   :  { %v9604_v29 = vrot.slane %v7500_v31, 7  ;;  %684 = vst.msk [vmem:[#allocation2 + $0x3c] sm:$0xf] %vm678_vm10, %v614_v33  ;;  %v9603_v49 = vrot.slane %v7480_v43, 6  ;;  %v1747_v22 = vld [vmem:[%s9588_s0 + $0x50] sm:$0xf]  ;;  %v1410_v32 = vpop.permute.xlu0 %1409  ;;  %v1601_v33 = vsel %vm5913_vm3, %v7384_v26, %v1600_v7 }
  0xb1   :  { %v2198_v14 = vsel %vm6668_vm6, %v2196_v12, %v2197_v21  ;;  %v2199_v59 = vrot.slane %v2197_v21, 4  ;;  %v2301_v41 = vld [vmem:[#allocation2 + $0x18] sm:$0xff]  ;;  %v2303_v39 = vld [vmem:[#allocation2 + $0x24] sm:$0xff]  ;;  %1431 = vrot.lane.b32.xlu1 %v7347_v63, %s5840_s25  ;;  %v7569_v12 = vsel %vm5923_vm5, %v7399_v60, %v800_v4  ;;  %v1930_v21 = vrot.slane %v1928_v40, 6  ;;  %1480 = vst.msk [vmem:[#allocation2 + $0x34] sm:$0xf] %vm446_vm9, %v1410_v32 }
  0xb2   :  { %v5704_v16 = vld [vmem:[#allocation2 + $0x1c] ss:$12 sps:$4 sm:$0xff]   ;;  %v1933_v36 = vrot.slane %v1931_v24, 7  ;;  %2280 = vst.msk [vmem:[#allocation2 + $0x68] sm:$0xf] %vm62_vm13, %v2198_v14  ;;  %v5197_v63 = vcombine.low %v2301_v41, %v2303_v39  ;;  %v307_v26 = vshll.u32 %v107_v54, 16  ;;  %399 = vrot.lane.b32.xlu0 %v270_v20, %s5840_s25  ;;  %v7596_v39 = vsel %vm5923_vm5, %v7446_v10, %v803_v61 }
  0xb3   :  { %v7576_v62 = vld [vmem:[%s9588_s0 + $0x4c] sm:$0xf]  ;;  %v311_v58 = vshrl.u32 %v107_v54, 16  ;;  %v2201_v55 = vsel %vm6668_vm6, %v2199_v59, %v9604_v29  ;;  %v946_v4 = vld [vmem:[%s9588_s0 + $0x38] sm:$0xf]  ;;  %2768 = vmatprep.mubr.bf16.mxu0 %v5704_v16  ;;  %v1640_v60 = vpop.permute.xlu1 %1639  ;;  %v7599_v41 = vor.u32 %v1923_v50, %v7448_v25  ;;  %v7604_v24 = vrot.slane %v1600_v7, 4 }
  0xb4   :  { %v7609_v1 = vld [vmem:[%s9588_s0 + $0x50] sm:$0xf]  ;;  %2281 = vst.msk [vmem:[#allocation2 + $0x74] sm:$0xf] %vm62_vm13, %v2201_v55  ;;  %v52_v56 = vld [vmem:[%s9588_s0 + $0x3c] sm:$0xf]  ;;  %2769 = vmatmul.mubr.bf16.gmra.mxu0 %v5197_v63  ;;  %v304_v7 = vor.u32 %v7491_v2, %v7489_v35  ;;  %v612_v34 = vpop.permute.xlu0 %611  ;;  %v7654_v59 = vor.u32 %v1933_v36, %v1930_v21 }
  0xb5   :  { %1709 = vst.msk [vmem:[#allocation2 + $0x40] sm:$0xf] %vm678_vm10, %v1640_v60  ;;  %v1938_v20 = vshrl.u32 %v1747_v22, 16  ;;  %v1941_v10 = vshll.u32 %v1747_v22, 16  ;;  %v947_v25 = vld [vmem:[%s9588_s0 + $0x3c] sm:$0xf]  ;;  %633 = vrot.lane.b32.xlu1 %v7366_v45, %s5841_s30 }
  0xb6   :  { %78 = vst.msk [vmem:[#allocation2 + $0xb4] sm:$0xf] %vm62_vm13, %v52_v56  ;;  %v51_v50 = vld [vmem:[%s9588_s0 + $0x38] sm:$0xf]  ;;  %v7636_v8 = vrot.slane %v9603_v49, 4  ;;  %v7641_v16 = vrot.slane %v803_v61, 4  ;;  %1429 = vrot.lane.b32.xlu0 %v7323_v46, %s5840_s25 }
  0xb7   :  { %v7646_v54 = vld [vmem:[%s9588_s0 + $0x50] sm:$0xf]  ;;  %v1092_v22 = vshrl.u32 %v946_v4, 16  ;;  %77 = vst.msk [vmem:[#allocation2 + $0xa8] sm:$0xf] %vm62_vm13, %v51_v50  ;;  %v9624_v45 = vrot.slane %v7517_v52, 5  ;;  %v843_v61 = vpop.permute.xlu1 %842 }
  0xb8   :  { %9623 = vst [vmem:[#allocation12_spill] sm:$0xff] %v7646_v54  ;;  %683 = vst.msk [vmem:[#allocation2 + $0x30] sm:$0xf] %vm678_vm10, %v612_v34  ;;  %v7656_v32 = vrot.slane %v307_v26, 5  ;;  %v313_v15 = vrot.slane %v311_v58, 4  ;;  %v1095_v60 = vshll.u32 %v946_v4, 16  ;;  %v1638_v26 = vpop.permute.xlu0 %1637 }
  0xb9   :  { %v7652_v14 = vrot.slane %v9624_v45, 4  ;;  %v1748_v63 = vld [vmem:[%s9588_s0 + $0x54] sm:$0xf]  ;;  %v1094_v55 = vrot.slane %v1092_v22, 5  ;;  %v1102_v56 = vshrl.u32 %v947_v25, 16  ;;  %v1105_v50 = vshll.u32 %v947_v25, 16  ;;  %1659 = vrot.lane.b32.xlu1 %v1601_v33, %s5841_s30 }
  0xba   :  { %913 = vst.msk [vmem:[#allocation2 + $0x3c] sm:$0xf] %vm907_vm12, %v843_v61  ;;  %v7664_v34 = vrot.slane %v1938_v20, 6  ;;  %v7666_v36 = vrot.slane %v1941_v10, 7  ;;  %v317_v58 = vshll.u32 %v7609_v1, 16  ;;  %v1097_v20 = vrot.slane %v1095_v60, 6  ;;  %631 = vrot.lane.b32.xlu0 %v7370_v18, %s5841_s30 }
  0xbb   :  { %v7672_v46 = vld [vmem:[%s9588_s0 + $0x54] sm:$0xf]  ;;  %v7679_v4 = vld [vmem:[%s9588_s0 + $0x4c] sm:$0xf]  ;;  %v1104_v10 = vrot.slane %v1102_v56, 5  ;;  %v1107_v25 = vrot.slane %v1105_v50, 6  ;;  %v314_v33 = vor.u32 %v313_v15, %v7656_v32 }
  0xbc   :  { %9625 = vst [vmem:[#allocation13_spill] sm:$0xff] %v7679_v4  ;;  %v1090_v22 = vrot.slane %v7456_v11, 4  ;;  %1708 = vst.msk [vmem:[#allocation2 + $0x34] sm:$0xf] %vm678_vm10, %v1638_v26  ;;  %v9626_v45 = vrot.slane %v7422_v37, 4  ;;  %v1948_v11 = vshrl.u32 %v1748_v63, 16  ;;  %v2027_v37 = vpop.permute.xlu1 %2026 }
  0xbd   :  { %v7692_v49 = vld [vmem:[%s9588_s0 + $0x50] sm:$0xf]  ;;  %v7697_v60 = vld [vmem:[%s9588_s0 + $0x54] sm:$0xf]  ;;  %v1951_v56 = vshll.u32 %v1748_v63, 16  ;;  %v1098_v63 = vor.u32 %v1097_v20, %v1094_v55  ;;  %v7713_v40 = vor.u32 %v1107_v25, %v1104_v10  ;;  %v7719_v15 = vrot.slane %v317_v58, 5  ;;  %v841_v20 = vpop.permute.xlu0 %840  ;;  %862 = vrot.lane.b32.xlu1 %v7596_v39, %s5842_s13 }
  0xbe   :  { %v1925_v61 = vsel %vm6069_vm11, %v9626_v45, %v7599_v41  ;;  %9627 = vst [vmem:[#allocation14_spill] sm:$0xff] %v7692_v49  ;;  %v5715_v50 = vld [vmem:[#allocation2 + $0x68] ss:$12 sps:$4 sm:$0xff]   ;;  %v7706_v45 = vld [vmem:[%s9588_s0 + $0x58] sm:$0xf]  ;;  %v7722_v29 = vrot.slane %v304_v7, 4  ;;  %1657 = vrot.lane.b32.xlu0 %v7440_v47, %s5841_s30 }
  0xbf   :  { %v7711_v2 = vld [vmem:[%s9588_s0 + $0x50] sm:$0xf]  ;;  %v54_v18 = vld [vmem:[%s9588_s0 + $0x44] sm:$0xf]  ;;  %2096 = vst.msk [vmem:[#allocation2 + $0x40] sm:$0xf] %vm907_vm12, %v2027_v37  ;;  %5589 = vmatmul.mubr.msk.bf16.gmra.mxu1 %vm2688_vm7, %v5715_v50  ;;  %v1099_v37 = vsel %vm6435_vm15, %v1090_v22, %v1098_v63 }
  0xc0   :  { %9628 = vst [vmem:[#allocation15_spill] sm:$0xff] %v7711_v2  ;;  %80 = vst.msk [vmem:[#allocation2 + $0xcc] sm:$0xf] %vm62_vm13, %v54_v18  ;;  %v53_v55 = vld [vmem:[%s9588_s0 + $0x40] sm:$0xf]  ;;  %v9629_v10 = vrot.slane %v7454_v44, 6 }
  0xc1   :  { %v1749_v25 = vld [vmem:[%s9588_s0 + $0x58] sm:$0xf]  ;;  %v1100_v50 = vrot.slane %v1098_v63, 4  ;;  %v9631_v18 = vmov 0.0   ;;  %79 = vst.msk [vmem:[#allocation2 + $0xc0] sm:$0xf] %vm62_vm13, %v53_v55  ;;  %2046 = vrot.lane.b32.xlu1 %v1925_v61, %s5842_s13 }
  0xc2   :  { %v7735_v7 = vrot.slane %v9629_v10, 4  ;;  %5592 = vmatprep.mubr.msk.bf16.mxu1 %vm5844_vm0, %v9631_v18  ;;  %912 = vst.msk [vmem:[#allocation2 + $0x30] sm:$0xf] %vm907_vm12, %v841_v20  ;;  %v7746_v39 = vrot.slane %v314_v33, 4  ;;  %v9632_v10 = vrot.slane %v7646_v54, 6  ;;  %v1950_v26 = vrot.slane %v1948_v11, 6  ;;  %v386_v33 = vpop.permute.xlu1 %385  ;;  %860 = vrot.lane.b32.xlu0 %v7569_v12, %s5842_s13 }
  0xc3   :  { %v1953_v21 = vrot.slane %v1951_v56, 7  ;;  %1257 = vst.msk [vmem:[#allocation2 + $0x94] sm:$0xf] %vm62_vm13, %v1099_v37  ;;  %v2127_v22 = vld [vmem:[%s9588_s0 + $0x34] sm:$0xf]  ;;  %v300_v11 = vsel %vm5992_vm8, %v7508_v23, %v7489_v35  ;;  %v1109_v20 = vsel %vm6435_vm15, %v1100_v50, %v7713_v40  ;;  %v9633_v35 = vrot.slane %v7679_v4, 5  ;;  %v2025_v50 = vpop.permute.xlu0 %2024 }
  0xc4   :  { %9630 = vst [vmem:[#allocation16_spill] sm:$0xff] %v7735_v7  ;;  %v7750_v58 = vrot.slane %v9632_v10, 4  ;;  %v109_v7 = vld [vmem:[%s9588_s0 + $0x54] sm:$0xf]  ;;  %v7778_v47 = vld [vmem:[%s9588_s0 + $0x38] sm:$0xf] }
  0xc5   :  { %v7770_v55 = vld [vmem:[%s9588_s0 + $0x54] sm:$0xf]  ;;  %454 = vst.msk [vmem:[#allocation2 + $0x54] sm:$0xf] %vm446_vm9, %v386_v33  ;;  %v7783_v23 = vrot.slane %v9633_v35, 4  ;;  %v9634_v37 = vrot.slane %v7464_v48, 5  ;;  %405 = vrot.lane.b32.xlu1 %v300_v11, %s5840_s25 }
  0xc6   :  { %1258 = vst.msk [vmem:[#allocation2 + $0xa0] sm:$0xf] %vm62_vm13, %v1109_v20  ;;  %v1958_v54 = vshrl.u32 %v1749_v25, 16  ;;  %v1961_v49 = vshll.u32 %v1749_v25, 16  ;;  %v9635_v33 = vrot.slane %v7500_v31, 7  ;;  %v2203_v35 = vrot.slane %v2127_v22, 7  ;;  %v1416_v25 = vpop.permute.xlu1 %1415  ;;  %2044 = vrot.lane.b32.xlu0 %v7621_v38, %s5842_s13 }
  0xc7   :  { %v7787_v10 = vrot.slane %v9634_v37, 4  ;;  %2095 = vst.msk [vmem:[#allocation2 + $0x34] sm:$0xf] %vm907_vm12, %v2025_v50  ;;  %v7798_v37 = vor.u32 %v7666_v36, %v7664_v34  ;;  %v9636_v56 = vrot.slane %v7530_v53, 6  ;;  %v7804_v20 = vor.u32 %v1953_v21, %v1950_v26  ;;  %v7809_v61 = vld [vmem:[%s9588_s0 + $0x58] sm:$0xf] }
  0xc8   :  { %v2202_v4 = vrot.slane %v9635_v33, 4  ;;  %9638 = vst [vmem:[#allocation18_spill] sm:$0xff] %v7809_v61  ;;  %v2206_v31 = vrot.slane %v7778_v47, 7  ;;  %v9639_v34 = vrot.slane %v7697_v60, 6  ;;  %v327_v22 = vshll.u32 %v109_v7, 16 }
  0xc9   :  { %v7802_v63 = vrot.slane %v9636_v56, 4  ;;  %v2205_v26 = vrot.slane %v2203_v35, 4  ;;  %1483 = vst.msk [vmem:[#allocation2 + $0x58] sm:$0xf] %vm446_vm9, %v1416_v25  ;;  %v9640_v56 = vrot.slane %v7711_v2, 5  ;;  %v9641_v12 = vrot.slane %v7576_v62, 5 }
  0xca   :  { %v7816_v36 = vrot.slane %v9639_v34, 4  ;;  %v2204_v21 = vsel %vm6668_vm6, %v2202_v4, %v2203_v35  ;;  %v384_v34 = vpop.permute.xlu0 %383  ;;  %v7832_v4 = vrot.slane %v1958_v54, 6  ;;  %v7834_v35 = vrot.slane %v1961_v49, 7  ;;  %v949_v11 = vld [vmem:[%s9588_s0 + $0x44] sm:$0xf] }
  0xcb   :  { %9637 = vst [vmem:[#allocation17_spill] sm:$0xff] %v7802_v63  ;;  %v7823_v50 = vrot.slane %v9640_v56, 4  ;;  %v7828_v33 = vrot.slane %v9641_v12, 4  ;;  %v331_v63 = vshrl.u32 %v109_v7, 16  ;;  %2282 = vst.msk [vmem:[#allocation2 + $0x80] sm:$0xf] %vm62_vm13, %v2204_v21  ;;  %v2207_v25 = vsel %vm6668_vm6, %v2205_v26, %v2206_v31  ;;  %v618_v26 = vpop.permute.xlu1 %617 }
  0xcc   :  { %v948_v56 = vld [vmem:[%s9588_s0 + $0x40] sm:$0xf]  ;;  %453 = vst.msk [vmem:[#allocation2 + $0x48] sm:$0xf] %vm446_vm9, %v384_v34  ;;  %v9643_v7 = vrot.slane %v7454_v44, 6  ;;  %v7855_v12 = vrot.slane %v327_v22, 5 }
  0xcd   :  { %9642 = vst [vmem:[#allocation19_spill] sm:$0xff] %v7828_v33  ;;  %2283 = vst.msk [vmem:[#allocation2 + $0x8c] sm:$0xf] %vm62_vm13, %v2207_v25  ;;  %v337_v44 = vshll.u32 %v7809_v61, 16  ;;  %v7863_v34 = vrot.slane %v331_v63, 4  ;;  %v1112_v25 = vshrl.u32 %v948_v56, 16 }
  0xce   :  { %v1379_v21 = vsel %vm5913_vm3, %v7525_v27, %v9643_v7  ;;  %686 = vst.msk [vmem:[#allocation2 + $0x54] sm:$0xf] %vm678_vm10, %v618_v26  ;;  %v290_v27 = vsel %vm5992_vm8, %v7521_v51, %v7411_v3  ;;  %v2129_v7 = vld [vmem:[%s9588_s0 + $0x3c] sm:$0xf]  ;;  %v7871_v38 = vld [vmem:[%s9588_s0 + $0x40] sm:$0xf]  ;;  %v1414_v22 = vpop.permute.xlu0 %1413 }
  0xcf   :  { %v2305_v49 = vld [vmem:[#allocation2 + $0x30] sm:$0xff]  ;;  %v2307_v26 = vld [vmem:[#allocation2 + $0x3c] sm:$0xff]  ;;  %1435 = vrot.lane.b32.xlu1 %v1379_v21, %s5840_s25  ;;  %v9644_v51 = vrot.slane %v7428_v30, 6  ;;  %v9645_v63 = vrot.slane %v7433_v6, 5  ;;  %v1115_v61 = vshll.u32 %v948_v56, 16  ;;  %v1122_v33 = vshrl.u32 %v949_v11, 16  ;;  %403 = vrot.lane.b32.xlu0 %v290_v27, %s5840_s25 }
  0xd0   :  { %v5707_v54 = vld [vmem:[#allocation2 + $0x34] ss:$12 sps:$4 sm:$0xff]   ;;  %v950_v2 = vld [vmem:[%s9588_s0 + $0x48] sm:$0xf]  ;;  %1482 = vst.msk [vmem:[#allocation2 + $0x4c] sm:$0xf] %vm446_vm9, %v1414_v22  ;;  %v5200_v30 = vcombine.low %v2305_v49, %v2307_v26 }
  0xd1   :  { %v1376_v3 = vsel %vm5913_vm3, %v7512_v13, %v9644_v51  ;;  %v7884_v47 = vsel %vm5923_vm5, %v7543_v19, %v9645_v63  ;;  %v9646_v21 = vrot.slane %v7464_v48, 5  ;;  %v1114_v13 = vrot.slane %v1112_v25, 5  ;;  %2776 = vmatprep.mubr.bf16.mxu0 %v5707_v54  ;;  %v1644_v19 = vpop.permute.xlu1 %1643  ;;  %v951_v54 = vld [vmem:[%s9588_s0 + $0x4c] sm:$0xf] }
  0xd2   :  { %v1125_v51 = vshll.u32 %v949_v11, 16  ;;  %v9647_v56 = vrot.slane %v7530_v53, 6  ;;  %v9648_v49 = vrot.slane %v7480_v43, 6  ;;  %v1124_v25 = vrot.slane %v1122_v33, 5  ;;  %2777 = vmatmul.mubr.bf16.gmra.mxu0 %v5200_v30  ;;  %1711 = vst.msk [vmem:[#allocation2 + $0x58] sm:$0xf] %vm678_vm10, %v1644_v19  ;;  %v616_v27 = vpop.permute.xlu0 %615 }
  0xd3   :  { %v581_v6 = vsel %vm5923_vm5, %v7538_v17, %v9646_v21  ;;  %v1117_v17 = vrot.slane %v1115_v61, 6  ;;  %v7912_v53 = vrot.slane %v337_v44, 5  ;;  %v2208_v43 = vrot.slane %v2206_v31, 4  ;;  %v2131_v44 = vld [vmem:[%s9588_s0 + $0x44] sm:$0xf]  ;;  %1433 = vrot.lane.b32.xlu0 %v1376_v3, %s5840_s25 }
  0xd4   :  { %v1607_v63 = vsel %vm5913_vm3, %v7636_v8, %v9647_v56  ;;  %v7906_v48 = vsel %vm5913_vm3, %v7604_v24, %v9648_v49  ;;  %v1127_v11 = vrot.slane %v1125_v51, 6  ;;  %v1110_v8 = vrot.slane %v7713_v40, 4  ;;  %637 = vrot.lane.b32.xlu1 %v581_v6, %s5841_s30  ;;  %v5718_v33 = vld [vmem:[#allocation2 + $0x80] ss:$12 sps:$4 sm:$0xff]   ;;  %685 = vst.msk [vmem:[#allocation2 + $0x48] sm:$0xf] %vm678_vm10, %v616_v27 }
  0xd5   :  { %v9649_v24 = vrot.slane %v7576_v62, 5  ;;  %v1118_v22 = vor.u32 %v1117_v17, %v1114_v13  ;;  %v2209_v26 = vrot.slane %v2129_v7, 7  ;;  %v2212_v30 = vrot.slane %v7871_v38, 7  ;;  %v7936_v7 = vld [vmem:[%s9588_s0 + $0x48] sm:$0xf]  ;;  %v847_v38 = vpop.permute.xlu1 %846  ;;  %5593 = vmatmul.mubr.msk.bf16.gmra.mxu1 %vm2688_vm7, %v5718_v33 }
  0xd6   :  { %v9650_v40 = vrot.slane %v7654_v59, 4  ;;  %v1128_v31 = vor.u32 %v1127_v11, %v1124_v25  ;;  %v1135_v21 = vshll.u32 %v950_v2, 16  ;;  %915 = vst.msk [vmem:[#allocation2 + $0x54] sm:$0xf] %vm907_vm12, %v847_v38  ;;  %5596 = vmatprep.mubr.msk.bf16.mxu1 %vm5844_vm0, %v9631_v18  ;;  %v1142_v49 = vshrl.u32 %v951_v54, 16  ;;  %v1642_v25 = vpop.permute.xlu0 %1641 }
  0xd7   :  { %v810_v61 = vsel %vm5923_vm5, %v7652_v14, %v9649_v24  ;;  %v1132_v14 = vshrl.u32 %v950_v2, 16  ;;  %v1120_v6 = vrot.slane %v1118_v22, 4  ;;  %v1119_v13 = vsel %vm6435_vm15, %v1110_v8, %v1118_v22  ;;  %v952_v2 = vld [vmem:[%s9588_s0 + $0x50] sm:$0xf]  ;;  %v953_v24 = vld [vmem:[%s9588_s0 + $0x54] sm:$0xf]  ;;  %635 = vrot.lane.b32.xlu0 %v7884_v47, %s5841_s30 }
  0xd8   :  { %v7931_v62 = vsel %vm6069_vm11, %v9650_v40, %v7798_v37  ;;  %v2210_v51 = vsel %vm6668_vm6, %v2208_v43, %v2209_v26  ;;  %v2211_v19 = vrot.slane %v2209_v26, 4  ;;  %1259 = vst.msk [vmem:[#allocation2 + $0xac] sm:$0xf] %vm62_vm13, %v1119_v13  ;;  %v1137_v56 = vrot.slane %v1135_v21, 6  ;;  %1663 = vrot.lane.b32.xlu1 %v1607_v63, %s5841_s30  ;;  %v56_v26 = vld [vmem:[%s9588_s0 + $0x4c] sm:$0xf] }
  0xd9   :  { %2284 = vst.msk [vmem:[#allocation2 + $0x98] sm:$0xf] %vm62_vm13, %v2210_v51  ;;  %v1134_v3 = vrot.slane %v1132_v14, 5  ;;  %v1145_v17 = vshll.u32 %v951_v54, 16  ;;  %v1129_v11 = vsel %vm6435_vm15, %v1120_v6, %v1128_v31  ;;  %v1130_v43 = vrot.slane %v1128_v31, 4 }
  0xda   :  { %v2213_v8 = vsel %vm6668_vm6, %v2211_v19, %v2212_v30  ;;  %v2214_v27 = vrot.slane %v2212_v30, 4  ;;  %1710 = vst.msk [vmem:[#allocation2 + $0x4c] sm:$0xf] %vm678_vm10, %v1642_v25  ;;  %v1144_v63 = vrot.slane %v1142_v49, 5  ;;  %v2215_v22 = vrot.slane %v2131_v44, 7  ;;  %v2031_v30 = vpop.permute.xlu1 %2030  ;;  %v845_v51 = vpop.permute.xlu0 %844 }
  0xdb   :  { %1260 = vst.msk [vmem:[#allocation2 + $0xb8] sm:$0xf] %vm62_vm13, %v1129_v11  ;;  %2285 = vst.msk [vmem:[#allocation2 + $0xa4] sm:$0xf] %vm62_vm13, %v2213_v8  ;;  %v1138_v54 = vor.u32 %v1137_v56, %v1134_v3  ;;  %v1147_v33 = vrot.slane %v1145_v17, 6  ;;  %v2218_v40 = vrot.slane %v7936_v7, 7  ;;  %1661 = vrot.lane.b32.xlu0 %v7906_v48, %s5841_s30 }
  0xdc   :  { %82 = vst.msk [vmem:[#allocation2 + $0xe4] sm:$0xf] %vm62_vm13, %v56_v26  ;;  %v1152_v31 = vshrl.u32 %v952_v2, 16  ;;  %v1155_v14 = vshll.u32 %v952_v2, 16  ;;  %v1162_v21 = vshrl.u32 %v953_v24, 16  ;;  %v2216_v47 = vsel %vm6668_vm6, %v2214_v27, %v2215_v22  ;;  %866 = vrot.lane.b32.xlu1 %v810_v61, %s5842_s13 }
  0xdd   :  { %v2133_v38 = vld [vmem:[%s9588_s0 + $0x4c] sm:$0xf]  ;;  %2098 = vst.msk [vmem:[#allocation2 + $0x58] sm:$0xf] %vm907_vm12, %v2031_v30  ;;  %v1140_v44 = vrot.slane %v1138_v54, 4  ;;  %v1148_v6 = vor.u32 %v1147_v33, %v1144_v63  ;;  %v1139_v13 = vsel %vm6435_vm15, %v1130_v43, %v1138_v54  ;;  %v2217_v19 = vrot.slane %v2215_v22, 4 }
  0xde   :  { %v55_v7 = vld [vmem:[%s9588_s0 + $0x48] sm:$0xf]  ;;  %1261 = vst.msk [vmem:[#allocation2 + $0xc4] sm:$0xf] %vm62_vm13, %v1139_v13  ;;  %2286 = vst.msk [vmem:[#allocation2 + $0xb0] sm:$0xf] %vm62_vm13, %v2216_v47  ;;  %v390_v27 = vpop.permute.xlu1 %389 }
  0xdf   :  { %81 = vst.msk [vmem:[#allocation2 + $0xd8] sm:$0xf] %vm62_vm13, %v55_v7  ;;  %v1154_v2 = vrot.slane %v1152_v31, 5  ;;  %v1157_v3 = vrot.slane %v1155_v14, 6  ;;  %v1164_v56 = vrot.slane %v1162_v21, 5  ;;  %v1149_v25 = vsel %vm6435_vm15, %v1140_v44, %v1148_v6  ;;  %v2029_v14 = vpop.permute.xlu0 %2028 }
  0xe0   :  { %v7988_v49 = vld [vmem:[%s9588_s0 + $0x50] sm:$0xf]  ;;  %914 = vst.msk [vmem:[#allocation2 + $0x48] sm:$0xf] %vm907_vm12, %v845_v51  ;;  %v7994_v61 = vld [vmem:[%s9588_s0 + $0x58] sm:$0xf]  ;;  %v2219_v54 = vsel %vm6668_vm6, %v2217_v19, %v2218_v40  ;;  %2050 = vrot.lane.b32.xlu1 %v7931_v62, %s5842_s13 }
  0xe1   :  { %v7999_v17 = vld [vmem:[%s9588_s0 + $0x5c] sm:$0xf]  ;;  %v1165_v11 = vshll.u32 %v953_v24, 16  ;;  %v1150_v8 = vrot.slane %v1148_v6, 4  ;;  %v2220_v43 = vrot.slane %v2218_v40, 4  ;;  %v1158_v63 = vor.u32 %v1157_v3, %v1154_v2 }
  0xe2   :  { %1262 = vst.msk [vmem:[#allocation2 + $0xd0] sm:$0xf] %vm62_vm13, %v1149_v25  ;;  %v2221_v33 = vrot.slane %v2133_v38, 7  ;;  %v2224_v22 = vrot.slane %v7988_v49, 7  ;;  %v9651_v26 = vrot.slane %v7517_v52, 5  ;;  %v9652_v48 = vshrl.u32 %v7609_v1, 16  ;;  %v1420_v6 = vpop.permute.xlu1 %1419 }
  0xe3   :  { %456 = vst.msk [vmem:[#allocation2 + $0x6c] sm:$0xf] %vm446_vm9, %v390_v27  ;;  %v1167_v31 = vrot.slane %v1165_v11, 6  ;;  %v5721_v40 = vld [vmem:[#allocation2 + $0x98] ss:$12 sps:$4 sm:$0xff]   ;;  %v1160_v21 = vrot.slane %v1158_v63, 4  ;;  %v1159_v38 = vsel %vm6435_vm15, %v1150_v8, %v1158_v63  ;;  %v320_v1 = vsel %vm5992_vm8, %v7746_v39, %v7719_v15  ;;  %v388_v2 = vpop.permute.xlu0 %387 }
  0xe4   :  { %v807_v24 = vsel %vm5923_vm5, %v7641_v16, %v9651_v26  ;;  %v323_v30 = vrot.slane %v9652_v48, 4  ;;  %2287 = vst.msk [vmem:[#allocation2 + $0xbc] sm:$0xf] %vm62_vm13, %v2219_v54  ;;  %v2222_v52 = vsel %vm6668_vm6, %v2220_v43, %v2221_v33  ;;  %v2223_v44 = vrot.slane %v2221_v33, 4  ;;  %v8032_v16 = vld [vmem:[%s9588_s0 + $0x54] sm:$0xf]  ;;  %5597 = vmatmul.mubr.msk.bf16.gmra.mxu1 %vm2688_vm7, %v5721_v40  ;;  %409 = vrot.lane.b32.xlu1 %v320_v1, %s5840_s25 }
  0xe5   :  { %2097 = vst.msk [vmem:[#allocation2 + $0x4c] sm:$0xf] %vm907_vm12, %v2029_v14  ;;  %v8034_v62 = vor.u32 %v1167_v31, %v1164_v56  ;;  %864 = vrot.lane.b32.xlu0 %v807_v24, %s5842_s13  ;;  %v1387_v13 = vrot.slane %v7994_v61, 6  ;;  %v1390_v47 = vrot.slane %v7999_v17, 6  ;;  %v9653_v7 = vrot.slane %v7599_v41, 4  ;;  %5600 = vmatprep.mubr.msk.bf16.mxu1 %vm5844_vm0, %v9631_v18  ;;  %v2311_v56 = vld [vmem:[#allocation2 + $0x54] sm:$0xff] }
  0xe6   :  { %1263 = vst.msk [vmem:[#allocation2 + $0xdc] sm:$0xf] %vm62_vm13, %v1159_v38  ;;  %2288 = vst.msk [vmem:[#allocation2 + $0xc8] sm:$0xf] %vm62_vm13, %v2222_v52  ;;  %v2225_v39 = vsel %vm6668_vm6, %v2223_v44, %v2224_v22  ;;  %v9654_v41 = vrot.slane %v7672_v46, 6  ;;  %v622_v3 = vpop.permute.xlu1 %621  ;;  %v334_v25 = vor.u32 %v7863_v34, %v7855_v12  ;;  %v324_v11 = vor.u32 %v323_v30, %v7719_v15  ;;  %v9655_v33 = vld [vmem:[#allocation14_spill] sm:$0xff] }
  0xe7   :  { %1485 = vst.msk [vmem:[#allocation2 + $0x70] sm:$0xf] %vm446_vm9, %v1420_v6  ;;  %v1935_v51 = vsel %vm6069_vm11, %v9653_v7, %v7654_v59  ;;  %v1169_v19 = vsel %vm6435_vm15, %v1160_v21, %v8034_v62  ;;  %455 = vst.msk [vmem:[#allocation2 + $0x60] sm:$0xf] %vm446_vm9, %v388_v2  ;;  %v589_v8 = vrot.slane %v8032_v16, 5  ;;  %v310_v43 = vsel %vm5992_vm8, %v7722_v29, %v7656_v32  ;;  %v9657_v30 = vld [vmem:[#allocation12_spill] sm:$0xff] }
  0xe8   :  { %2289 = vst.msk [vmem:[#allocation2 + $0xd4] sm:$0xf] %vm62_vm13, %v2225_v39  ;;  %1264 = vst.msk [vmem:[#allocation2 + $0xe8] sm:$0xf] %vm62_vm13, %v1169_v19  ;;  %v1385_v59 = vsel %vm5913_vm3, %v7750_v58, %v9654_v41  ;;  %v1418_v58 = vpop.permute.xlu0 %1417  ;;  %v8079_v34 = vrot.slane %v1387_v13, 4  ;;  %v9656_v26 = vrot.slane %v9655_v33, 5 }
  0xe9   :  { %2048 = vrot.lane.b32.xlu0 %v1935_v51, %s5842_s13  ;;  %688 = vst.msk [vmem:[#allocation2 + $0x6c] sm:$0xf] %vm678_vm10, %v622_v3  ;;  %1439 = vrot.lane.b32.xlu1 %v1385_v59, %s5840_s25  ;;  %v8088_v32 = vrot.slane %v334_v25, 4  ;;  %v8090_v48 = vrot.slane %v324_v11, 4  ;;  %v9658_v31 = vrot.slane %v9657_v30, 6  ;;  %v9659_v14 = vld [vmem:[#allocation16_spill] sm:$0xff]  ;;  %v8126_v59 = vor.u32 %v7834_v35, %v7832_v4 }
  0xea   :  { %1484 = vst.msk [vmem:[#allocation2 + $0x64] sm:$0xf] %vm446_vm9, %v1418_v58  ;;  %v587_v24 = vsel %vm5923_vm5, %v7783_v23, %v9656_v26  ;;  %v1648_v29 = vpop.permute.xlu1 %1647  ;;  %v9660_v21 = vrot.slane %v7706_v45, 6  ;;  %v954_v1 = vld [vmem:[%s9588_s0 + $0x58] sm:$0xf] }
  0xeb   :  { %v5724_v27 = vld [vmem:[#allocation2 + $0xb0] ss:$12 sps:$4 sm:$0xff]   ;;  %1713 = vst.msk [vmem:[#allocation2 + $0x70] sm:$0xf] %vm678_vm10, %v1648_v29  ;;  %v1382_v40 = vsel %vm5913_vm3, %v9659_v14, %v9658_v31  ;;  %v1172_v51 = vshrl.u32 %v954_v1, 16  ;;  %v1175_v19 = vshll.u32 %v954_v1, 16 }
  0xec   :  { %v2309_v54 = vld [vmem:[#allocation2 + $0x48] sm:$0xff]  ;;  %5601 = vmatmul.mubr.msk.bf16.gmra.mxu1 %vm2688_vm7, %v5724_v27  ;;  %v620_v23 = vpop.permute.xlu0 %619  ;;  %v1613_v38 = vsel %vm5913_vm3, %v7816_v36, %v9660_v21  ;;  %v9661_v6 = vld [vmem:[#allocation13_spill] sm:$0xff]  ;;  %v9663_v36 = vrot.slane %v7770_v55, 5  ;;  %v9664_v27 = vrot.slane %v7697_v60, 6  ;;  %v58_v35 = vld [vmem:[%s9588_s0 + $0x54] sm:$0xf] }
  0xed   :  { %v5710_v63 = vld [vmem:[#allocation2 + $0x4c] ss:$12 sps:$4 sm:$0xff]   ;;  %v5203_v15 = vcombine.low %v2309_v54, %v2311_v56  ;;  %407 = vrot.lane.b32.xlu0 %v310_v43, %s5840_s25  ;;  %641 = vrot.lane.b32.xlu1 %v587_v24, %s5841_s30  ;;  %687 = vst.msk [vmem:[#allocation2 + $0x60] sm:$0xf] %vm678_vm10, %v620_v23  ;;  %v9662_v39 = vrot.slane %v9661_v6, 5  ;;  %v1177_v56 = vrot.slane %v1175_v19, 6 }
  0xee   :  { %2784 = vmatprep.mubr.bf16.mxu0 %v5710_v63  ;;  %5604 = vmatprep.mubr.msk.bf16.mxu1 %vm5844_vm0, %v9631_v18  ;;  %v851_v44 = vpop.permute.xlu1 %850  ;;  %v816_v41 = vsel %vm5923_vm5, %v7823_v50, %v9663_v36  ;;  %v955_v3 = vld [vmem:[%s9588_s0 + $0x5c] sm:$0xf]  ;;  %v2135_v58 = vld [vmem:[%s9588_s0 + $0x54] sm:$0xf]  ;;  %84 = vst.msk [vmem:[#allocation2 + $0xfc] sm:$0xf] %vm62_vm13, %v58_v35 }
  0xef   :  { %2785 = vmatmul.mubr.bf16.gmra.mxu0 %v5203_v15  ;;  %v5727_v52 = vld [vmem:[#allocation2 + $0xc8] ss:$12 sps:$4 sm:$0xff]   ;;  %917 = vst.msk [vmem:[#allocation2 + $0x6c] sm:$0xf] %vm907_vm12, %v851_v44  ;;  %v584_v7 = vsel %vm5923_vm5, %v7787_v10, %v9662_v39  ;;  %v1174_v10 = vrot.slane %v1172_v51, 5  ;;  %v1182_v25 = vshrl.u32 %v955_v3, 16 }
  0xf0   :  { %v1646_v2 = vpop.permute.xlu0 %1645  ;;  %v1185_v11 = vshll.u32 %v955_v3, 16  ;;  %v9665_v50 = vld [vmem:[#allocation17_spill] sm:$0xff]  ;;  %v57_v60 = vld [vmem:[%s9588_s0 + $0x50] sm:$0xf]  ;;  %v2227_v26 = vrot.slane %v2135_v58, 7  ;;  %v9666_v29 = vrot.slane %v7804_v20, 4  ;;  %v340_v3 = vsel %vm5992_vm8, %v8088_v32, %v7912_v53 }
  0xf1   :  { %1437 = vrot.lane.b32.xlu0 %v1382_v40, %s5840_s25  ;;  %1667 = vrot.lane.b32.xlu1 %v1613_v38, %s5841_s30  ;;  %1712 = vst.msk [vmem:[#allocation2 + $0x64] sm:$0xf] %vm678_vm10, %v1646_v2  ;;  %v1610_v4 = vsel %vm5913_vm3, %v9665_v50, %v9664_v27  ;;  %v1178_v54 = vor.u32 %v1177_v56, %v1174_v10  ;;  %v1184_v63 = vrot.slane %v1182_v25, 5  ;;  %v8162_v31 = vld [vmem:[%s9588_s0 + $0x58] sm:$0xf]  ;;  %v1170_v21 = vrot.slane %v8034_v62, 4 }
  0xf2   :  { %v2035_v43 = vpop.permute.xlu1 %2034  ;;  %v1187_v15 = vrot.slane %v1185_v11, 6  ;;  %v1965_v30 = vsel %vm6069_vm11, %v9666_v29, %v8126_v59  ;;  %83 = vst.msk [vmem:[#allocation2 + $0xf0] sm:$0xf] %vm62_vm13, %v57_v60  ;;  %v1750_v14 = vld [vmem:[%s9588_s0 + $0x5c] sm:$0xf]  ;;  %v2226_v38 = vrot.slane %v2224_v22, 4  ;;  %v1391_v58 = vsel %vm5913_vm3, %v8079_v34, %v1390_v47 }
  0xf3   :  { %2100 = vst.msk [vmem:[#allocation2 + $0x70] sm:$0xf] %vm907_vm12, %v2035_v43  ;;  %v1180_v40 = vrot.slane %v1178_v54, 4  ;;  %v2229_v44 = vrot.slane %v2227_v26, 4  ;;  %v2230_v1 = vrot.slane %v8162_v31, 7  ;;  %v9667_v6 = vld [vmem:[#allocation15_spill] sm:$0xff]  ;;  %v1179_v49 = vsel %vm6435_vm15, %v1170_v21, %v1178_v54 }
  0xf4   :  { %5605 = vmatmul.mubr.msk.bf16.gmra.mxu1 %vm2688_vm7, %v5727_v52  ;;  %v849_v24 = vpop.permute.xlu0 %848  ;;  %v8168_v23 = vor.u32 %v1187_v15, %v1184_v63  ;;  %v9668_v39 = vrot.slane %v9667_v6, 5  ;;  %v2228_v22 = vsel %vm6668_vm6, %v2226_v38, %v2227_v26  ;;  %v8192_v2 = vld [vmem:[%s9588_s0 + $0x58] sm:$0xf]  ;;  %v8197_v36 = vld [vmem:[%s9588_s0 + $0x5c] sm:$0xf]  ;;  %v1968_v11 = vshrl.u32 %v1750_v14, 16 }
  0xf5   :  { %639 = vrot.lane.b32.xlu0 %v584_v7, %s5841_s30  ;;  %870 = vrot.lane.b32.xlu1 %v816_v41, %s5842_s13  ;;  %916 = vst.msk [vmem:[#allocation2 + $0x60] sm:$0xf] %vm907_vm12, %v849_v24  ;;  %v9669_v7 = vld [vmem:[#allocation19_spill] sm:$0xff]  ;;  %v2231_v41 = vsel %vm6668_vm6, %v2229_v44, %v2230_v1  ;;  %v8214_v10 = vld [vmem:[%s9588_s0 + $0x58] sm:$0xf]  ;;  %v1971_v43 = vshll.u32 %v1750_v14, 16 }
  0xf6   :  { %5608 = vmatprep.mubr.msk.bf16.mxu1 %vm5844_vm0, %v9631_v18  ;;  %v394_v52 = vpop.permute.xlu1 %393  ;;  %v813_v51 = vsel %vm5923_vm5, %v9669_v7, %v9668_v39  ;;  %v1189_v62 = vsel %vm6435_vm15, %v1180_v40, %v8168_v23  ;;  %1265 = vst.msk [vmem:[#allocation2 + $0xf4] sm:$0xf] %vm62_vm13, %v1179_v49  ;;  %2290 = vst.msk [vmem:[#allocation2 + $0xe0] sm:$0xf] %vm62_vm13, %v2228_v22  ;;  %v1751_v56 = vld [vmem:[%s9588_s0 + $0x60] sm:$0xf] }
  0xf7   :  { %458 = vst.msk [vmem:[#allocation2 + $0x84] sm:$0xf] %vm446_vm9, %v394_v52  ;;  %v111_v32 = vld [vmem:[%s9588_s0 + $0x5c] sm:$0xf]  ;;  %v9670_v27 = vrot.slane %v7798_v37, 4  ;;  %v591_v37 = vrot.slane %v589_v8, 4 }
  0xf8   :  { %v2033_v19 = vpop.permute.xlu0 %2032  ;;  %1266 = vst.msk [vmem:[#allocation2 + $0x100] sm:$0xf] %vm62_vm13, %v1189_v62  ;;  %2291 = vst.msk [vmem:[#allocation2 + $0xec] sm:$0xf] %vm62_vm13, %v2231_v41  ;;  %v8234_v35 = vld [vmem:[%s9588_s0 + $0x60] sm:$0xf] }
  0xf9   :  { %1665 = vrot.lane.b32.xlu0 %v1610_v4, %s5841_s30  ;;  %2054 = vrot.lane.b32.xlu1 %v1965_v30, %s5842_s13  ;;  %2099 = vst.msk [vmem:[#allocation2 + $0x64] sm:$0xf] %vm907_vm12, %v2033_v19  ;;  %v1955_v50 = vsel %vm6069_vm11, %v9670_v27, %v7804_v20  ;;  %v592_v20 = vrot.slane %v8192_v2, 5  ;;  %v1615_v60 = vrot.slane %v8197_v36, 6 }
  0xfa   :  { %v1424_v25 = vpop.permute.xlu1 %1423 }
  0xfb   :  { %1487 = vst.msk [vmem:[#allocation2 + $0x88] sm:$0xf] %vm446_vm9, %v1424_v25 }
  0xfc   :  { %v392_v4 = vpop.permute.xlu0 %391 }
  0xfd   :  { %868 = vrot.lane.b32.xlu0 %v813_v51, %s5842_s13  ;;  %413 = vrot.lane.b32.xlu1 %v340_v3, %s5840_s25  ;;  %457 = vst.msk [vmem:[#allocation2 + $0x78] sm:$0xf] %vm446_vm9, %v392_v4 }
  0xfe   :  { %15 = vsyncpa [#allocation10], 0  ;;  %v626_v54 = vpop.permute.xlu1 %625  ;;  %v9671_v63 = vrot.slane %v7672_v46, 6  ;;  %v8252_v26 = vld [vmem:[%s9588_s0 + $0x5c] sm:$0xf]  ;;  %v818_v34 = vrot.slane %v8214_v10, 5  ;;  %v330_v30 = vsel %vm5992_vm8, %v8090_v48, %v7855_v12  ;;  %v593_v7 = vsel %vm5923_vm5, %v591_v37, %v592_v20 }
  0xff   :  { %v1978_v24 = vshrl.u32 %v1751_v56, 16  ;;  %v1981_v29 = vshll.u32 %v1751_v56, 16  ;;  %690 = vst.msk [vmem:[#allocation2 + $0x84] sm:$0xf] %vm678_vm10, %v626_v54  ;;  %v2315_v14 = vld [vmem:[#allocation2 + $0x6c] sm:$0xff]  ;;  %v1970_v40 = vrot.slane %v1968_v11, 6 }
 0x100   :  { %v1386_v15 = vrot.slane %v9671_v63, 4  ;;  %v1973_v46 = vrot.slane %v1971_v43, 7  ;;  %v347_v21 = vshll.u32 %v111_v32, 16  ;;  %v1422_v38 = vpop.permute.xlu0 %1421  ;;  %v2313_v52 = vld [vmem:[#allocation2 + $0x60] sm:$0xff]  ;;  %v351_v6 = vshrl.u32 %v111_v32, 16  ;;  %v5794_v5 = vld [vmem:[%s9594_s6 + $0x38] sm:$0xff]  }
 0x101   :  { %2052 = vrot.lane.b32.xlu0 %v1955_v50, %s5842_s13  ;;  %v5713_v44 = vld [vmem:[#allocation2 + $0x64] ss:$12 sps:$4 sm:$0xff]   ;;  %1443 = vrot.lane.b32.xlu1 %v1391_v58, %s5840_s25  ;;  %1486 = vst.msk [vmem:[#allocation2 + $0x7c] sm:$0xf] %vm446_vm9, %v1422_v38  ;;  %v5206_v39 = vcombine.low %v2313_v52, %v2315_v14  ;;  %v1617_v12 = vrot.slane %v1615_v60, 4  ;;  %v1618_v48 = vrot.slane %v8234_v35, 6 }
 0x102   :  { %v5730_v51 = vld [vmem:[#allocation2 + $0xe0] ss:$12 sps:$4 sm:$0xff]   ;;  %2792 = vmatprep.mubr.bf16.mxu0 %v5713_v44  ;;  %v1652_v62 = vpop.permute.xlu1 %1651  ;;  %v1388_v49 = vsel %vm5913_vm3, %v1386_v15, %v1387_v13  ;;  %v9672_v22 = vrot.slane %v9655_v33, 5  ;;  %v820_v41 = vrot.slane %v818_v34, 4  ;;  %v821_v3 = vrot.slane %v8252_v26, 5  ;;  %s5848_s16 = smov [#allocation9]  }
 0x103   :  { %2793 = vmatmul.mubr.bf16.gmra.mxu0 %v5206_v39  ;;  %1715 = vst.msk [vmem:[#allocation2 + $0x88] sm:$0xf] %vm678_vm10, %v1652_v62  ;;  %v1980_v56 = vrot.slane %v1978_v24, 6  ;;  %5609 = vmatmul.mubr.msk.bf16.gmra.mxu1 %vm2688_vm7, %v5730_v51  ;;  %v8282_v61 = vor.u32 %v1973_v46, %v1970_v40  ;;  %v1983_v13 = vrot.slane %v1981_v29, 7  ;;  %v8284_v11 = vrot.slane %v347_v21, 5  ;;  %v9673_v27 = vld [vmem:[#allocation18_spill] sm:$0xff] }
 0x104   :  { %v588_v19 = vrot.slane %v9672_v22, 4  ;;  %v624_v25 = vpop.permute.xlu0 %623  ;;  %v353_v43 = vrot.slane %v351_v6, 4  ;;  %5612 = vmatprep.mubr.msk.bf16.mxu1 %vm5844_vm0, %v9631_v18  ;;  %v1619_v33 = vsel %vm5913_vm3, %v1617_v12, %v1618_v48  ;;  %v8296_v32 = vld [vmem:[%s9588_s0 + $0x60] sm:$0xf]  ;;  %v341_v50 = vshrl.u32 %v9673_v27, 16  ;;  %v5797_v28 = vld [vmem:[%s9594_s6 + $0x68] sm:$0xff]  }
 0x105   :  { %411 = vrot.lane.b32.xlu0 %v330_v30, %s5840_s25  ;;  %645 = vrot.lane.b32.xlu1 %v593_v7, %s5841_s30  ;;  %689 = vst.msk [vmem:[#allocation2 + $0x78] sm:$0xf] %vm678_vm10, %v624_v25  ;;  %v9674_v58 = vrot.slane %v7706_v45, 6  ;;  %v956_v54 = vld [vmem:[%s9588_s0 + $0x60] sm:$0xf]  ;;  %v822_v15 = vsel %vm5923_vm5, %v820_v41, %v821_v3  ;;  %v1976_v30 = vrot.slane %v8282_v61, 4  ;;  %v8316_v14 = vor.u32 %v1983_v13, %v1980_v56 }
 0x106   :  { %v855_v4 = vpop.permute.xlu1 %854  ;;  %v590_v63 = vsel %vm5923_vm5, %v588_v19, %v589_v8  ;;  %v1192_v24 = vshrl.u32 %v956_v54, 16  ;;  %v1195_v29 = vshll.u32 %v956_v54, 16  ;;  %v354_v40 = vor.u32 %v353_v43, %v8284_v11  ;;  %v957_v8 = vld [vmem:[%s9588_s0 + $0x64] sm:$0xf]  ;;  %v8327_v46 = vld [vmem:[%s9588_s0 + $0x60] sm:$0xf] }
 0x107   :  { %v1614_v37 = vrot.slane %v9674_v58, 4  ;;  %919 = vst.msk [vmem:[#allocation2 + $0x84] sm:$0xf] %vm907_vm12, %v855_v4  ;;  %v357_v16 = vshll.u32 %v8296_v32, 16  ;;  %v1202_v52 = vshrl.u32 %v957_v8, 16  ;;  %v1205_v44 = vshll.u32 %v957_v8, 16 }
 0x108   :  { %v1650_v45 = vpop.permute.xlu0 %1649  ;;  %v1194_v21 = vrot.slane %v1192_v24, 5  ;;  %v1197_v38 = vrot.slane %v1195_v29, 6  ;;  %v9675_v7 = vrot.slane %v7770_v55, 5  ;;  %v343_v51 = vrot.slane %v341_v50, 4  ;;  %v60_v62 = vld [vmem:[%s9588_s0 + $0x5c] sm:$0xf] }
 0x109   :  { %1441 = vrot.lane.b32.xlu0 %v1388_v49, %s5840_s25  ;;  %1671 = vrot.lane.b32.xlu1 %v1619_v33, %s5841_s30  ;;  %1714 = vst.msk [vmem:[#allocation2 + $0x7c] sm:$0xf] %vm678_vm10, %v1650_v45  ;;  %v1616_v39 = vsel %vm5913_vm3, %v1614_v37, %v1615_v60  ;;  %v2137_v49 = vld [vmem:[%s9588_s0 + $0x5c] sm:$0xf]  ;;  %v59_v36 = vld [vmem:[%s9588_s0 + $0x58] sm:$0xf]  ;;  %v1985_v56 = vsel %vm6069_vm11, %v1976_v30, %v8316_v14 }
 0x10a   :  { %v2039_v6 = vpop.permute.xlu1 %2038  ;;  %v817_v12 = vrot.slane %v9675_v7, 4  ;;  %86 = vst.msk [vmem:[#allocation2 + $0x114] sm:$0xf] %vm62_vm13, %v60_v62  ;;  %v1198_v60 = vor.u32 %v1197_v38, %v1194_v21  ;;  %v1204_v55 = vrot.slane %v1202_v52, 5  ;;  %v1207_v22 = vrot.slane %v1205_v44, 6 }
 0x10b   :  { %2102 = vst.msk [vmem:[#allocation2 + $0x88] sm:$0xf] %vm907_vm12, %v2039_v6  ;;  %v2233_v19 = vrot.slane %v2137_v49, 7  ;;  %v355_v25 = vrot.slane %v354_v40, 4  ;;  %v8351_v13 = vrot.slane %v357_v16, 5  ;;  %v1393_v43 = vrot.slane %v8327_v46, 6 }
 0x10c   :  { %v853_v41 = vpop.permute.xlu0 %852  ;;  %85 = vst.msk [vmem:[#allocation2 + $0x108] sm:$0xf] %vm62_vm13, %v59_v36  ;;  %v8358_v33 = vld [vmem:[%s9588_s0 + $0x60] sm:$0xf]  ;;  %v8364_v27 = vld [vmem:[%s9588_s0 + $0x5c] sm:$0xf]  ;;  %v8366_v4 = vor.u32 %v1207_v22, %v1204_v55  ;;  %v344_v31 = vor.u32 %v343_v51, %v7912_v53 }
 0x10d   :  { %643 = vrot.lane.b32.xlu0 %v590_v63, %s5841_s30  ;;  %874 = vrot.lane.b32.xlu1 %v822_v15, %s5842_s13  ;;  %918 = vst.msk [vmem:[#allocation2 + $0x78] sm:$0xf] %vm907_vm12, %v853_v41  ;;  %v1200_v50 = vrot.slane %v1198_v60, 4  ;;  %v1190_v58 = vrot.slane %v8168_v23, 4  ;;  %v2232_v37 = vrot.slane %v2230_v1, 4  ;;  %v819_v63 = vsel %vm5923_vm5, %v817_v12, %v818_v34 }
 0x10e   :  { %v398_v54 = vpop.permute.xlu1 %397  ;;  %v1966_v15 = vrot.slane %v8126_v59, 4  ;;  %v8380_v24 = vld [vmem:[%s9588_s0 + $0x64] sm:$0xf]  ;;  %v2235_v29 = vrot.slane %v2233_v19, 4  ;;  %v2236_v23 = vrot.slane %v8358_v33, 7  ;;  %v595_v45 = vrot.slane %v8364_v27, 5 }
 0x10f   :  { %460 = vst.msk [vmem:[#allocation2 + $0x9c] sm:$0xf] %vm446_vm9, %v398_v54  ;;  %v1209_v1 = vsel %vm6435_vm15, %v1200_v50, %v8366_v4  ;;  %v1199_v10 = vsel %vm6435_vm15, %v1190_v58, %v1198_v60  ;;  %v2234_v59 = vsel %vm6668_vm6, %v2232_v37, %v2233_v19  ;;  %v8397_v30 = vld [vmem:[%s9588_s0 + $0x64] sm:$0xf]  ;;  %v360_v40 = vsel %vm5992_vm8, %v355_v25, %v8351_v13  ;;  %v8416_v21 = vld [vmem:[%s9588_s0 + $0x60] sm:$0xf] }
 0x110   :  { %v2037_v34 = vpop.permute.xlu0 %2036  ;;  %1268 = vst.msk [vmem:[#allocation2 + $0x118] sm:$0xf] %vm62_vm13, %v1209_v1  ;;  %1267 = vst.msk [vmem:[#allocation2 + $0x10c] sm:$0xf] %vm62_vm13, %v1199_v10  ;;  %v2237_v53 = vsel %vm6668_vm6, %v2235_v29, %v2236_v23  ;;  %v1395_v16 = vrot.slane %v1393_v43, 4  ;;  %v1396_v8 = vrot.slane %v8380_v24, 6  ;;  %v1975_v44 = vsel %vm6069_vm11, %v1966_v15, %v8282_v61 }
 0x111   :  { %1669 = vrot.lane.b32.xlu0 %v1616_v39, %s5841_s30  ;;  %2058 = vrot.lane.b32.xlu1 %v1985_v56, %s5842_s13  ;;  %2292 = vst.msk [vmem:[#allocation2 + $0xf8] sm:$0xf] %vm62_vm13, %v2234_v59  ;;  %2293 = vst.msk [vmem:[#allocation2 + $0x104] sm:$0xf] %vm62_vm13, %v2237_v53  ;;  %v1752_v52 = vld [vmem:[%s9588_s0 + $0x64] sm:$0xf] }
 0x112   :  { %2101 = vst.msk [vmem:[#allocation2 + $0x7c] sm:$0xf] %vm907_vm12, %v2037_v34  ;;  %v1428_v38 = vpop.permute.xlu1 %1427  ;;  %v345_v6 = vrot.slane %v344_v31, 4  ;;  %v1621_v39 = vrot.slane %v8397_v30, 6  ;;  %v597_v12 = vrot.slane %v595_v45, 4  ;;  %v598_v51 = vrot.slane %v8416_v21, 5 }
 0x113   :  { %1489 = vst.msk [vmem:[#allocation2 + $0xa0] sm:$0xf] %vm446_vm9, %v1428_v38  ;;  %v8435_v62 = vld [vmem:[%s9588_s0 + $0x68] sm:$0xf]  ;;  %v8440_v61 = vld [vmem:[%s9588_s0 + $0x60] sm:$0xf]  ;;  %v1397_v49 = vsel %vm5913_vm3, %v1395_v16, %v1396_v8 }
 0x114   :  { %v396_v7 = vpop.permute.xlu0 %395  ;;  %v1753_v36 = vld [vmem:[%s9588_s0 + $0x68] sm:$0xf]  ;;  %v1988_v60 = vshrl.u32 %v1752_v52, 16  ;;  %v1991_v55 = vshll.u32 %v1752_v52, 16  ;;  %v1392_v19 = vrot.slane %v1390_v47, 4  ;;  %v350_v41 = vsel %vm5992_vm8, %v345_v6, %v8284_v11 }
 0x115   :  { %872 = vrot.lane.b32.xlu0 %v819_v63, %s5842_s13  ;;  %417 = vrot.lane.b32.xlu1 %v360_v40, %s5840_s25  ;;  %459 = vst.msk [vmem:[#allocation2 + $0x90] sm:$0xf] %vm446_vm9, %v396_v7  ;;  %v2319_v56 = vld [vmem:[#allocation2 + $0x84] sm:$0xff]  ;;  %v1623_v25 = vrot.slane %v1621_v39, 4  ;;  %v1624_v50 = vrot.slane %v8435_v62, 6  ;;  %v824_v17 = vrot.slane %v8440_v61, 5  ;;  %v599_v11 = vsel %vm5923_vm5, %v597_v12, %v598_v51 }
 0x116   :  { %v630_v22 = vpop.permute.xlu1 %629  ;;  %v8463_v58 = vld [vmem:[%s9588_s0 + $0x64] sm:$0xf]  ;;  %v1998_v63 = vshrl.u32 %v1753_v36, 16  ;;  %v1990_v29 = vrot.slane %v1988_v60, 6  ;;  %v1993_v31 = vrot.slane %v1991_v55, 7  ;;  %v2001_v1 = vshll.u32 %v1753_v36, 16 }
 0x117   :  { %692 = vst.msk [vmem:[#allocation2 + $0x9c] sm:$0xf] %vm678_vm10, %v630_v22  ;;  %v594_v34 = vrot.slane %v592_v20, 4  ;;  %v1394_v53 = vsel %vm5913_vm3, %v1392_v19, %v1393_v43  ;;  %v1625_v16 = vsel %vm5913_vm3, %v1623_v25, %v1624_v50  ;;  %v826_v2 = vrot.slane %v824_v17, 4  ;;  %v2139_v46 = vld [vmem:[%s9588_s0 + $0x64] sm:$0xf] }
 0x118   :  { %v1426_v47 = vpop.permute.xlu0 %1425  ;;  %v5733_v10 = vld [vmem:[#allocation2 + $0xf8] ss:$12 sps:$4 sm:$0xff]   ;;  %v827_v20 = vrot.slane %v8463_v58, 5  ;;  %v1994_v43 = vor.u32 %v1993_v31, %v1990_v29  ;;  %v2000_v38 = vrot.slane %v1998_v63, 6  ;;  %v2003_v52 = vrot.slane %v2001_v1, 7 }
 0x119   :  { %2056 = vrot.lane.b32.xlu0 %v1975_v44, %s5842_s13  ;;  %v2317_v37 = vld [vmem:[#allocation2 + $0x78] sm:$0xff]  ;;  %1447 = vrot.lane.b32.xlu1 %v1397_v49, %s5840_s25  ;;  %1488 = vst.msk [vmem:[#allocation2 + $0x94] sm:$0xf] %vm446_vm9, %v1426_v47  ;;  %v2239_v44 = vrot.slane %v2139_v46, 7  ;;  %v596_v7 = vsel %vm5923_vm5, %v594_v34, %v595_v45  ;;  %v8503_v12 = vld [vmem:[%s9588_s0 + $0x68] sm:$0xf] }
 0x11a   :  { %v5716_v54 = vld [vmem:[#allocation2 + $0x7c] ss:$12 sps:$4 sm:$0xff]   ;;  %v5209_v15 = vcombine.low %v2317_v37, %v2319_v56  ;;  %v1656_v59 = vpop.permute.xlu1 %1655  ;;  %5613 = vmatmul.mubr.msk.bf16.gmra.mxu1 %vm2688_vm7, %v5733_v10  ;;  %v1620_v49 = vrot.slane %v1618_v48, 4  ;;  %v2238_v36 = vrot.slane %v2236_v23, 4  ;;  %v2242_v55 = vrot.slane %v8503_v12, 7 }
 0x11b   :  { %2800 = vmatprep.mubr.bf16.mxu0 %v5716_v54  ;;  %1717 = vst.msk [vmem:[#allocation2 + $0xa0] sm:$0xf] %vm678_vm10, %v1656_v59  ;;  %5616 = vmatprep.mubr.msk.bf16.mxu1 %vm5844_vm0, %v9631_v18  ;;  %v2241_v60 = vrot.slane %v2239_v44, 4  ;;  %v828_v45 = vsel %vm5923_vm5, %v826_v2, %v827_v20  ;;  %v1996_v22 = vrot.slane %v1994_v43, 4  ;;  %v8517_v19 = vor.u32 %v2003_v52, %v2000_v38  ;;  %v1526_v24 = vld [vmem:[%s9588_s0 + $0x6c] sm:$0x3] }
 0x11c   :  { %2801 = vmatmul.mubr.bf16.gmra.mxu0 %v5209_v15  ;;  %v628_v40 = vpop.permute.xlu0 %627  ;;  %v2240_v35 = vsel %vm6668_vm6, %v2238_v36, %v2239_v44  ;;  %v1622_v23 = vsel %vm5913_vm3, %v1620_v49, %v1621_v39  ;;  %v2141_v57 = vld [vmem:[%s9588_s0 + $0x6c] sm:$0x7]  ;;  %vm3270_vm14 = vcmask 318464   ;;  %vm3769_vm1 = vsmask.f32 4368 }
 0x11d   :  { %415 = vrot.lane.b32.xlu0 %v350_v41, %s5840_s25  ;;  %649 = vrot.lane.b32.xlu1 %v599_v11, %s5841_s30  ;;  %691 = vst.msk [vmem:[#allocation2 + $0x90] sm:$0xf] %vm678_vm10, %v628_v40  ;;  %v2243_v48 = vsel %vm6668_vm6, %v2241_v60, %v2242_v55  ;;  %v823_v41 = vrot.slane %v821_v3, 4  ;;  %v2005_v25 = vsel %vm6069_vm11, %v1996_v22, %v8517_v19  ;;  %v1986_v3 = vrot.slane %v8316_v14, 4 }
 0x11e   :  { %v859_v6 = vpop.permute.xlu1 %858  ;;  %2294 = vst.msk [vmem:[#allocation2 + $0x110] sm:$0xf] %vm62_vm13, %v2240_v35  ;;  %2295 = vst.msk [vmem:[#allocation2 + $0x11c] sm:$0xf] %vm62_vm13, %v2243_v48 }
 0x11f   :  { %921 = vst.msk [vmem:[#allocation2 + $0x9c] sm:$0xf] %vm907_vm12, %v859_v6  ;;  %v825_v26 = vsel %vm5923_vm5, %v823_v41, %v824_v17  ;;  %v1995_v54 = vsel %vm6069_vm11, %v1986_v3, %v1994_v43 }
 0x120   :  { %v1654_v27 = vpop.permute.xlu0 %1653 }
 0x121   :  { %1445 = vrot.lane.b32.xlu0 %v1394_v53, %s5840_s25  ;;  %1675 = vrot.lane.b32.xlu1 %v1625_v16, %s5841_s30  ;;  %1716 = vst.msk [vmem:[#allocation2 + $0x94] sm:$0xf] %vm678_vm10, %v1654_v27 }
 0x122   :  { %v2043_v33 = vpop.permute.xlu1 %2042 }
 0x123   :  { %2104 = vst.msk [vmem:[#allocation2 + $0xa0] sm:$0xf] %vm907_vm12, %v2043_v33 }
 0x124   :  { %v857_v56 = vpop.permute.xlu0 %856 }
 0x125   :  { %647 = vrot.lane.b32.xlu0 %v596_v7, %s5841_s30  ;;  %878 = vrot.lane.b32.xlu1 %v828_v45, %s5842_s13  ;;  %920 = vst.msk [vmem:[#allocation2 + $0x90] sm:$0xf] %vm907_vm12, %v857_v56  ;;  %v5737_v39 = vld [vmem:[#allocation2 + $0x110] ss:$12 sps:$4 sm:$0xff]  }
 0x126   :  { %v402_v47 = vpop.permute.xlu1 %401  ;;  %5617 = vmatmul.mubr.msk.bf16.gmra.mxu1 %vm2688_vm7, %v5737_v39 }
 0x127   :  { %462 = vst.msk [vmem:[#allocation2 + $0xb4] sm:$0xf] %vm446_vm9, %v402_v47  ;;  %5620 = vmatprep.mubr.msk.bf16.mxu1 %vm5844_vm0, %v9631_v18  ;;  %v8565_v53 = vpop.f32.mrf.mxu1 }
 0x128   :  { %v2041_v30 = vpop.permute.xlu0 %2040 }
 0x129   :  { %1673 = vrot.lane.b32.xlu0 %v1622_v23, %s5841_s30  ;;  %2062 = vrot.lane.b32.xlu1 %v2005_v25, %s5842_s13  ;;  %2103 = vst.msk [vmem:[#allocation2 + $0x94] sm:$0xf] %vm907_vm12, %v2041_v30  ;;  %v5574_v16 = vpop.f32.mrf.mxu1 }
 0x12a   :  { %v1432_v37 = vpop.permute.xlu1 %1431  ;;  %v2323_v63 = vld [vmem:[#allocation2 + $0x9c] sm:$0xff] }
 0x12b   :  { %1491 = vst.msk [vmem:[#allocation2 + $0xb8] sm:$0xf] %vm446_vm9, %v1432_v37  ;;  %v8569_v46 = vpop.f32.mrf.mxu1 }
 0x12c   :  { %v400_v61 = vpop.permute.xlu0 %399 }
 0x12d   :  { %876 = vrot.lane.b32.xlu0 %v825_v26, %s5842_s13  ;;  %461 = vst.msk [vmem:[#allocation2 + $0xa8] sm:$0xf] %vm446_vm9, %v400_v61  ;;  %v5575_v38 = vpop.f32.mrf.mxu1 }
 0x12e   :  { %v634_v14 = vpop.permute.xlu1 %633 }
 0x12f   :  { %694 = vst.msk [vmem:[#allocation2 + $0xb4] sm:$0xf] %vm678_vm10, %v634_v14 }
 0x130   :  { %v1430_v17 = vpop.permute.xlu0 %1429  ;;  %v2321_v11 = vld [vmem:[#allocation2 + $0x90] sm:$0xff] }
 0x131   :  { %2060 = vrot.lane.b32.xlu0 %v1995_v54, %s5842_s13  ;;  %v5719_v15 = vld [vmem:[#allocation2 + $0x94] ss:$12 sps:$4 sm:$0xff]   ;;  %1490 = vst.msk [vmem:[#allocation2 + $0xac] sm:$0xf] %vm446_vm9, %v1430_v17  ;;  %v5212_v29 = vcombine.low %v2321_v11, %v2323_v63 }
 0x132   :  { %2808 = vmatprep.mubr.bf16.mxu0 %v5719_v15  ;;  %v1660_v31 = vpop.permute.xlu1 %1659 }
 0x133   :  { %2809 = vmatmul.mubr.bf16.gmra.mxu0 %v5212_v29  ;;  %1719 = vst.msk [vmem:[#allocation2 + $0xb8] sm:$0xf] %vm678_vm10, %v1660_v31 }
 0x134   :  { %v632_v1 = vpop.permute.xlu0 %631 }
 0x135   :  { %693 = vst.msk [vmem:[#allocation2 + $0xa8] sm:$0xf] %vm678_vm10, %v632_v1 }
 0x136   :  { %v863_v10 = vpop.permute.xlu1 %862 }
 0x137   :  { %923 = vst.msk [vmem:[#allocation2 + $0xb4] sm:$0xf] %vm907_vm12, %v863_v10 }
 0x138   :  { %v1658_v59 = vpop.permute.xlu0 %1657 }
 0x139   :  { %1718 = vst.msk [vmem:[#allocation2 + $0xac] sm:$0xf] %vm678_vm10, %v1658_v59 }
 0x13a   :  { %v2047_v34 = vpop.permute.xlu1 %2046 }
 0x13b   :  { %2106 = vst.msk [vmem:[#allocation2 + $0xb8] sm:$0xf] %vm907_vm12, %v2047_v34  ;;  %v8578_v35 = vpop.f32.mrf.mxu1  ;;  %v8601_v34 = vld [vmem:[%s9590_s2] ss:$0 sm:$0xff] }
 0x13c   :  { %v861_v40 = vpop.permute.xlu0 %860 }
 0x13d   :  { %922 = vst.msk [vmem:[#allocation2 + $0xa8] sm:$0xf] %vm907_vm12, %v861_v40  ;;  %v5578_v33 = vpop.f32.mrf.mxu1 }
 0x13e   :  { %v406_v2 = vpop.permute.xlu1 %405 }
 0x13f   :  { %464 = vst.msk [vmem:[#allocation2 + $0xcc] sm:$0xf] %vm446_vm9, %v406_v2  ;;  %v8582_v41 = vpop.f32.mrf.mxu1 }
 0x140   :  { %v2045_v43 = vpop.permute.xlu0 %2044 }
 0x141   :  { %2105 = vst.msk [vmem:[#allocation2 + $0xac] sm:$0xf] %vm907_vm12, %v2045_v43  ;;  %v5579_v25 = vpop.f32.mrf.mxu1 }
 0x142   :  { %v1436_v52 = vpop.permute.xlu1 %1435  ;;  %v2327_v36 = vld [vmem:[#allocation2 + $0xb4] sm:$0xff] }
 0x143   :  { %1493 = vst.msk [vmem:[#allocation2 + $0xd0] sm:$0xf] %vm446_vm9, %v1436_v52 }
 0x144   :  { %v404_v44 = vpop.permute.xlu0 %403 }
 0x145   :  { %463 = vst.msk [vmem:[#allocation2 + $0xc0] sm:$0xf] %vm446_vm9, %v404_v44 }
 0x146   :  { %v638_v6 = vpop.permute.xlu1 %637 }
 0x147   :  { %696 = vst.msk [vmem:[#allocation2 + $0xcc] sm:$0xf] %vm678_vm10, %v638_v6 }
 0x148   :  { %v1434_v7 = vpop.permute.xlu0 %1433  ;;  %v2325_v49 = vld [vmem:[#allocation2 + $0xa8] sm:$0xff] }
 0x149   :  { %v5722_v60 = vld [vmem:[#allocation2 + $0xac] ss:$12 sps:$4 sm:$0xff]   ;;  %1492 = vst.msk [vmem:[#allocation2 + $0xc4] sm:$0xf] %vm446_vm9, %v1434_v7  ;;  %v5215_v27 = vcombine.low %v2325_v49, %v2327_v36 }
 0x14a   :  { %2816 = vmatprep.mubr.bf16.mxu0 %v5722_v60  ;;  %v1664_v45 = vpop.permute.xlu1 %1663 }
 0x14b   :  { %2817 = vmatmul.mubr.bf16.gmra.mxu0 %v5215_v27  ;;  %1721 = vst.msk [vmem:[#allocation2 + $0xd0] sm:$0xf] %vm678_vm10, %v1664_v45 }
 0x14c   :  { %v636_v22 = vpop.permute.xlu0 %635 }
 0x14d   :  { %695 = vst.msk [vmem:[#allocation2 + $0xc0] sm:$0xf] %vm678_vm10, %v636_v22 }
 0x14e   :  { %v867_v48 = vpop.permute.xlu1 %866 }
 0x14f   :  { %925 = vst.msk [vmem:[#allocation2 + $0xcc] sm:$0xf] %vm907_vm12, %v867_v48 }
 0x150   :  { %v1662_v23 = vpop.permute.xlu0 %1661 }
 0x151   :  { %1720 = vst.msk [vmem:[#allocation2 + $0xc4] sm:$0xf] %vm678_vm10, %v1662_v23  ;;  %v361_v23 = vshrl.u32 %v8296_v32, 16  ;;  %v113_v32 = vld [vmem:[%s9588_s0 + $0x64] sm:$0x1] }
 0x152   :  { %v2051_v56 = vpop.permute.xlu1 %2050 }
 0x153   :  { %2108 = vst.msk [vmem:[#allocation2 + $0xd0] sm:$0xf] %vm907_vm12, %v2051_v56 }
 0x156   :  { %v410_v26 = vpop.permute.xlu1 %409 }
 0x157   :  { %v865_v47 = vpop.permute.xlu0 %864  ;;  %466 = vst.msk [vmem:[#allocation2 + $0xe4] sm:$0xf] %vm446_vm9, %v410_v26  ;;  %v8591_v11 = vpop.f32.mrf.mxu1 }
 0x158   :  { %924 = vst.msk [vmem:[#allocation2 + $0xc0] sm:$0xf] %vm907_vm12, %v865_v47 }
 0x159   :  { %v5582_v29 = vpop.f32.mrf.mxu1 }
 0x15a   :  { %v2331_v14 = vld [vmem:[#allocation2 + $0xcc] sm:$0xff]  ;;  %v5391_v31 = vpop.f32.mrf.mxu0 }
 0x15b   :  { %v2049_v3 = vpop.permute.xlu0 %2048  ;;  %v1440_v30 = vpop.permute.xlu1 %1439 }
 0x15c   :  { %2107 = vst.msk [vmem:[#allocation2 + $0xc4] sm:$0xf] %vm907_vm12, %v2049_v3  ;;  %v8595_v10 = vpop.f32.mrf.mxu1  ;;  %v5392_v59 = vpop.f32.mrf.mxu0  ;;  %v363_v3 = vrot.slane %v361_v23, 4 }
 0x15d   :  { %1495 = vst.msk [vmem:[#allocation2 + $0xe8] sm:$0xf] %vm446_vm9, %v1440_v30  ;;  %v5393_v40 = vadd.f32 %v5392_v59, %v5391_v31  ;;  %v1398_v31 = vrot.slane %v1396_v8, 4  ;;  %v497_v8 = vld [vmem:[%s9588_s0 + $0x64] sm:$0x1] }
 0x15e   :  { %v5583_v2 = vpop.f32.mrf.mxu1  ;;  %v5394_v43 = vpop.f32.mrf.mxu0 }
 0x15f   :  { %v408_v39 = vpop.permute.xlu0 %407  ;;  %v642_v37 = vpop.permute.xlu1 %641  ;;  %v2763_v52 = vadd.f32 %v5393_v40, %v8601_v34 }
 0x160   :  { %465 = vst.msk [vmem:[#allocation2 + $0xd8] sm:$0xf] %vm446_vm9, %v408_v39  ;;  %v5395_v44 = vpop.f32.mrf.mxu0 }
 0x161   :  { %698 = vst.msk [vmem:[#allocation2 + $0xe4] sm:$0xf] %vm678_vm10, %v642_v37  ;;  %v5396_v6 = vadd.f32 %v5395_v44, %v5394_v43  ;;  %v2899_v7 = vadd.f32 %v8565_v53, %v2763_v52 }
 0x163   :  { %v1438_v54 = vpop.permute.xlu0 %1437  ;;  %v2329_v61 = vld [vmem:[#allocation2 + $0xc0] sm:$0xff]  ;;  %v1668_v15 = vpop.permute.xlu1 %1667  ;;  %v3000_v36 = vmax.f32 %v2899_v7, 0.0  ;;  %v2766_v27 = vadd.f32 %v5396_v6, %v8601_v34  ;;  %v1626_v6 = vrot.slane %v1624_v50, 4  ;;  %v1627_v7 = vrot.slane %v1526_v24, 6 }
 0x164   :  { %v5725_v17 = vld [vmem:[#allocation2 + $0xc4] ss:$12 sps:$4 sm:$0xff]   ;;  %1494 = vst.msk [vmem:[#allocation2 + $0xdc] sm:$0xf] %vm446_vm9, %v1438_v54  ;;  %v5218_v63 = vcombine.low %v2329_v61, %v2331_v14  ;;  %v364_v14 = vor.u32 %v363_v3, %v8351_v13  ;;  %v2006_v3 = vrot.slane %v8517_v19, 4 }
 0x165   :  { %2824 = vmatprep.mubr.bf16.mxu0 %v5725_v17  ;;  %1723 = vst.msk [vmem:[#allocation2 + $0xe8] sm:$0xf] %vm678_vm10, %v1668_v15  ;;  %v2902_v45 = vadd.f32 %v8569_v46, %v2766_v27  ;;  %v367_v17 = vshll.u32 %v113_v32, 16  ;;  %v1295_v15 = vld [vmem:[%s9588_s0 + $0x68] sm:$0x3]  ;;  %v601_v27 = vrot.slane %v497_v8, 5  ;;  %v1628_v62 = vsel %vm5913_vm3, %v1626_v6, %v1627_v7 }
 0x166   :  { %2825 = vmatmul.mubr.bf16.gmra.mxu0 %v5218_v63  ;;  %3025 = vst.msk [vmem:[#allocation3] sm:$0xff] %vm2688_vm7, %v3000_v36  ;;  %v365_v59 = vrot.slane %v364_v14, 4  ;;  %v1754_v36 = vld [vmem:[%s9588_s0 + $0x6c] sm:$0x7] }
 0x167   :  { %v640_v1 = vpop.permute.xlu0 %639  ;;  %v871_v16 = vpop.permute.xlu1 %870  ;;  %v3001_v48 = vmax.f32 %v2902_v45, 0.0  ;;  %v369_v40 = vrot.slane %v367_v17, 5  ;;  %v2008_v45 = vshrl.u32 %v1754_v36, 16 }
 0x168   :  { %697 = vst.msk [vmem:[#allocation2 + $0xd8] sm:$0xf] %vm678_vm10, %v640_v1  ;;  %v1399_v1 = vrot.slane %v1295_v15, 6 }
 0x169   :  { %927 = vst.msk [vmem:[#allocation2 + $0xe4] sm:$0xf] %vm907_vm12, %v871_v16  ;;  %v8614_v53 = vpop.f32.mrf.mxu1  ;;  %v370_v43 = vsel %vm5992_vm8, %v365_v59, %v369_v40  ;;  %v2010_v50 = vrot.slane %v2008_v45, 6 }
 0x16a   :  { %3026 = vst.msk [vmem:[#allocation3 + $0x8] sm:$0xff] %vm2688_vm7, %v3001_v48  ;;  %v1400_v2 = vsel %vm5913_vm3, %v1398_v31, %v1399_v1  ;;  %419 = vrot.lane.b32.xlu0 %v370_v43, %s5840_s25 }
 0x16b   :  { %v1666_v38 = vpop.permute.xlu0 %1665  ;;  %v2055_v49 = vpop.permute.xlu1 %2054  ;;  %1449 = vrot.lane.b32.xlu1 %v1400_v2, %s5840_s25 }
 0x16c   :  { %1722 = vst.msk [vmem:[#allocation2 + $0xdc] sm:$0xf] %vm678_vm10, %v1666_v38  ;;  %v5586_v25 = vpop.f32.mrf.mxu1 }
 0x16d   :  { %2110 = vst.msk [vmem:[#allocation2 + $0xe8] sm:$0xf] %vm907_vm12, %v2055_v49  ;;  %v600_v49 = vrot.slane %v598_v51, 4 }
 0x16e   :  { %v8620_v46 = vpop.f32.mrf.mxu1 }
 0x16f   :  { %v869_v60 = vpop.permute.xlu0 %868  ;;  %v414_v22 = vpop.permute.xlu1 %413  ;;  %1677 = vrot.lane.b32.xlu1 %v1628_v62, %s5841_s30  ;;  %v602_v51 = vsel %vm5923_vm5, %v600_v49, %v601_v27 }
 0x170   :  { %926 = vst.msk [vmem:[#allocation2 + $0xd8] sm:$0xf] %vm907_vm12, %v869_v60  ;;  %v5587_v30 = vpop.f32.mrf.mxu1  ;;  %651 = vrot.lane.b32.xlu0 %v602_v51, %s5841_s30 }
 0x171   :  { %468 = vst.msk [vmem:[#allocation2 + $0xfc] sm:$0xf] %vm446_vm9, %v414_v22  ;;  %v2011_v22 = vshll.u32 %v1754_v36, 16  ;;  %v829_v30 = vrot.slane %v827_v20, 4 }
 0x173   :  { %v2053_v33 = vpop.permute.xlu0 %2052  ;;  %v1444_v56 = vpop.permute.xlu1 %1443  ;;  %v2013_v23 = vrot.slane %v2011_v22, 7 }
 0x174   :  { %2109 = vst.msk [vmem:[#allocation2 + $0xdc] sm:$0xf] %vm907_vm12, %v2053_v33  ;;  %v2335_v54 = vld [vmem:[#allocation2 + $0xe4] sm:$0xff]  ;;  %v5397_v16 = vpop.f32.mrf.mxu0 }
 0x175   :  { %1497 = vst.msk [vmem:[#allocation2 + $0x100] sm:$0xf] %vm446_vm9, %v1444_v56  ;;  %v729_v56 = vld [vmem:[%s9588_s0 + $0x68] sm:$0x1] }
 0x176   :  { %v5398_v38 = vpop.f32.mrf.mxu0 }
 0x177   :  { %v412_v47 = vpop.permute.xlu0 %411  ;;  %v646_v26 = vpop.permute.xlu1 %645  ;;  %v5399_v52 = vadd.f32 %v5398_v38, %v5397_v16 }
 0x178   :  { %467 = vst.msk [vmem:[#allocation2 + $0xf0] sm:$0xf] %vm446_vm9, %v412_v47  ;;  %v5400_v60 = vpop.f32.mrf.mxu0 }
 0x179   :  { %700 = vst.msk [vmem:[#allocation2 + $0xfc] sm:$0xf] %vm678_vm10, %v646_v26  ;;  %v2771_v33 = vadd.f32 %v5399_v52, %v8601_v34 }
 0x17a   :  { %v5401_v21 = vpop.f32.mrf.mxu0 }
 0x17b   :  { %v1442_v39 = vpop.permute.xlu0 %1441  ;;  %v2333_v37 = vld [vmem:[#allocation2 + $0xd8] sm:$0xff]  ;;  %v1672_v29 = vpop.permute.xlu1 %1671  ;;  %v5402_v25 = vadd.f32 %v5401_v21, %v5400_v60  ;;  %v2907_v47 = vadd.f32 %v8578_v35, %v2771_v33 }
 0x17c   :  { %v5728_v61 = vld [vmem:[#allocation2 + $0xdc] ss:$12 sps:$4 sm:$0xff]   ;;  %1496 = vst.msk [vmem:[#allocation2 + $0xf4] sm:$0xf] %vm446_vm9, %v1442_v39  ;;  %v5221_v63 = vcombine.low %v2333_v37, %v2335_v54  ;;  %v2014_v39 = vor.u32 %v2013_v23, %v2010_v50  ;;  %v830_v37 = vrot.slane %v729_v56, 5 }
 0x17d   :  { %2832 = vmatprep.mubr.bf16.mxu0 %v5728_v61  ;;  %1725 = vst.msk [vmem:[#allocation2 + $0x100] sm:$0xf] %vm678_vm10, %v1672_v29  ;;  %v3002_v54 = vmax.f32 %v2907_v47, 0.0  ;;  %v2774_v14 = vadd.f32 %v5402_v25, %v8601_v34 }
 0x17e   :  { %2833 = vmatmul.mubr.bf16.gmra.mxu0 %v5221_v63  ;;  %v2015_v17 = vsel %vm6069_vm11, %v2006_v3, %v2014_v39  ;;  %v831_v58 = vsel %vm5923_vm5, %v829_v30, %v830_v37 }
 0x17f   :  { %v644_v13 = vpop.permute.xlu0 %643  ;;  %v875_v44 = vpop.permute.xlu1 %874  ;;  %3027 = vst.msk [vmem:[#allocation3 + $0x10] sm:$0xff] %vm2688_vm7, %v3002_v54  ;;  %v2910_v20 = vadd.f32 %v8582_v41, %v2774_v14  ;;  %2064 = vrot.lane.b32.xlu1 %v2015_v17, %s5842_s13  ;;  %880 = vrot.lane.b32.xlu0 %v831_v58, %s5842_s13 }
 0x180   :  { %699 = vst.msk [vmem:[#allocation2 + $0xf0] sm:$0xf] %vm678_vm10, %v644_v13  ;;  %v8671_v32 = vpop.f32.mrf.mxu1 }
 0x181   :  { %929 = vst.msk [vmem:[#allocation2 + $0xfc] sm:$0xf] %vm907_vm12, %v875_v44  ;;  %v3003_v15 = vmax.f32 %v2910_v20, 0.0 }
 0x182   :  { %v5590_v35 = vpop.f32.mrf.mxu1 }
 0x183   :  { %v1670_v48 = vpop.permute.xlu0 %1669  ;;  %v2059_v26 = vpop.permute.xlu1 %2058  ;;  %3028 = vst.msk [vmem:[#allocation3 + $0x18] sm:$0xff] %vm2688_vm7, %v3003_v15 }
 0x184   :  { %1724 = vst.msk [vmem:[#allocation2 + $0xf4] sm:$0xf] %vm678_vm10, %v1670_v48  ;;  %v8684_v63 = vpop.f32.mrf.mxu1 }
 0x185   :  { %2112 = vst.msk [vmem:[#allocation2 + $0x100] sm:$0xf] %vm907_vm12, %v2059_v26 }
 0x186   :  { %v5591_v31 = vpop.f32.mrf.mxu1 }
 0x187   :  { %v873_v61 = vpop.permute.xlu0 %872  ;;  %v418_v19 = vpop.permute.xlu1 %417 }
 0x188   :  { %928 = vst.msk [vmem:[#allocation2 + $0xf0] sm:$0xf] %vm907_vm12, %v873_v61 }
 0x189   :  { %470 = vst.msk [vmem:[#allocation2 + $0x114] sm:$0xf] %vm446_vm9, %v418_v19 }
 0x18b   :  { %v2057_v29 = vpop.permute.xlu0 %2056  ;;  %v1448_v1 = vpop.permute.xlu1 %1447 }
 0x18c   :  { %2111 = vst.msk [vmem:[#allocation2 + $0xf4] sm:$0xf] %vm907_vm12, %v2057_v29  ;;  %v2339_v13 = vld [vmem:[#allocation2 + $0xfc] sm:$0xff] }
 0x18d   :  { %1499 = vst.msk [vmem:[#allocation2 + $0x118] sm:$0xf] %vm446_vm9, %v1448_v1 }
 0x18f   :  { %v416_v41 = vpop.permute.xlu0 %415  ;;  %v650_v59 = vpop.permute.xlu1 %649 }
 0x190   :  { %469 = vst.msk [vmem:[#allocation2 + $0x108] sm:$0xf] %vm446_vm9, %v416_v41 }
 0x191   :  { %702 = vst.msk [vmem:[#allocation2 + $0x114] sm:$0xf] %vm678_vm10, %v650_v59 }
 0x192   :  { %v5403_v24 = vpop.f32.mrf.mxu0 }
 0x193   :  { %v1446_v40 = vpop.permute.xlu0 %1445  ;;  %v2337_v16 = vld [vmem:[#allocation2 + $0xf0] sm:$0xff]  ;;  %v1676_v38 = vpop.permute.xlu1 %1675 }
 0x194   :  { %v5731_v2 = vld [vmem:[#allocation2 + $0xf4] ss:$12 sps:$4 sm:$0xff]   ;;  %1498 = vst.msk [vmem:[#allocation2 + $0x10c] sm:$0xf] %vm446_vm9, %v1446_v40  ;;  %v5224_v43 = vcombine.low %v2337_v16, %v2339_v13  ;;  %v5404_v52 = vpop.f32.mrf.mxu0 }
 0x195   :  { %2840 = vmatprep.mubr.bf16.mxu0 %v5731_v2  ;;  %1727 = vst.msk [vmem:[#allocation2 + $0x118] sm:$0xf] %vm678_vm10, %v1676_v38  ;;  %v5405_v44 = vadd.f32 %v5404_v52, %v5403_v24  ;;  %v8694_v7 = vpop.f32.mrf.mxu1  ;;  %v5845_v38 = vmov 0  }
 0x196   :  { %2841 = vmatmul.mubr.bf16.gmra.mxu0 %v5224_v43  ;;  %v5406_v49 = vpop.f32.mrf.mxu0  ;;  %3296 = vmatprep.subr.bf16.mxu1 %v5845_v38 }
 0x197   :  { %v648_v8 = vpop.permute.xlu0 %647  ;;  %v879_v6 = vpop.permute.xlu1 %878  ;;  %v2779_v60 = vadd.f32 %v5405_v44, %v8601_v34 }
 0x198   :  { %701 = vst.msk [vmem:[#allocation2 + $0x108] sm:$0xf] %vm678_vm10, %v648_v8  ;;  %v5594_v27 = vpop.f32.mrf.mxu1  ;;  %v5407_v45 = vpop.f32.mrf.mxu0 }
 0x199   :  { %931 = vst.msk [vmem:[#allocation2 + $0x114] sm:$0xf] %vm907_vm12, %v879_v6  ;;  %v5408_v22 = vadd.f32 %v5407_v45, %v5406_v49  ;;  %v2915_v48 = vadd.f32 %v8591_v11, %v2779_v60 }
 0x19a   :  { %v8700_v62 = vpop.f32.mrf.mxu1 }
 0x19b   :  { %v1674_v36 = vpop.permute.xlu0 %1673  ;;  %v2063_v33 = vpop.permute.xlu1 %2062  ;;  %v3004_v21 = vmax.f32 %v2915_v48, 0.0  ;;  %v2782_v50 = vadd.f32 %v5408_v22, %v8601_v34 }
 0x19c   :  { %1726 = vst.msk [vmem:[#allocation2 + $0x10c] sm:$0xf] %vm678_vm10, %v1674_v36  ;;  %v5595_v23 = vpop.f32.mrf.mxu1 }
 0x19d   :  { %2114 = vst.msk [vmem:[#allocation2 + $0x118] sm:$0xf] %vm907_vm12, %v2063_v33  ;;  %v2918_v56 = vadd.f32 %v8595_v10, %v2782_v50 }
 0x19e   :  { %3029 = vst.msk [vmem:[#allocation3 + $0x20] sm:$0xff] %vm2688_vm7, %v3004_v21 }
 0x19f   :  { %v877_v51 = vpop.permute.xlu0 %876  ;;  %v3005_v25 = vmax.f32 %v2918_v56, 0.0 }
 0x1a0   :  { %930 = vst.msk [vmem:[#allocation2 + $0x108] sm:$0xf] %vm907_vm12, %v877_v51 }
 0x1a1   :  { %3030 = vst.msk [vmem:[#allocation3 + $0x28] sm:$0xff] %vm2688_vm7, %v3005_v25 }
 0x1a3   :  { %v2061_v47 = vpop.permute.xlu0 %2060 }
 0x1a4   :  { %2113 = vst.msk [vmem:[#allocation2 + $0x10c] sm:$0xf] %vm907_vm12, %v2061_v47  ;;  %v8709_v11 = vpop.f32.mrf.mxu1 }
 0x1a6   :  { %v5598_v26 = vpop.f32.mrf.mxu1 }
 0x1a7   :  { %v5736_v39 = vld [vmem:[#allocation2 + $0x108] ss:$12 sps:$4 sm:$0xff]  }
 0x1a8   :  { %v8711_v3 = vpop.f32.mrf.mxu1 }
 0x1aa   :  { %v5599_v37 = vpop.f32.mrf.mxu1 }
 0x1ab   :  { %v5734_v30 = vld [vmem:[#allocation2 + $0x10c] ss:$12 sps:$4 sm:$0xff]  }
 0x1ac   :  { %2848 = vmatprep.mubr.bf16.mxu0 %v5734_v30  ;;  %v8713_v61 = vpop.f32.mrf.mxu1 }
 0x1ad   :  { %2849 = vmatmul.mubr.bf16.gmra.mxu0 %v5736_v39 }
 0x1ae   :  { %v5602_v14 = vpop.f32.mrf.mxu1 }
 0x1af   :  { %v5409_v54 = vpop.f32.mrf.mxu0 }
 0x1b0   :  { %v8715_v58 = vpop.f32.mrf.mxu1 }
 0x1b1   :  { %v5410_v10 = vpop.f32.mrf.mxu0 }
 0x1b2   :  { %v5411_v35 = vadd.f32 %v5410_v10, %v5409_v54  ;;  %v5603_v15 = vpop.f32.mrf.mxu1 }
 0x1b3   :  { %v5412_v17 = vpop.f32.mrf.mxu0 }
 0x1b4   :  { %v2787_v20 = vadd.f32 %v5411_v35, %v8601_v34  ;;  %v8719_v1 = vpop.f32.mrf.mxu1 }
 0x1b5   :  { %v5413_v19 = vpop.f32.mrf.mxu0 }
 0x1b6   :  { %v5414_v29 = vadd.f32 %v5413_v19, %v5412_v17  ;;  %v2923_v31 = vadd.f32 %v8614_v53, %v2787_v20  ;;  %v5606_v40 = vpop.f32.mrf.mxu1  ;;  %v958_v19 = vld [vmem:[%s9588_s0 + $0x68] sm:$0x3] }
 0x1b7   :  { %v1212_v15 = vshrl.u32 %v958_v19, 16 }
 0x1b8   :  { %v3006_v41 = vmax.f32 %v2923_v31, 0.0  ;;  %v2790_v59 = vadd.f32 %v5414_v29, %v8601_v34  ;;  %v8724_v13 = vpop.f32.mrf.mxu1  ;;  %v1215_v29 = vshll.u32 %v958_v19, 16 }
 0x1ba   :  { %3031 = vst.msk [vmem:[#allocation3 + $0x30] sm:$0xff] %vm2688_vm7, %v3006_v41  ;;  %v2926_v16 = vadd.f32 %v8620_v46, %v2790_v59  ;;  %v5607_v43 = vpop.f32.mrf.mxu1  ;;  %v1214_v41 = vrot.slane %v1212_v15, 5  ;;  %v1217_v59 = vrot.slane %v1215_v29, 6 }
 0x1bc   :  { %v3007_v2 = vmax.f32 %v2926_v16, 0.0  ;;  %v1218_v43 = vor.u32 %v1217_v59, %v1214_v41 }
 0x1be   :  { %3032 = vst.msk [vmem:[#allocation3 + $0x38] sm:$0xff] %vm2688_vm7, %v3007_v2 }
 0x1c3   :  { %v5415_v53 = vpop.f32.mrf.mxu0  ;;  %v8728_v24 = vpop.f32.mrf.mxu1 }
 0x1c5   :  { %v5416_v8 = vpop.f32.mrf.mxu0  ;;  %v5610_v52 = vpop.f32.mrf.mxu1 }
 0x1c6   :  { %v5417_v44 = vadd.f32 %v5416_v8, %v5415_v53 }
 0x1c7   :  { %v5418_v6 = vpop.f32.mrf.mxu0  ;;  %v8730_v49 = vpop.f32.mrf.mxu1 }
 0x1c8   :  { %v2795_v46 = vadd.f32 %v5417_v44, %v8601_v34  ;;  %v61_v44 = vld [vmem:[%s9588_s0 + $0x60] sm:$0xf] }
 0x1c9   :  { %v5419_v36 = vpop.f32.mrf.mxu0  ;;  %v5611_v60 = vpop.f32.mrf.mxu1  ;;  %87 = vst.msk [vmem:[#allocation2 + $0x120] sm:$0xf] %vm62_vm13, %v61_v44 }
 0x1ca   :  { %v5420_v27 = vadd.f32 %v5419_v36, %v5418_v6  ;;  %v2931_v45 = vadd.f32 %v8671_v32, %v2795_v46  ;;  %v2244_v60 = vrot.slane %v2242_v55, 4 }
 0x1cc   :  { %v3008_v22 = vmax.f32 %v2931_v45, 0.0  ;;  %v2798_v48 = vadd.f32 %v5420_v27, %v8601_v34  ;;  %v2245_v27 = vrot.slane %v2141_v57, 7 }
 0x1ce   :  { %3033 = vst.msk [vmem:[#allocation3 + $0x40] sm:$0xff] %vm2688_vm7, %v3008_v22  ;;  %v2934_v33 = vadd.f32 %v8684_v63, %v2798_v48 }
 0x1d0   :  { %v3009_v21 = vmax.f32 %v2934_v33, 0.0 }
 0x1d2   :  { %3034 = vst.msk [vmem:[#allocation3 + $0x48] sm:$0xff] %vm2688_vm7, %v3009_v21 }
 0x1da   :  { %v8738_v50 = vpop.f32.mrf.mxu1 }
 0x1dc   :  { %v5421_v51 = vpop.f32.mrf.mxu0  ;;  %v5614_v56 = vpop.f32.mrf.mxu1 }
 0x1dd   :  { %v1450_v31 = vpop.permute.xlu1 %1449  ;;  %v420_v40 = vpop.permute.xlu0 %419 }
 0x1de   :  { %v5422_v23 = vpop.f32.mrf.mxu0  ;;  %v8740_v26 = vpop.f32.mrf.mxu1  ;;  %471 = vst.msk [vmem:[#allocation2 + $0x120] sm:$0xf] %vm446_vm9, %v420_v40 }
 0x1df   :  { %v5423_v25 = vadd.f32 %v5422_v23, %v5421_v51  ;;  %v2246_v51 = vsel %vm6668_vm6, %v2244_v60, %v2245_v27 }
 0x1e0   :  { %v5424_v47 = vpop.f32.mrf.mxu0  ;;  %v5615_v39 = vpop.f32.mrf.mxu1  ;;  %2296 = vst.msk [vmem:[#allocation2 + $0x128] sm:$0xf] %vm62_vm13, %v2246_v51 }
 0x1e1   :  { %v2803_v32 = vadd.f32 %v5423_v25, %v8601_v34  ;;  %v1678_v53 = vpop.permute.xlu1 %1677 }
 0x1e2   :  { %v5425_v30 = vpop.f32.mrf.mxu0  ;;  %v652_v6 = vpop.permute.xlu0 %651 }
 0x1e3   :  { %v5426_v37 = vadd.f32 %v5425_v30, %v5424_v47  ;;  %v2939_v54 = vadd.f32 %v8694_v7, %v2803_v32  ;;  %703 = vst.msk [vmem:[#allocation2 + $0x120] sm:$0xf] %vm678_vm10, %v652_v6 }
 0x1e5   :  { %v3010_v63 = vmax.f32 %v2939_v54, 0.0  ;;  %v2806_v10 = vadd.f32 %v5426_v37, %v8601_v34  ;;  %v5741_v54 = vld [vmem:[%s9591_s3 + $0x4] ss:$8 sps:$4 sm:$0xff]  }
 0x1e6   :  { %v8748_v17 = vpop.f32.mrf.mxu1 }
 0x1e7   :  { %3035 = vst.msk [vmem:[#allocation3 + $0x50] sm:$0xff] %vm2688_vm7, %v3010_v63  ;;  %v2942_v14 = vadd.f32 %v8700_v62, %v2806_v10  ;;  %v1210_v62 = vrot.slane %v8366_v4, 4  ;;  %v5738_v47 = vld [vmem:[#allocation2 + $0x128] ss:$0 sps:$4 sm:$0xff]  }
 0x1e8   :  { %v5618_v20 = vpop.f32.mrf.mxu1  ;;  %5621 = vmatmul.mubr.msk.bf16.gmra.mxu1 %vm2688_vm7, %v5738_v47 }
 0x1e9   :  { %v3011_v35 = vmax.f32 %v2942_v14, 0.0  ;;  %v1219_v52 = vsel %vm6435_vm15, %v1210_v62, %v1218_v43  ;;  %5276 = vmatprep.mubr.msk.bf16.mxu1 %vm3270_vm14, %v5741_v54  ;;  %vm3290_vm15 = vcmask 1043456  }
 0x1ea   :  { %v2989_v7 = vpop.f32.mrf.mxu1  ;;  %1269 = vst.msk [vmem:[#allocation2 + $0x124] sm:$0xf] %vm62_vm13, %v1219_v52 }
 0x1eb   :  { %3036 = vst.msk [vmem:[#allocation3 + $0x58] sm:$0xff] %vm2688_vm7, %v3011_v35 }
 0x1ec   :  { %v5619_v16 = vpop.f32.mrf.mxu1  ;;  %1500 = vst.msk [vmem:[#allocation2 + $0x124] sm:$0xf] %vm446_vm9, %v1450_v31 }
 0x1ed   :  { %1728 = vst.msk [vmem:[#allocation2 + $0x124] sm:$0xf] %vm678_vm10, %v1678_v53 }
 0x1f1   :  { %v2065_v45 = vpop.permute.xlu1 %2064  ;;  %v881_v48 = vpop.permute.xlu0 %880 }
 0x1f2   :  { %2115 = vst.msk [vmem:[#allocation2 + $0x124] sm:$0xf] %vm907_vm12, %v2065_v45  ;;  %932 = vst.msk [vmem:[#allocation2 + $0x120] sm:$0xf] %vm907_vm12, %v881_v48 }
 0x1f3   :  { %v5427_v2 = vpop.f32.mrf.mxu0 }
 0x1f5   :  { %v5428_v8 = vpop.f32.mrf.mxu0 }
 0x1f6   :  { %v5429_v46 = vadd.f32 %v5428_v8, %v5427_v2 }
 0x1f7   :  { %v5430_v36 = vpop.f32.mrf.mxu0 }
 0x1f8   :  { %v2811_v4 = vadd.f32 %v5429_v46, %v8601_v34 }
 0x1f9   :  { %v5431_v22 = vpop.f32.mrf.mxu0  ;;  %v2345_v25 = vld [vmem:[#allocation2 + $0x120] sm:$0xff] }
 0x1fa   :  { %v5432_v33 = vadd.f32 %v5431_v22, %v5430_v36  ;;  %v2947_v21 = vadd.f32 %v8709_v11, %v2811_v4  ;;  %v5231_v11 = vcombine.high %v2345_v25, %v2345_v25  ;;  %v5230_v32 = vcombine.low %v2345_v25, %v2345_v25 }
 0x1fc   :  { %v3012_v12 = vmax.f32 %v2947_v21, 0.0  ;;  %v2814_v55 = vadd.f32 %v5432_v33, %v8601_v34  ;;  %2856 = vmatprep.mubr.bf16.mxu0 %v5231_v11 }
 0x1fd   :  { %2857 = vmatmul.mubr.bf16.gmra.mxu0 %v5230_v32 }
 0x1fe   :  { %3037 = vst.msk [vmem:[#allocation3 + $0x60] sm:$0xff] %vm2688_vm7, %v3012_v12  ;;  %v2950_v23 = vadd.f32 %v8711_v3, %v2814_v55 }
 0x200   :  { %v3013_v56 = vmax.f32 %v2950_v23, 0.0 }
 0x202   :  { %3038 = vst.msk [vmem:[#allocation3 + $0x68] sm:$0xff] %vm2688_vm7, %v3013_v56 }
 0x205   :  { %v3062_v32 = vld [vmem:[#allocation3 + $0x60] sm:$0xff] }
 0x209   :  { %v3083_v51 = vld [vmem:[#allocation3 + $0x61] sm:$0xff] }
 0x20a   :  { %v3063_v23 = vld [vmem:[#allocation3 + $0x68] sm:$0xff]  ;;  %v3104_v54 = vmax.f32 %v3062_v32, %v3083_v51  ;;  %v3078_v51 = vld [vmem:[#allocation3 + $0x39] sm:$0xff] }
 0x20b   :  { %v5433_v30 = vpop.f32.mrf.mxu0  ;;  %v3124_v56 = vld [vmem:[#allocation3 + $0x62] sm:$0xff]  ;;  %v3118_v32 = vld [vmem:[#allocation3 + $0x32] sm:$0xff] }
 0x20c   :  { %v3145_v25 = vld [vmem:[#allocation3 + $0x63] sm:$0xff] }
 0x20d   :  { %v5434_v39 = vpop.f32.mrf.mxu0 }
 0x20e   :  { %v5435_v37 = vadd.f32 %v5434_v39, %v5433_v30 }
 0x20f   :  { %v5436_v3 = vpop.f32.mrf.mxu0 }
 0x210   :  { %v2819_v63 = vadd.f32 %v5435_v37, %v8601_v34 }
 0x211   :  { %v5437_v10 = vpop.f32.mrf.mxu0 }
 0x212   :  { %v5438_v14 = vadd.f32 %v5437_v10, %v5436_v3  ;;  %v2955_v35 = vadd.f32 %v8713_v61, %v2819_v63  ;;  %v3082_v3 = vld [vmem:[#allocation3 + $0x59] sm:$0xff] }
 0x213   :  { %v3123_v63 = vld [vmem:[#allocation3 + $0x5a] sm:$0xff] }
 0x214   :  { %v3014_v20 = vmax.f32 %v2955_v35, 0.0  ;;  %v2822_v19 = vadd.f32 %v5438_v14, %v8601_v34  ;;  %v3144_v10 = vld [vmem:[#allocation3 + $0x5b] sm:$0xff] }
 0x216   :  { %3039 = vst.msk [vmem:[#allocation3 + $0x70] sm:$0xff] %vm2688_vm7, %v3014_v20  ;;  %v2958_v15 = vadd.f32 %v8715_v58, %v2822_v19  ;;  %v3081_v19 = vld [vmem:[#allocation3 + $0x51] sm:$0xff] }
 0x218   :  { %v3015_v29 = vmax.f32 %v2958_v15, 0.0  ;;  %v3166_v15 = vmax.f32 %v3124_v56, %v3145_v25  ;;  %v3057_v25 = vld [vmem:[#allocation3 + $0x38] sm:$0xff] }
 0x21a   :  { %3040 = vst.msk [vmem:[#allocation3 + $0x78] sm:$0xff] %vm2688_vm7, %v3015_v29  ;;  %v3122_v29 = vld [vmem:[#allocation3 + $0x52] sm:$0xff] }
 0x21d   :  { %v3064_v6 = vld [vmem:[#allocation3 + $0x70] sm:$0xff] }
 0x21e   :  { %v3125_v60 = vld [vmem:[#allocation3 + $0x6a] sm:$0xff] }
 0x21f   :  { %v3146_v27 = vld [vmem:[#allocation3 + $0x6b] sm:$0xff] }
 0x220   :  { %v3167_v39 = vmax.f32 %v3125_v60, %v3146_v27  ;;  %v3120_v60 = vld [vmem:[#allocation3 + $0x42] sm:$0xff] }
 0x221   :  { %v3085_v44 = vld [vmem:[#allocation3 + $0x71] sm:$0xff]  ;;  %v3141_v27 = vld [vmem:[#allocation3 + $0x43] sm:$0xff] }
 0x222   :  { %v3126_v36 = vld [vmem:[#allocation3 + $0x72] sm:$0xff]  ;;  %v3106_v33 = vmax.f32 %v3064_v6, %v3085_v44 }
 0x223   :  { %v3147_v57 = vld [vmem:[#allocation3 + $0x73] sm:$0xff] }
 0x224   :  { %v3065_v45 = vld [vmem:[#allocation3 + $0x78] sm:$0xff]  ;;  %v3168_v12 = vmax.f32 %v3126_v36, %v3147_v57  ;;  %v3059_v57 = vld [vmem:[#allocation3 + $0x48] sm:$0xff] }
 0x226   :  { %v5439_v7 = vpop.f32.mrf.mxu0 }
 0x228   :  { %v5440_v31 = vpop.f32.mrf.mxu0 }
 0x229   :  { %v5441_v41 = vadd.f32 %v5440_v31, %v5439_v7  ;;  %v3143_v7 = vld [vmem:[#allocation3 + $0x53] sm:$0xff] }
 0x22a   :  { %v5442_v59 = vpop.f32.mrf.mxu0 }
 0x22b   :  { %v2827_v40 = vadd.f32 %v5441_v41, %v8601_v34  ;;  %v3061_v41 = vld [vmem:[#allocation3 + $0x58] sm:$0xff] }
 0x22c   :  { %v5443_v16 = vpop.f32.mrf.mxu0 }
 0x22d   :  { %v2963_v2 = vadd.f32 %v8719_v1, %v2827_v40  ;;  %v5444_v61 = vadd.f32 %v5443_v16, %v5442_v59  ;;  %v3084_v1 = vld [vmem:[#allocation3 + $0x69] sm:$0xff]  ;;  %v3188_v40 = vmax.f32 %v3104_v54, %v3167_v39 }
 0x22e   :  { %v3105_v30 = vmax.f32 %v3063_v23, %v3084_v1  ;;  %v3060_v16 = vld [vmem:[#allocation3 + $0x50] sm:$0xff] }
 0x22f   :  { %v3016_v62 = vmax.f32 %v2963_v2, 0.0  ;;  %v2830_v43 = vadd.f32 %v5444_v61, %v8601_v34  ;;  %v3103_v2 = vmax.f32 %v3061_v41, %v3082_v3  ;;  %v3165_v61 = vmax.f32 %v3123_v63, %v3144_v10  ;;  %v3056_v54 = vld [vmem:[#allocation3 + $0x30] sm:$0xff]  ;;  %v3137_v41 = vld [vmem:[#allocation3 + $0x23] sm:$0xff] }
 0x230   :  { %v3189_v20 = vmax.f32 %v3105_v30, %v3168_v12  ;;  %v3119_v12 = vld [vmem:[#allocation3 + $0x3a] sm:$0xff]  ;;  %v3099_v3 = vmax.f32 %v3057_v25, %v3078_v51  ;;  %v3076_v10 = vld [vmem:[#allocation3 + $0x29] sm:$0xff] }
 0x231   :  { %3041 = vst.msk [vmem:[#allocation3 + $0x80] sm:$0xff] %vm2688_vm7, %v3016_v62  ;;  %v2966_v58 = vadd.f32 %v8724_v13, %v2830_v43  ;;  %v3080_v62 = vld [vmem:[#allocation3 + $0x49] sm:$0xff]  ;;  %v3187_v36 = vmax.f32 %v3103_v2, %v3166_v15  ;;  %v3139_v30 = vld [vmem:[#allocation3 + $0x33] sm:$0xff] }
 0x232   :  { %v3101_v1 = vmax.f32 %v3059_v57, %v3080_v62  ;;  %v3055_v15 = vld [vmem:[#allocation3 + $0x28] sm:$0xff]  ;;  %v3115_v62 = vld [vmem:[#allocation3 + $0x1a] sm:$0xff] }
 0x233   :  { %v3017_v53 = vmax.f32 %v2966_v58, 0.0  ;;  %v3102_v58 = vmax.f32 %v3060_v16, %v3081_v19  ;;  %v3097_v16 = vmax.f32 %v3055_v15, %v3076_v10 }
 0x235   :  { %3042 = vst.msk [vmem:[#allocation3 + $0x88] sm:$0xff] %vm2688_vm7, %v3017_v53  ;;  %v3121_v53 = vld [vmem:[#allocation3 + $0x4a] sm:$0xff] }
 0x238   :  { %v3127_v8 = vld [vmem:[#allocation3 + $0x7a] sm:$0xff] }
 0x239   :  { %v3148_v52 = vld [vmem:[#allocation3 + $0x7b] sm:$0xff] }
 0x23a   :  { %v3086_v46 = vld [vmem:[#allocation3 + $0x79] sm:$0xff]  ;;  %v3169_v4 = vmax.f32 %v3127_v8, %v3148_v52  ;;  %v3142_v8 = vld [vmem:[#allocation3 + $0x4b] sm:$0xff]  ;;  %v3164_v52 = vmax.f32 %v3122_v29, %v3143_v7  ;;  %v3160_v29 = vmax.f32 %v3118_v32, %v3139_v30  ;;  %v3075_v7 = vld [vmem:[#allocation3 + $0x21] sm:$0xff] }
 0x23b   :  { %v3107_v21 = vmax.f32 %v3065_v45, %v3086_v46  ;;  %v3214_v46 = vpack.c.bf16 %v3189_v20, %v3188_v40  ;;  %v3054_v40 = vld [vmem:[#allocation3 + $0x20] sm:$0xff] }
 0x23c   :  { %v3128_v22 = vld [vmem:[#allocation3 + $0x82] sm:$0xff]  ;;  %v3190_v47 = vmax.f32 %v3106_v33, %v3169_v4  ;;  %v3185_v56 = vmax.f32 %v3101_v1, %v3164_v52  ;;  %v3053_v52 = vld [vmem:[#allocation3 + $0x18] sm:$0xff] }
 0x23d   :  { %v3149_v48 = vld [vmem:[#allocation3 + $0x83] sm:$0xff] }
 0x23e   :  { %v3170_v13 = vmax.f32 %v3128_v22, %v3149_v48  ;;  %v5445_v55 = vpop.f32.mrf.mxu0  ;;  %v3079_v4 = vld [vmem:[#allocation3 + $0x41] sm:$0xff]  ;;  %v3186_v48 = vmax.f32 %v3102_v58, %v3165_v61  ;;  %v3074_v61 = vld [vmem:[#allocation3 + $0x19] sm:$0xff] }
 0x23f   :  { %v3058_v33 = vld [vmem:[#allocation3 + $0x40] sm:$0xff]  ;;  %v3095_v1 = vmax.f32 %v3053_v52, %v3074_v61  ;;  %v5846_v52 = vmov 65535  }
 0x240   :  { %v3191_v11 = vmax.f32 %v3107_v21, %v3170_v13  ;;  %v5446_v37 = vpop.f32.mrf.mxu0  ;;  %v3163_v21 = vmax.f32 %v3121_v53, %v3142_v8  ;;  %v3100_v13 = vmax.f32 %v3058_v33, %v3079_v4  ;;  %v3213_v23 = vpack.c.bf16 %v3187_v36, %v3186_v48  ;;  %v3135_v36 = vld [vmem:[#allocation3 + $0x13] sm:$0xff] }
 0x241   :  { %v5447_v14 = vadd.f32 %v5446_v37, %v5445_v55  ;;  %v3096_v53 = vmax.f32 %v3054_v40, %v3075_v7  ;;  %v3181_v8 = vmax.f32 %v3097_v16, %v3160_v29  ;;  %v3052_v4 = vld [vmem:[#allocation3 + $0x10] sm:$0xff] }
 0x242   :  { %v3215_v35 = vpack.c.bf16 %v3191_v11, %v3190_v47  ;;  %v5448_v31 = vpop.f32.mrf.mxu0  ;;  %v3162_v47 = vmax.f32 %v3120_v60, %v3141_v27  ;;  %v3077_v11 = vld [vmem:[#allocation3 + $0x31] sm:$0xff]  ;;  %v3184_v37 = vmax.f32 %v3100_v13, %v3163_v21  ;;  %v3072_v27 = vld [vmem:[#allocation3 + $0x9] sm:$0xff] }
 0x243   :  { %v2835_v59 = vadd.f32 %v5447_v14, %v8601_v34  ;;  %v3117_v14 = vld [vmem:[#allocation3 + $0x2a] sm:$0xff]  ;;  %v3098_v20 = vmax.f32 %v3056_v54, %v3077_v11 }
 0x244   :  { %3297 = vmatpush1.bf16.msra.mxu1 %v3215_v35  ;;  %v5449_v43 = vpop.f32.mrf.mxu0  ;;  %v3138_v35 = vld [vmem:[#allocation3 + $0x2b] sm:$0xff]  ;;  %v3183_v19 = vmax.f32 %v3099_v3, %v3162_v47  ;;  %v3050_v47 = vld [vmem:[#allocation3] sm:$0xff] }
 0x245   :  { %3298 = vmatprep.subr.bf16.mxu1 %v5845_v38  ;;  %v5450_v44 = vadd.f32 %v5449_v43, %v5448_v31  ;;  %v2971_v6 = vadd.f32 %v8728_v24, %v2835_v59  ;;  %v3140_v24 = vld [vmem:[#allocation3 + $0x3b] sm:$0xff]  ;;  %v3159_v2 = vmax.f32 %v3117_v14, %v3138_v35 }
 0x246   :  { %v3161_v63 = vmax.f32 %v3119_v12, %v3140_v24  ;;  %v3116_v31 = vld [vmem:[#allocation3 + $0x22] sm:$0xff] }
 0x247   :  { %v3018_v45 = vmax.f32 %v2971_v6, 0.0  ;;  %v2838_v22 = vadd.f32 %v5450_v44, %v8601_v34  ;;  %v3136_v43 = vld [vmem:[#allocation3 + $0x1b] sm:$0xff]  ;;  %v3158_v44 = vmax.f32 %v3116_v31, %v3137_v41  ;;  %v3073_v6 = vld [vmem:[#allocation3 + $0x11] sm:$0xff]  ;;  %v3180_v57 = vmax.f32 %v3096_v53, %v3159_v2  ;;  %v3051_v12 = vld [vmem:[#allocation3 + $0x8] sm:$0xff] }
 0x248   :  { %3299 = vmatpush1.bf16.msra.mxu1 %v3214_v46  ;;  %v3182_v59 = vmax.f32 %v3098_v20, %v3161_v63  ;;  %v3114_v46 = vld [vmem:[#allocation3 + $0x12] sm:$0xff]  ;;  %v3157_v60 = vmax.f32 %v3115_v62, %v3136_v43  ;;  %v3094_v33 = vmax.f32 %v3052_v4, %v3073_v6  ;;  %v3071_v24 = vld [vmem:[#allocation3 + $0x1] sm:$0xff] }
 0x249   :  { %3300 = vmatprep.subr.bf16.mxu1 %v5845_v38  ;;  %3043 = vst.msk [vmem:[#allocation3 + $0x90] sm:$0xff] %vm2688_vm7, %v3018_v45  ;;  %v2974_v55 = vadd.f32 %v8730_v49, %v2838_v22  ;;  %v3212_v49 = vpack.c.bf16 %v3185_v56, %v3184_v37  ;;  %v3113_v45 = vld [vmem:[#allocation3 + $0xa] sm:$0xff]  ;;  %v3210_v48 = vpack.c.bf16 %v3181_v8, %v3180_v57 }
 0x24a   :  { %v3211_v58 = vpack.c.bf16 %v3183_v19, %v3182_v59  ;;  %v3134_v22 = vld [vmem:[#allocation3 + $0xb] sm:$0xff]  ;;  %v3179_v21 = vmax.f32 %v3095_v1, %v3158_v44  ;;  %v3156_v13 = vmax.f32 %v3114_v46, %v3135_v36  ;;  %v3092_v30 = vmax.f32 %v3050_v47, %v3071_v24 }
 0x24b   :  { %v3019_v39 = vmax.f32 %v2974_v55, 0.0  ;;  %v3178_v55 = vmax.f32 %v3094_v33, %v3157_v60  ;;  %v3155_v56 = vmax.f32 %v3113_v45, %v3134_v22  ;;  %v3291_v44 = vsel %vm524_vm2, 4294967295, %v5846_v52 }
 0x24c   :  { %3301 = vmatpush1.bf16.msra.mxu1 %v3213_v23  ;;  %v3093_v23 = vmax.f32 %v3051_v12, %v3072_v27  ;;  %v3292_v4 = vsel %vm3290_vm15, %v3291_v44, 0  ;;  %v5765_v44 = vld [vmem:[%s9592_s4 + $0x78] sm:$0xff]   ;;  %vm3768_vm2 = vsmask.f32 256  ;;  %vm4698_vm15 = vcmask 516096  }
 0x24d   :  { %3302 = vmatprep.subr.bf16.mxu1 %v5845_v38  ;;  %3044 = vst.msk [vmem:[#allocation3 + $0x98] sm:$0xff] %vm2688_vm7, %v3019_v39  ;;  %v3209_v32 = vpack.c.bf16 %v3179_v21, %v3178_v55  ;;  %v3176_v3 = vmax.f32 %v3092_v30, %v3155_v56  ;;  %v3067_v56 = vld [vmem:[#allocation3 + $0x88] sm:$0xff]  ;;  %v3066_v30 = vld [vmem:[#allocation3 + $0x80] sm:$0xff]  ;;  %5484 = vmatprep.subr.bf16.mxu0 %v5765_v44  ;;  %vm9196_vm4 = vmor %vm3768_vm2, %vm3769_vm1 }
 0x24e   :  { %v3177_v39 = vmax.f32 %v3093_v23, %v3156_v13  ;;  %vm9403_vm1 = vmand %vm4698_vm15, %vm3768_vm2 }
 0x250   :  { %3303 = vmatpush1.bf16.msra.mxu1 %v3212_v49  ;;  %v3208_v35 = vpack.c.bf16 %v3177_v39, %v3176_v3  ;;  %v3068_v22 = vld [vmem:[#allocation3 + $0x90] sm:$0xff] }
 0x251   :  { %3304 = vmatprep.subr.bf16.mxu1 %v5845_v38  ;;  %v3088_v21 = vld [vmem:[#allocation3 + $0x89] sm:$0xff] }
 0x252   :  { %v3129_v13 = vld [vmem:[#allocation3 + $0x8a] sm:$0xff] }
 0x254   :  { %3305 = vmatpush1.bf16.msra.mxu1 %v3211_v58  ;;  %v3089_v1 = vld [vmem:[#allocation3 + $0x91] sm:$0xff] }
 0x255   :  { %3306 = vmatprep.subr.bf16.mxu1 %v5845_v38  ;;  %v3130_v60 = vld [vmem:[#allocation3 + $0x92] sm:$0xff]  ;;  %v3110_v24 = vmax.f32 %v3068_v22, %v3089_v1 }
 0x256   :  { %v5451_v51 = vpop.f32.mrf.mxu0  ;;  %v3151_v27 = vld [vmem:[#allocation3 + $0x93] sm:$0xff] }
 0x257   :  { %v3172_v23 = vmax.f32 %v3130_v60, %v3151_v27 }
 0x258   :  { %3307 = vmatpush1.bf16.msra.mxu1 %v3210_v48  ;;  %v5452_v25 = vpop.f32.mrf.mxu0 }
 0x259   :  { %3308 = vmatprep.subr.bf16.mxu1 %v5845_v38  ;;  %v5453_v11 = vadd.f32 %v5452_v25, %v5451_v51  ;;  %v3150_v51 = vld [vmem:[#allocation3 + $0x8b] sm:$0xff]  ;;  %v3087_v25 = vld [vmem:[#allocation3 + $0x81] sm:$0xff] }
 0x25a   :  { %v5454_v37 = vpop.f32.mrf.mxu0 }
 0x25b   :  { %v2843_v54 = vadd.f32 %v5453_v11, %v8601_v34  ;;  %v3109_v11 = vmax.f32 %v3067_v56, %v3088_v21 }
 0x25c   :  { %3309 = vmatpush1.bf16.msra.mxu1 %v3209_v32  ;;  %v5455_v63 = vpop.f32.mrf.mxu0  ;;  %v3171_v32 = vmax.f32 %v3129_v13, %v3150_v51 }
 0x25d   :  { %3310 = vmatprep.subr.bf16.mxu1 %v5845_v38  ;;  %v5456_v10 = vadd.f32 %v5455_v63, %v5454_v37  ;;  %v2979_v14 = vadd.f32 %v8738_v50, %v2843_v54  ;;  %v3108_v37 = vmax.f32 %v3066_v30, %v3087_v25  ;;  %v3193_v54 = vmax.f32 %v3109_v11, %v3172_v23 }
 0x25f   :  { %v3020_v49 = vmax.f32 %v2979_v14, 0.0  ;;  %v2846_v20 = vadd.f32 %v5456_v10, %v8601_v34  ;;  %v3192_v3 = vmax.f32 %v3108_v37, %v3171_v32  ;;  %v5739_v10 = vld [vmem:[%s9591_s3] ss:$8 sps:$4 sm:$0xff]   ;;  %v5742_v14 = vld [vmem:[%s9591_s3 + $0x14] ss:$8 sps:$4 sm:$0xff]  }
 0x260   :  { %3311 = vmatpush1.bf16.msra.mxu1 %v3208_v35  ;;  %v5745_v35 = vld [vmem:[%s9591_s3 + $0x10] ss:$8 sps:$4 sm:$0xff]  }
 0x261   :  { %3322 = vmatprep.subr.bf16.mxu1 %v5845_v38  ;;  %3045 = vst.msk [vmem:[#allocation3 + $0xa0] sm:$0xff] %vm2688_vm7, %v3020_v49  ;;  %v2982_v19 = vadd.f32 %v8740_v26, %v2846_v20  ;;  %v3216_v63 = vpack.c.bf16 %v3193_v54, %v3192_v3  ;;  %v5749_v49 = vld [vmem:[%s9591_s3 + $0x20] ss:$8 sps:$4 sm:$0xff]   ;;  %v5750_v20 = vld [vmem:[%s9591_s3 + $0x34] ss:$8 sps:$4 sm:$0xff]  }
 0x263   :  { %v3021_v15 = vmax.f32 %v2982_v19, 0.0  ;;  %v5752_v19 = vld [vmem:[%s9591_s3 + $0x30] ss:$8 sps:$4 sm:$0xff]  }
 0x265   :  { %3046 = vst.msk [vmem:[#allocation3 + $0xa8] sm:$0xff] %vm2688_vm7, %v3021_v15  ;;  %v5753_v15 = vld [vmem:[%s9591_s3 + $0x44] ss:$8 sps:$4 sm:$0xff]  }
 0x268   :  { %v3070_v2 = vld [vmem:[#allocation3 + $0xa0] sm:$0x7f] }
 0x269   :  { %v3091_v61 = vld [vmem:[#allocation3 + $0xa1] sm:$0x7f]  ;;  %v3090_v6 = vld [vmem:[#allocation3 + $0x99] sm:$0xff] }
 0x26a   :  { %v3112_v53 = vmax.f32 %v3070_v2, %v3091_v61  ;;  %v3152_v46 = vld [vmem:[#allocation3 + $0x9b] sm:$0xff] }
 0x26c   :  { %v3132_v62 = vld [vmem:[#allocation3 + $0xa2] sm:$0xff] }
 0x26d   :  { %v5457_v29 = vpop.f32.mrf.mxu0  ;;  %v3153_v58 = vld [vmem:[#allocation3 + $0xa3] sm:$0xff] }
 0x26e   :  { %v3174_v57 = vmax.f32 %v3132_v62, %v3153_v58  ;;  %v5759_v58 = vld [vmem:[%s9592_s4 + $0x80] sm:$0xff]  }
 0x26f   :  { %v5458_v7 = vpop.f32.mrf.mxu0 }
 0x270   :  { %v5459_v31 = vadd.f32 %v5458_v7, %v5457_v29  ;;  %v3207_v29 = vld [vmem:[%s9591_s3 + $0x50] sm:$0xff]  ;;  %v5755_v7 = vld [vmem:[%s9591_s3 + $0x40] ss:$8 sps:$4 sm:$0xff]  }
 0x271   :  { %v5460_v41 = vpop.f32.mrf.mxu0 }
 0x272   :  { %v2851_v50 = vadd.f32 %v5459_v31, %v8601_v34  ;;  %v3131_v34 = vld [vmem:[#allocation3 + $0x9a] sm:$0xff]  ;;  %v5275_v31 = vcombine.high %v3207_v29, %v3207_v29  ;;  %v5274_v41 = vcombine.low %v3207_v29, %v3207_v29 }
 0x273   :  { %v5461_v59 = vpop.f32.mrf.mxu0  ;;  %v3173_v33 = vmax.f32 %v3131_v34, %v3152_v46 }
 0x274   :  { %v2987_v40 = vadd.f32 %v8748_v17, %v2851_v50  ;;  %v3069_v17 = vld [vmem:[#allocation3 + $0x98] sm:$0xff] }
 0x275   :  { %v3111_v48 = vmax.f32 %v3069_v17, %v3090_v6  ;;  %v3194_v47 = vmax.f32 %v3110_v24, %v3173_v33  ;;  %v5766_v6 = vld [vmem:[%s9592_s4 + $0x38] sm:$0xff]  }
 0x276   :  { %v3022_v16 = vmax.f32 %v2987_v40, 0.0  ;;  %5485 = vmatpush3.bf16.msra.mxu0 %v5766_v6 }
 0x277   :  { %v3195_v55 = vmax.f32 %v3111_v48, %v3174_v57 }
 0x278   :  { %3047 = vst.msk [vmem:[#allocation3 + $0xb0] sm:$0xff] %vm2688_vm7, %v3022_v16 }
 0x279   :  { %v3217_v39 = vpack.c.bf16 %v3195_v55, %v3194_v47 }
 0x27f   :  { %v3133_v43 = vld [vmem:[#allocation3 + $0xaa] sm:$0x7f] }
 0x280   :  { %v3154_v26 = vld [vmem:[#allocation3 + $0xab] sm:$0x7f] }
 0x281   :  { %v3175_v8 = vmax.f32 %v3133_v43, %v3154_v26  ;;  %v5758_v26 = vld [vmem:[%s9592_s4 + $0x88] sm:$0xff]  }
 0x283   :  { %v3196_v36 = vmax.f32 %v3112_v53, %v3175_v8 }
 0x285   :  { %v3218_v45 = vpack.c.bf16 %v3196_v36, %v3196_v36 }
 0x287   :  { %v3294_v12 = vand.u32 %v3292_v4, %v3218_v45  ;;  %v5767_v4 = vld [vmem:[%s9592_s4 + $0x70] sm:$0xff]  }
 0x288   :  { %5486 = vmatprep.subr.bf16.mxu0 %v5767_v4 }
 0x289   :  { %3323 = vmatpush2.bf16.msra.mxu1 %v3294_v12 }
 0x28a   :  { %3324 = vmatprep.subr.bf16.mxu1 %v5845_v38 }
 0x28d   :  { %3325 = vmatpush2.bf16.msra.mxu1 %v3217_v39 }
 0x28e   :  { %3326 = vmatprep.subr.bf16.mxu1 %v5845_v38  ;;  %v5747_v38 = vld [vmem:[%s9591_s3 + $0x24] ss:$8 sps:$4 sm:$0xff]  }
 0x291   :  { %3327 = vmatpush2.bf16.msra.mxu1 %v3216_v63 }
 0x292   :  { %5624 = vmatprep.subr.bf16.mxu1 %v9631_v18 }
 0x294   :  { %3329 = vmatmul.mubr.bf16.vlgmr.msra.gmra.mxu1 %v5739_v10 }
 0x295   :  { %5277 = vmatprep.mubr.msk.bf16.mxu1 %vm3270_vm14, %v5742_v14  ;;  %5625 = vmatpush3.bf16.msra.mxu1 %v5758_v26 }
 0x296   :  { %5626 = vmatprep.subr.bf16.mxu1 %v9631_v18 }
 0x299   :  { %5627 = vmatpush3.bf16.msra.mxu1 %v5759_v58 }
 0x29a   :  { %5648 = vmatprep.subr.bf16.mxu1 %v9631_v18 }
 0x29c   :  { %3337 = vmatmul.mubr.bf16.gmra.mxu1 %v5745_v35 }
 0x29d   :  { %5278 = vmatprep.mubr.msk.bf16.mxu1 %vm3270_vm14, %v5747_v38 }
 0x2a4   :  { %3345 = vmatmul.mubr.bf16.gmra.mxu1 %v5749_v49 }
 0x2a5   :  { %5279 = vmatprep.mubr.msk.bf16.mxu1 %vm3270_vm14, %v5750_v20 }
 0x2a8   :  { %v2994_v50 = vpop.f32.mrf.mxu1 }
 0x2aa   :  { %v5622_v40 = vpop.f32.mrf.mxu1 }
 0x2ac   :  { %3353 = vmatmul.mubr.bf16.gmra.mxu1 %v5752_v19  ;;  %v2997_v2 = vpop.f32.mrf.mxu1 }
 0x2ad   :  { %5280 = vmatprep.mubr.msk.bf16.mxu1 %vm3270_vm14, %v5753_v15 }
 0x2ae   :  { %v5623_v62 = vpop.f32.mrf.mxu1 }
 0x2af   :  { %v5768_v62 = vld [vmem:[%s9592_s4 + $0x30] sm:$0xff]  }
 0x2b0   :  { %5487 = vmatpush3.bf16.msra.mxu0 %v5768_v62 }
 0x2b4   :  { %3361 = vmatmul.mubr.bf16.gmra.mxu1 %v5755_v7 }
 0x2b5   :  { %5281 = vmatprep.mubr.msk.bf16.mxu1 %vm3270_vm14, %v5275_v31  ;;  %vm4629_vm14 = vcmask 523264  }
 0x2bc   :  { %3369 = vmatmul.mubr.bf16.gmra.mxu1 %v5274_v41 }
 0x2bd   :  { %5628 = vmatprep.mubr.msk.bf16.mxu1 %vm5844_vm0, %v9631_v18  ;;  %v5463_v59 = vpop.f32.mrf.mxu0 }
 0x2bf   :  { %v5464_v16 = vpop.f32.mrf.mxu0 }
 0x2c1   :  { %v5466_v61 = vpop.f32.mrf.mxu0 }
 0x2c3   :  { %v5467_v43 = vpop.f32.mrf.mxu0 }
 0x354   :  { %v3330_v53 = vpop.f32.mrf.mxu1 }
 0x355   :  { %v5364_v8 = vpack.c.bf16 %v3330_v53, %v3330_v53 }
 0x356   :  { %v3332_v52 = vpop.f32.mrf.mxu1 }
 0x357   :  { %3421 = vst.msk [vmem:[#allocation4] sm:$0xf] %vm62_vm13, %v5364_v8 }
 0x358   :  { %v3333_v34 = vpop.f32.mrf.mxu1 }
 0x359   :  { %v5365_v46 = vpack.c.bf16 %v3333_v34, %v3333_v34 }
 0x35a   :  { %v3335_v36 = vpop.f32.mrf.mxu1 }
 0x35b   :  { %3422 = vst.msk [vmem:[#allocation4 + $0x4] sm:$0xf] %vm62_vm13, %v5365_v46 }
 0x35c   :  { %v3338_v17 = vpop.f32.mrf.mxu1 }
 0x35d   :  { %v5366_v57 = vpack.c.bf16 %v3338_v17, %v3338_v17 }
 0x35e   :  { %v3340_v1 = vpop.f32.mrf.mxu1  ;;  %v3450_v60 = vld [vmem:[#allocation4] sm:$0xf] }
 0x35f   :  { %3423 = vst.msk [vmem:[#allocation4 + $0x8] sm:$0xf] %vm62_vm13, %v5366_v57  ;;  %v3461_v27 = vshrl.u32 %v3450_v60, 16  ;;  %v3464_v45 = vshll.u32 %v3450_v60, 16  ;;  %v3590_v48 = vld [vmem:[#allocation4] sm:$0xe] }
 0x360   :  { %v3341_v22 = vpop.f32.mrf.mxu1  ;;  %v3432_v33 = vld [vmem:[#allocation4] sm:$0xf]  ;;  %v5293_v23 = vrot.slane %v3590_v48, 9 }
 0x361   :  { %v5367_v21 = vpack.c.bf16 %v3341_v22, %v3341_v22  ;;  %v3463_v13 = vrot.slane %v3461_v27, 4  ;;  %v3466_v51 = vrot.slane %v3464_v45, 5  ;;  %3441 = vst.msk [vmem:[#allocation5] sm:$0xf] %vm62_vm13, %v3432_v33  ;;  %v3674_v54 = vld [vmem:[#allocation4] sm:$0x8] }
 0x362   :  { %v3874_v12 = vld [vmem:[#allocation4 + $0x4] sm:$0xf]  ;;  %v3343_v55 = vpop.f32.mrf.mxu1  ;;  %v5294_v31 = vrot.slane %v3674_v54, 11 }
 0x363   :  { %v3591_v24 = vld [vmem:[#allocation4 + $0x4] sm:$0xf]  ;;  %3892 = vrot.lane.b32.xlu0 %v3874_v12, %s5840_s25  ;;  %3424 = vst.msk [vmem:[#allocation4 + $0xc] sm:$0xf] %vm62_vm13, %v5367_v21  ;;  %v3467_v30 = vor.u32 %v3466_v51, %v3463_v13  ;;  %v5769_v13 = vld [vmem:[%s9592_s4 + $0x68] sm:$0xff]  }
 0x364   :  { %v3612_v56 = vrot.slane %v3591_v24, 5  ;;  %v3675_v25 = vld [vmem:[#allocation4 + $0x4] sm:$0xf]  ;;  %v3346_v32 = vpop.f32.mrf.mxu1  ;;  %5488 = vmatprep.subr.bf16.mxu0 %v5769_v13  ;;  %v5775_v13 = vld [vmem:[%s9592_s4 + $0x50] sm:$0xff]  }
 0x365   :  { %v3451_v47 = vld [vmem:[#allocation4 + $0x4] sm:$0xf]  ;;  %v3696_v3 = vrot.slane %v3675_v25, 7  ;;  %v5368_v63 = vpack.c.bf16 %v3346_v32, %v3346_v32  ;;  %v3468_v2 = vrot.slane %v3467_v30, 4  ;;  %v5770_v25 = vld [vmem:[%s9592_s4 + $0x28] sm:$0xff]  }
 0x366   :  { %v4156_v11 = vld [vmem:[#allocation4 + $0x4] sm:$0x8]  ;;  %v3470_v39 = vshll.u32 %v3451_v47, 16  ;;  %v3613_v37 = vsel %vm5923_vm5, %v5293_v23, %v3612_v56  ;;  %v3474_v10 = vshrl.u32 %v3451_v47, 16  ;;  %v4157_v14 = vld [vmem:[#allocation4 + $0x8] sm:$0xf]  ;;  %v3348_v49 = vpop.f32.mrf.mxu1  ;;  %5489 = vmatpush3.bf16.msra.mxu0 %v5770_v25 }
 0x367   :  { %v3875_v35 = vld [vmem:[#allocation4 + $0x8] sm:$0xf]  ;;  %v5297_v20 = vrot.slane %v4156_v11, 11  ;;  %v4178_v19 = vrot.slane %v4157_v14, 7  ;;  %3638 = vrot.lane.b32.xlu0 %v3613_v37, %s5841_s30  ;;  %v3614_v15 = vrot.slane %v3612_v56, 4  ;;  %v3697_v26 = vsel %vm6668_vm6, %v5294_v31, %v3696_v3 }
 0x368   :  { %v8887_v38 = vld [vmem:[#allocation4 + $0x8] sm:$0xf]  ;;  %3894 = vrot.lane.b32.xlu1 %v3875_v35, %s5840_s25  ;;  %3425 = vst.msk [vmem:[#allocation4 + $0x10] sm:$0xf] %vm62_vm13, %v5368_v63  ;;  %v3472_v41 = vrot.slane %v3470_v39, 5  ;;  %v3349_v50 = vpop.f32.mrf.mxu1  ;;  %v3476_v52 = vrot.slane %v3474_v10, 4 }
 0x369   :  { %v3615_v29 = vrot.slane %v8887_v38, 5  ;;  %v8893_v7 = vld [vmem:[#allocation4 + $0x8] sm:$0xf]  ;;  %v4179_v40 = vsel %vm6668_vm6, %v5297_v20, %v4178_v19  ;;  %v4012_v61 = vld [vmem:[#allocation4 + $0x4] sm:$0xc]  ;;  %v5369_v53 = vpack.c.bf16 %v3349_v50, %v3349_v50  ;;  %v4180_v6 = vrot.slane %v4178_v19, 4 }
 0x36a   :  { %v8895_v59 = vld [vmem:[#allocation4 + $0x8] sm:$0xf]  ;;  %4213 = vst.msk [vmem:[#allocation5 + $0x8] sm:$0xf] %vm62_vm13, %v4179_v40  ;;  %v4158_v43 = vld [vmem:[#allocation4 + $0xc] sm:$0xf]  ;;  %v3351_v44 = vpop.f32.mrf.mxu1  ;;  %v3477_v4 = vor.u32 %v3476_v52, %v3472_v41  ;;  %v3473_v12 = vsel %vm5992_vm8, %v3468_v2, %v3472_v41 }
 0x36b   :  { %v3616_v16 = vsel %vm5923_vm5, %v3614_v15, %v3615_v29  ;;  %v3699_v58 = vrot.slane %v8893_v7, 7  ;;  %v3929_v8 = vld [vmem:[#allocation4 + $0x8] sm:$0xf]  ;;  %v4181_v34 = vrot.slane %v4158_v43, 7  ;;  %3722 = vrot.lane.b32.xlu0 %v3697_v26, %s5842_s13  ;;  %v3480_v46 = vshll.u32 %v8895_v59, 16  ;;  %v5771_v10 = vld [vmem:[%s9592_s4 + $0x60] sm:$0xff]  }
 0x36c   :  { %3640 = vrot.lane.b32.xlu1 %v3616_v16, %s5841_s30  ;;  %v4013_v36 = vld [vmem:[#allocation4 + $0x8] sm:$0xf]  ;;  %v3698_v17 = vrot.slane %v3696_v3, 4  ;;  %3426 = vst.msk [vmem:[#allocation4 + $0x14] sm:$0xf] %vm62_vm13, %v5369_v53  ;;  %v4023_v60 = vshrl.u32 %v4012_v61, 16  ;;  %v3354_v27 = vpop.f32.mrf.mxu1  ;;  %5490 = vmatprep.subr.bf16.mxu0 %v5771_v10 }
 0x36d   :  { %v3928_v57 = vld [vmem:[#allocation4 + $0x4] sm:$0xc]  ;;  %v8914_v1 = vld [vmem:[#allocation4 + $0xc] sm:$0xf]  ;;  %v4182_v45 = vsel %vm6668_vm6, %v4180_v6, %v4181_v34  ;;  %v3950_v22 = vrot.slane %v3929_v8, 6  ;;  %v8918_v48 = vrot.slane %v3480_v46, 5  ;;  %v5370_v41 = vpack.c.bf16 %v3354_v27, %v3354_v27 }
 0x36e   :  { %v4026_v33 = vshll.u32 %v4012_v61, 16  ;;  %v4014_v21 = vld [vmem:[#allocation4 + $0xc] sm:$0xf]  ;;  %4214 = vst.msk [vmem:[#allocation5 + $0x14] sm:$0xf] %vm62_vm13, %v4182_v45  ;;  %v3700_v24 = vsel %vm6668_vm6, %v3698_v17, %v3699_v58  ;;  %v3478_v55 = vrot.slane %v3477_v4, 4  ;;  %v3356_v56 = vpop.f32.mrf.mxu1 }
 0x36f   :  { %v4159_v51 = vld [vmem:[#allocation4 + $0x10] sm:$0xf]  ;;  %v4032_v23 = vshrl.u32 %v4013_v36, 16  ;;  %v4183_v47 = vrot.slane %v4181_v34, 4  ;;  %3554 = vrot.lane.b32.xlu0 %v3473_v12, %s5840_s25  ;;  %v5296_v32 = vrot.slane %v3928_v57, 10  ;;  %v4035_v30 = vshll.u32 %v4013_v36, 16 }
 0x370   :  { %v4184_v11 = vrot.slane %v4159_v51, 7  ;;  %3724 = vrot.lane.b32.xlu1 %v3700_v24, %s5842_s13  ;;  %v3953_v39 = vrot.slane %v8914_v1, 6  ;;  %v4025_v37 = vrot.slane %v4023_v60, 6  ;;  %v4028_v54 = vrot.slane %v4026_v33, 7  ;;  %v3357_v63 = vpop.f32.mrf.mxu1  ;;  %v5772_v2 = vld [vmem:[%s9592_s4 + $0x20] sm:$0xff]   ;;  %v5774_v60 = vld [vmem:[%s9592_s4 + $0x18] sm:$0xff]  }
 0x371   :  { %v4042_v3 = vshrl.u32 %v4014_v21, 16  ;;  %v3951_v35 = vsel %vm5913_vm3, %v5296_v32, %v3950_v22  ;;  %v3483_v49 = vsel %vm5992_vm8, %v3478_v55, %v8918_v48  ;;  %v4034_v20 = vrot.slane %v4032_v23, 6  ;;  %v8953_v26 = vld [vmem:[#allocation4 + $0xc] sm:$0xf]  ;;  %3427 = vst.msk [vmem:[#allocation4 + $0x18] sm:$0xf] %vm62_vm13, %v5370_v41  ;;  %5491 = vmatpush3.bf16.msra.mxu0 %v5772_v2 }
 0x372   :  { %v4185_v14 = vsel %vm6668_vm6, %v4183_v47, %v4184_v11  ;;  %v4186_v19 = vrot.slane %v4184_v11, 4  ;;  %v4037_v15 = vrot.slane %v4035_v30, 7  ;;  %v4045_v31 = vshll.u32 %v4014_v21, 16  ;;  %v3359_v50 = vpop.f32.mrf.mxu1  ;;  %v3876_v36 = vld [vmem:[#allocation4 + $0xc] sm:$0xf]  ;;  %v5776_v55 = vld [vmem:[%s9592_s4 + $0x10] sm:$0xff]  }
 0x373   :  { %4215 = vst.msk [vmem:[#allocation5 + $0x20] sm:$0xf] %vm62_vm13, %v4185_v14  ;;  %v4160_v40 = vld [vmem:[#allocation4 + $0x14] sm:$0xf]  ;;  %3976 = vrot.lane.b32.xlu0 %v3951_v35, %s5841_s30  ;;  %v3484_v16 = vshrl.u32 %v8895_v59, 16  ;;  %v3952_v62 = vrot.slane %v3950_v22, 4  ;;  %v4029_v43 = vor.u32 %v4028_v54, %v4025_v37  ;;  %v5371_v6 = vpack.c.bf16 %v3357_v63, %v3357_v63 }
 0x374   :  { %3556 = vrot.lane.b32.xlu1 %v3483_v49, %s5840_s25  ;;  %v4187_v61 = vrot.slane %v4160_v40, 7  ;;  %v4044_v53 = vrot.slane %v4042_v3, 6  ;;  %v8956_v8 = vpop.f32.mrf.mxu1  ;;  %v4047_v44 = vrot.slane %v4045_v31, 7  ;;  %v5773_v59 = vld [vmem:[%s9592_s4 + $0x58] sm:$0xff]   ;;  %v4038_v17 = vor.u32 %v4037_v15, %v4034_v20  ;;  %v3453_v57 = vld [vmem:[#allocation4 + $0xc] sm:$0xf] }
 0x375   :  { %v5760_v52 = vld [vmem:[#allocation5 + $0x8] ss:$12 sps:$4 sm:$0xff]   ;;  %v3954_v46 = vsel %vm5913_vm3, %v3952_v62, %v3953_v39  ;;  %v8973_v27 = vld [vmem:[#allocation4 + $0xc] sm:$0xf]  ;;  %3428 = vst.msk [vmem:[#allocation4 + $0x1c] sm:$0xf] %vm62_vm13, %v5371_v6  ;;  %5492 = vmatprep.subr.bf16.mxu0 %v5773_v59  ;;  %v5372_v40 = vpack.c.bf16 %v8956_v8, %v8956_v8 }
 0x376   :  { %v4188_v34 = vsel %vm6668_vm6, %v4186_v19, %v4187_v61  ;;  %v3364_v4 = vpop.f32.mrf.mxu1  ;;  %v4030_v45 = vrot.slane %v4029_v43, 4  ;;  %v3877_v22 = vld [vmem:[#allocation4 + $0x10] sm:$0xf]  ;;  %5629 = vmatmul.mubr.msk.bf16.vlgmr.msra.gmra.mxu1 %vm2688_vm7, %v5760_v52  ;;  %v3618_v33 = vrot.slane %v8953_v26, 5  ;;  %v8983_v51 = vor.u32 %v4047_v44, %v4044_v53  ;;  %5493 = vmatpush3.bf16.msra.mxu0 %v5774_v60  ;;  %v5777_v54 = vld [vmem:[%s9592_s4 + $0x48] sm:$0xff]  }
 0x377   :  { %4216 = vst.msk [vmem:[#allocation5 + $0x2c] sm:$0xf] %vm62_vm13, %v4188_v34  ;;  %3896 = vrot.lane.b32.xlu0 %v3876_v36, %s5840_s25  ;;  %5632 = vmatprep.mubr.msk.bf16.mxu1 %vm5844_vm0, %v9631_v18  ;;  %v3486_v12 = vrot.slane %v3484_v16, 4  ;;  %v3490_v24 = vshll.u32 %v3453_v57, 16  ;;  %v4189_v23 = vrot.slane %v4187_v61, 4  ;;  %v3617_v25 = vrot.slane %v3615_v29, 4 }
 0x378   :  { %3978 = vrot.lane.b32.xlu1 %v3954_v46, %s5841_s30  ;;  %v8978_v21 = vpop.f32.mrf.mxu1  ;;  %v4039_v56 = vsel %vm6069_vm11, %v4030_v45, %v4038_v17  ;;  %v8994_v47 = vld [vmem:[#allocation4 + $0x10] sm:$0xf]  ;;  %v3494_v11 = vshrl.u32 %v3453_v57, 16  ;;  %5494 = vmatprep.subr.bf16.mxu0 %v5775_v13  ;;  %v4040_v30 = vrot.slane %v4038_v17, 4  ;;  %v4161_v37 = vld [vmem:[#allocation4 + $0x18] sm:$0xf] }
 0x379   :  { %v3619_v3 = vsel %vm5923_vm5, %v3617_v25, %v3618_v33  ;;  %v4190_v38 = vrot.slane %v4161_v37, 7  ;;  %v3702_v29 = vrot.slane %v8973_v27, 7  ;;  %v3621_v14 = vrot.slane %v8994_v47, 5  ;;  %v9011_v20 = vld [vmem:[#allocation4 + $0x10] sm:$0xf]  ;;  %v5778_v61 = vld [vmem:[%s9592_s4 + $0x8] sm:$0xff]  }
 0x37a   :  { %v3367_v32 = vpop.f32.mrf.mxu1  ;;  %v4049_v10 = vsel %vm6069_vm11, %v4040_v30, %v8983_v51  ;;  %v3487_v35 = vor.u32 %v3486_v12, %v8918_v48  ;;  %v3492_v49 = vrot.slane %v3490_v24, 5  ;;  %v9013_v19 = vld [vmem:[#allocation4 + $0x10] sm:$0xf]  ;;  %5495 = vmatpush3.bf16.msra.mxu0 %v5776_v55  ;;  %v3496_v50 = vrot.slane %v3494_v11, 4  ;;  %3429 = vst.msk [vmem:[#allocation4 + $0x20] sm:$0xf] %vm62_vm13, %v5372_v40 }
 0x37b   :  { %4120 = vrot.lane.b32.xlu0 %v4039_v56, %s5842_s13  ;;  %v4191_v15 = vsel %vm6668_vm6, %v4189_v23, %v4190_v38  ;;  %v4192_v31 = vrot.slane %v4190_v38, 4  ;;  %5496 = vmatprep.subr.bf16.mxu0 %v5777_v54  ;;  %v3701_v62 = vrot.slane %v3699_v58, 4  ;;  %v3620_v43 = vrot.slane %v3618_v33, 4  ;;  %v5779_v44 = vld [vmem:[%s9592_s4 + $0x40] sm:$0xff]   ;;  %v9052_v60 = vld [vmem:[#allocation4 + $0x14] sm:$0xf] }
 0x37c   :  { %3898 = vrot.lane.b32.xlu1 %v3877_v22, %s5840_s25  ;;  %v9004_v63 = vpop.f32.mrf.mxu1  ;;  %v4162_v41 = vld [vmem:[#allocation4 + $0x1c] sm:$0xf]  ;;  %4217 = vst.msk [vmem:[#allocation5 + $0x38] sm:$0xf] %vm62_vm13, %v4191_v15  ;;  %v3705_v8 = vrot.slane %v9011_v20, 7  ;;  %v3500_v52 = vshll.u32 %v9013_v19, 16  ;;  %v3497_v34 = vor.u32 %v3496_v50, %v3492_v49  ;;  %v5373_v4 = vpack.c.bf16 %v8978_v21, %v8978_v21 }
 0x37d   :  { %v4193_v48 = vrot.slane %v4162_v41, 7  ;;  %v3703_v7 = vsel %vm6668_vm6, %v3701_v62, %v3702_v29  ;;  %v3622_v58 = vsel %vm5923_vm5, %v3620_v43, %v3621_v14  ;;  %v3488_v6 = vrot.slane %v3487_v35, 4  ;;  %v3931_v59 = vld [vmem:[#allocation4 + $0x10] sm:$0xf]  ;;  %v3758_v27 = vld [vmem:[#allocation4] sm:$0x8] }
 0x37e   :  { %v3372_v16 = vpop.f32.mrf.mxu1  ;;  %v5761_v2 = vld [vmem:[#allocation5 + $0x20] ss:$12 sps:$4 sm:$0xff]   ;;  %5497 = vmatpush3.bf16.msra.mxu0 %v5778_v61  ;;  %v4015_v46 = vld [vmem:[#allocation4 + $0x10] sm:$0xf]  ;;  %v3704_v57 = vrot.slane %v3702_v29, 4  ;;  %v3956_v22 = vrot.slane %v3931_v59, 6  ;;  %v5374_v1 = vpack.c.bf16 %v9004_v63, %v9004_v63 }
 0x37f   :  { %3642 = vrot.lane.b32.xlu0 %v3619_v3, %s5841_s30  ;;  %v4194_v53 = vsel %vm6668_vm6, %v4192_v31, %v4193_v48  ;;  %5633 = vmatmul.mubr.msk.bf16.gmra.mxu1 %vm2688_vm7, %v5761_v2  ;;  %v5780_v36 = vld [vmem:[%s9592_s4] sm:$0xff]   ;;  %v9058_v33 = vrot.slane %v3500_v52, 5  ;;  %v4052_v13 = vshrl.u32 %v4015_v46, 16  ;;  %v4016_v12 = vld [vmem:[#allocation4 + $0x14] sm:$0xf]  ;;  %v4195_v24 = vrot.slane %v4193_v48, 4 }
 0x380   :  { %4122 = vrot.lane.b32.xlu1 %v4049_v10, %s5842_s13  ;;  %v3373_v26 = vpop.f32.mrf.mxu1  ;;  %4218 = vst.msk [vmem:[#allocation5 + $0x44] sm:$0xf] %vm62_vm13, %v4194_v53  ;;  %5636 = vmatprep.mubr.msk.bf16.mxu1 %vm5844_vm0, %v9631_v18  ;;  %v3706_v45 = vsel %vm6668_vm6, %v3704_v57, %v3705_v8  ;;  %3430 = vst.msk [vmem:[#allocation4 + $0x24] sm:$0xf] %vm62_vm13, %v5373_v4  ;;  %v3493_v21 = vsel %vm5992_vm8, %v3488_v6, %v3492_v49  ;;  %v3498_v55 = vrot.slane %v3497_v34, 4 }
 0x381   :  { %5498 = vmatprep.subr.bf16.mxu0 %v5779_v44  ;;  %v4055_v23 = vshll.u32 %v4015_v46, 16  ;;  %v3955_v56 = vrot.slane %v3953_v39, 4  ;;  %v4163_v25 = vld [vmem:[#allocation4 + $0x20] sm:$0xf]  ;;  %v3772_v11 = vshrl.u32 %v3758_v27, 16  ;;  %v3504_v32 = vshrl.u32 %v9013_v19, 16 }
 0x382   :  { %v3374_v17 = vpop.f32.mrf.mxu1  ;;  %5499 = vmatpush3.bf16.msra.mxu0 %v5780_v36  ;;  %v9068_v30 = vld [vmem:[#allocation4 + $0x14] sm:$0xf]  ;;  %v4062_v37 = vshrl.u32 %v4016_v12, 16  ;;  %v4065_v54 = vshll.u32 %v4016_v12, 16  ;;  %v4196_v3 = vrot.slane %v4163_v25, 7  ;;  %v3958_v29 = vrot.slane %v3956_v22, 4 }
 0x383   :  { %3726 = vrot.lane.b32.xlu0 %v3703_v7, %s5842_s13  ;;  %v3957_v38 = vsel %vm5913_vm3, %v3955_v56, %v3956_v22  ;;  %v3959_v10 = vrot.slane %v9052_v60, 6  ;;  %v3503_v39 = vsel %vm5992_vm8, %v3498_v55, %v9058_v33  ;;  %v4054_v49 = vrot.slane %v4052_v13, 6  ;;  %v3455_v31 = vld [vmem:[#allocation4 + $0x14] sm:$0xf]  ;;  %3431 = vst.msk [vmem:[#allocation4 + $0x28] sm:$0xf] %vm62_vm13, %v5374_v1 }
 0x384   :  { %3644 = vrot.lane.b32.xlu1 %v3622_v58, %s5841_s30  ;;  %v4057_v19 = vrot.slane %v4055_v23, 7  ;;  %v4197_v15 = vsel %vm6668_vm6, %v4195_v24, %v4196_v3  ;;  %v4198_v41 = vrot.slane %v4196_v3, 4  ;;  %v9083_v50 = vld [vmem:[#allocation4 + $0x14] sm:$0xf]  ;;  %v3624_v63 = vrot.slane %v9068_v30, 5 }
 0x385   :  { %4219 = vst.msk [vmem:[#allocation5 + $0x50] sm:$0xf] %vm62_vm13, %v4197_v15  ;;  %v4064_v40 = vrot.slane %v4062_v37, 6  ;;  %v4067_v16 = vrot.slane %v4065_v54, 7  ;;  %v9088_v2 = vrot.slane %v3772_v11, 11  ;;  %v3506_v62 = vrot.slane %v3504_v32, 4 }
 0x386   :  { %v3510_v43 = vshll.u32 %v3455_v31, 16  ;;  %v3514_v26 = vshrl.u32 %v3455_v31, 16  ;;  %v3960_v53 = vsel %vm5913_vm3, %v3958_v29, %v3959_v10  ;;  %v3878_v52 = vld [vmem:[#allocation4 + $0x14] sm:$0xf]  ;;  %v4050_v44 = vrot.slane %v8983_v51, 4 }
 0x387   :  { %3558 = vrot.lane.b32.xlu0 %v3493_v21, %s5840_s25  ;;  %v5762_v35 = vld [vmem:[#allocation5 + $0x38] ss:$12 sps:$4 sm:$0xff]   ;;  %v4058_v7 = vor.u32 %v4057_v19, %v4054_v49  ;;  %v3879_v58 = vld [vmem:[#allocation4 + $0x18] sm:$0xf]  ;;  %v3623_v6 = vrot.slane %v3621_v14, 4  ;;  %v3707_v59 = vrot.slane %v3705_v8, 4  ;;  %v9110_v57 = vor.u32 %v4067_v16, %v4064_v40 }
 0x388   :  { %3728 = vrot.lane.b32.xlu1 %v3706_v45, %s5842_s13  ;;  %v4164_v48 = vld [vmem:[#allocation4 + $0x24] sm:$0xf]  ;;  %5637 = vmatmul.mubr.msk.bf16.gmra.mxu1 %vm2688_vm7, %v5762_v35  ;;  %v3708_v34 = vrot.slane %v9083_v50, 7  ;;  %v9104_v46 = vld [vmem:[#allocation4 + $0x18] sm:$0xf]  ;;  %v3626_v47 = vrot.slane %v3624_v63, 4  ;;  %v3507_v8 = vor.u32 %v3506_v62, %v9058_v33 }
 0x389   :  { %v4199_v61 = vrot.slane %v4164_v48, 7  ;;  %5640 = vmatprep.mubr.msk.bf16.mxu1 %vm5844_vm0, %v9631_v18  ;;  %v9108_v51 = vld [vmem:[#allocation4 + $0x18] sm:$0xf]  ;;  %v4060_v17 = vrot.slane %v4058_v7, 4  ;;  %v9116_v27 = vrot.slane %v3510_v43, 5  ;;  %v3516_v45 = vrot.slane %v3514_v26, 4 }
 0x38a   :  { %v3933_v14 = vld [vmem:[#allocation4 + $0x18] sm:$0xf]  ;;  %v3433_v22 = vld [vmem:[#allocation4 + $0x4] sm:$0xf]  ;;  %v4059_v13 = vsel %vm6069_vm11, %v4050_v44, %v4058_v7  ;;  %v9120_v12 = vld [vmem:[#allocation4 + $0x1c] sm:$0xf]  ;;  %v3625_v25 = vsel %vm5923_vm5, %v3623_v6, %v3624_v63 }
 0x38b   :  { %3980 = vrot.lane.b32.xlu0 %v3957_v38, %s5841_s30  ;;  %v4200_v36 = vsel %vm6668_vm6, %v4198_v41, %v4199_v61  ;;  %v9113_v4 = vld [vmem:[#allocation4 + $0x18] sm:$0xf]  ;;  %v4201_v20 = vrot.slane %v4199_v61, 4  ;;  %v4165_v24 = vld [vmem:[#allocation4 + $0x28] sm:$0x7]  ;;  %v3627_v33 = vrot.slane %v9104_v46, 5  ;;  %v4069_v11 = vsel %vm6069_vm11, %v4060_v17, %v9110_v57 }
 0x38c   :  { %3560 = vrot.lane.b32.xlu1 %v3503_v39, %s5840_s25  ;;  %4220 = vst.msk [vmem:[#allocation5 + $0x5c] sm:$0xf] %vm62_vm13, %v4200_v36  ;;  %3442 = vst.msk [vmem:[#allocation5 + $0xc] sm:$0xf] %vm62_vm13, %v3433_v22  ;;  %v3710_v21 = vrot.slane %v3708_v34, 4  ;;  %v3711_v55 = vrot.slane %v9108_v51, 7  ;;  %v3517_v38 = vor.u32 %v3516_v45, %v9116_v27  ;;  %v3709_v41 = vsel %vm6668_vm6, %v3707_v59, %v3708_v34 }
 0x38d   :  { %v4017_v23 = vld [vmem:[#allocation4 + $0x18] sm:$0xf]  ;;  %v4202_v56 = vrot.slane %v4165_v24, 7  ;;  %v3961_v32 = vrot.slane %v3959_v10, 4  ;;  %v3962_v30 = vrot.slane %v3933_v14, 6  ;;  %v9134_v3 = vrot.slane %v3507_v8, 4 }
 0x38e   :  { %v3759_v37 = vld [vmem:[#allocation4 + $0x4] sm:$0xf]  ;;  %v3434_v54 = vld [vmem:[#allocation4 + $0x8] sm:$0xf]  ;;  %v3520_v29 = vshll.u32 %v9113_v4, 16  ;;  %v3965_v60 = vrot.slane %v9120_v12, 6  ;;  %v3628_v50 = vsel %vm5923_vm5, %v3626_v47, %v3627_v33  ;;  %v3712_v63 = vsel %vm6668_vm6, %v3710_v21, %v3711_v55 }
 0x38f   :  { %3900 = vrot.lane.b32.xlu0 %v3878_v52, %s5840_s25  ;;  %v4018_v35 = vld [vmem:[#allocation4 + $0x1c] sm:$0xf]  ;;  %v4203_v1 = vsel %vm6668_vm6, %v4201_v20, %v4202_v56  ;;  %3443 = vst.msk [vmem:[#allocation5 + $0x18] sm:$0xf] %vm62_vm13, %v3434_v54  ;;  %v3435_v39 = vld [vmem:[#allocation4 + $0xc] sm:$0xf]  ;;  %v9161_v48 = vsel %vm5913_vm3, %v3961_v32, %v3962_v30  ;;  %v3513_v6 = vsel %vm5992_vm8, %v9134_v3, %v9116_v27 }
 0x390   :  { %3982 = vrot.lane.b32.xlu1 %v3960_v53, %s5841_s30  ;;  %v3964_v49 = vrot.slane %v3962_v30, 4  ;;  %v4072_v10 = vshrl.u32 %v4017_v23, 16  ;;  %v4075_v19 = vshll.u32 %v4017_v23, 16  ;;  %4221 = vst.msk [vmem:[#allocation5 + $0x68] sm:$0xf] %vm62_vm13, %v4203_v1  ;;  %v3524_v61 = vshrl.u32 %v9113_v4, 16 }
 0x391   :  { %v3760_v15 = vld [vmem:[#allocation4 + $0x8] sm:$0xf]  ;;  %3444 = vst.msk [vmem:[#allocation5 + $0x24] sm:$0xf] %vm62_vm13, %v3435_v39  ;;  %v3436_v31 = vld [vmem:[#allocation4 + $0x10] sm:$0xf] }
 0x392   :  { %v9156_v16 = vld [vmem:[#allocation4 + $0x20] sm:$0xf]  ;;  %3445 = vst.msk [vmem:[#allocation5 + $0x30] sm:$0xf] %vm62_vm13, %v3436_v31  ;;  %v4082_v62 = vshrl.u32 %v4018_v35, 16  ;;  %v4085_v43 = vshll.u32 %v4018_v35, 16  ;;  %v9179_v59 = vsel %vm5913_vm3, %v3964_v49, %v3965_v60 }
 0x393   :  { %4124 = vrot.lane.b32.xlu0 %v4059_v13, %s5842_s13  ;;  %v5763_v40 = vld [vmem:[#allocation5 + $0x50] ss:$12 sps:$4 sm:$0xff]   ;;  %v3437_v26 = vld [vmem:[#allocation4 + $0x14] sm:$0xf]  ;;  %v9164_v53 = vrot.slane %v3517_v38, 4  ;;  %v9166_v52 = vrot.slane %v3520_v29, 5 }
 0x394   :  { %3902 = vrot.lane.b32.xlu1 %v3879_v58, %s5840_s25  ;;  %v4070_v44 = vrot.slane %v9110_v57, 4  ;;  %5641 = vmatmul.mubr.msk.bf16.gmra.mxu1 %vm2688_vm7, %v5763_v40  ;;  %v3777_v7 = vshrl.u32 %v3759_v37, 16  ;;  %v3761_v58 = vld [vmem:[#allocation4 + $0xc] sm:$0xf]  ;;  %3446 = vst.msk [vmem:[#allocation5 + $0x3c] sm:$0xf] %vm62_vm13, %v3437_v26 }
 0x395   :  { %v9181_v34 = vrot.slane %v4072_v10, 6  ;;  %v3540_v36 = vshll.u32 %v9156_v16, 16  ;;  %5644 = vmatprep.mubr.msk.bf16.mxu1 %vm5844_vm0, %v9631_v18  ;;  %v3762_v17 = vld [vmem:[#allocation4 + $0x10] sm:$0xf]  ;;  %v3438_v47 = vld [vmem:[#allocation4 + $0x18] sm:$0xf] }
 0x396   :  { %v4077_v14 = vrot.slane %v4075_v19, 7  ;;  %v3779_v20 = vrot.slane %v3777_v7, 7  ;;  %v3780_v8 = vshll.u32 %v3759_v37, 16  ;;  %v3786_v27 = vshrl.u32 %v3760_v15, 16  ;;  %3447 = vst.msk [vmem:[#allocation5 + $0x48] sm:$0xf] %vm62_vm13, %v3438_v47 }
 0x397   :  { %3646 = vrot.lane.b32.xlu0 %v3625_v25, %s5841_s30  ;;  %v3439_v45 = vld [vmem:[#allocation4 + $0x1c] sm:$0xf]  ;;  %v9189_v22 = vrot.slane %v4082_v62, 6  ;;  %v9191_v13 = vrot.slane %v4085_v43, 7  ;;  %v3544_v24 = vshrl.u32 %v9156_v16, 16  ;;  %v3795_v23 = vshrl.u32 %v3761_v58, 16 }
 0x398   :  { %4126 = vrot.lane.b32.xlu1 %v4069_v11, %s5842_s13  ;;  %v3763_v56 = vld [vmem:[#allocation4 + $0x14] sm:$0xf]  ;;  %3448 = vst.msk [vmem:[#allocation5 + $0x54] sm:$0xf] %vm62_vm13, %v3439_v45  ;;  %v3523_v25 = vsel %vm5992_vm8, %v9164_v53, %v9166_v52  ;;  %v3782_v32 = vor.u32 %v3780_v8, %v3779_v20  ;;  %v3788_v30 = vrot.slane %v3786_v27, 7  ;;  %v3789_v37 = vshll.u32 %v3760_v15, 16 }
 0x399   :  { %v5764_v11 = vld [vmem:[#allocation5 + $0x68] ss:$0 sps:$4 sm:$0xff]   ;;  %v9205_v54 = vrot.slane %v3540_v36, 5  ;;  %v3797_v3 = vrot.slane %v3795_v23, 7  ;;  %v3798_v38 = vshll.u32 %v3761_v58, 16  ;;  %v3804_v29 = vshrl.u32 %v3762_v17, 16 }
 0x39a   :  { %v3764_v35 = vld [vmem:[#allocation4 + $0x18] sm:$0xf]  ;;  %v3783_v1 = vsel %vm9196_vm4, %v9088_v2, %v3782_v32  ;;  %v3784_v39 = vrot.slane %v3779_v20, 4  ;;  %v3791_v49 = vor.u32 %v3789_v37, %v3788_v30  ;;  %v3807_v10 = vshll.u32 %v3762_v17, 16  ;;  %v3765_v19 = vld [vmem:[#allocation4 + $0x1c] sm:$0xf] }
 0x39b   :  { %3730 = vrot.lane.b32.xlu0 %v3709_v41, %s5842_s13  ;;  %3865 = vst.msk [vmem:[#allocation5 + $0x4] sm:$0xf] %vm62_vm13, %v3783_v1  ;;  %v3793_v15 = vrot.slane %v3788_v30, 4  ;;  %v3800_v31 = vor.u32 %v3798_v38, %v3797_v3  ;;  %v3802_v41 = vrot.slane %v3797_v3, 4  ;;  %v3766_v40 = vld [vmem:[#allocation4 + $0x20] sm:$0xf]  ;;  %v9247_v46 = vor.u32 %v9191_v13, %v9189_v22 }
 0x39c   :  { %3648 = vrot.lane.b32.xlu1 %v3628_v50, %s5841_s30  ;;  %v3806_v50 = vrot.slane %v3804_v29, 7  ;;  %5645 = vmatmul.mubr.msk.bf16.gmra.mxu1 %vm2688_vm7, %v5764_v11  ;;  %v3813_v16 = vshrl.u32 %v3763_v56, 16  ;;  %v3816_v62 = vshll.u32 %v3763_v56, 16  ;;  %v3822_v43 = vshrl.u32 %v3764_v35, 16  ;;  %v3440_v2 = vld [vmem:[#allocation4 + $0x20] sm:$0xf] }
 0x39d   :  { %v3801_v26 = vsel %vm9196_vm4, %v3793_v15, %v3800_v31  ;;  %v3825_v58 = vshll.u32 %v3764_v35, 16  ;;  %3449 = vst.msk [vmem:[#allocation5 + $0x60] sm:$0xf] %vm62_vm13, %v3440_v2  ;;  %5664 = vmatprep.mubr.msk.bf16.mxu1 %vm5844_vm0, %v9631_v18  ;;  %v3831_v17 = vshrl.u32 %v3765_v19, 16  ;;  %v3834_v47 = vshll.u32 %v3765_v19, 16 }
 0x39e   :  { %v3809_v53 = vor.u32 %v3807_v10, %v3806_v50  ;;  %v3811_v7 = vrot.slane %v3806_v50, 4  ;;  %3867 = vst.msk [vmem:[#allocation5 + $0x1c] sm:$0xf] %vm62_vm13, %v3801_v26  ;;  %v3824_v36 = vrot.slane %v3822_v43, 7  ;;  %v3597_v20 = vld [vmem:[#allocation4 + $0x1c] sm:$0xf]  ;;  %v4078_v11 = vor.u32 %v4077_v14, %v9181_v34 }
 0x39f   :  { %3562 = vrot.lane.b32.xlu0 %v3513_v6, %s5840_s25  ;;  %v3815_v6 = vrot.slane %v3813_v16, 7  ;;  %v3840_v27 = vshrl.u32 %v3766_v40, 16  ;;  %v3843_v45 = vshll.u32 %v3766_v40, 16  ;;  %v9228_v23 = vrot.slane %v3544_v24, 4  ;;  %v3880_v56 = vld [vmem:[#allocation4 + $0x1c] sm:$0xf] }
 0x3a0   :  { %3732 = vrot.lane.b32.xlu1 %v3712_v63, %s5842_s13  ;;  %v3792_v63 = vsel %vm9196_vm4, %v3784_v39, %v3791_v49  ;;  %v3810_v8 = vsel %vm9196_vm4, %v3802_v41, %v3809_v53  ;;  %v3827_v32 = vor.u32 %v3825_v58, %v3824_v36  ;;  %v3457_v30 = vld [vmem:[#allocation4 + $0x1c] sm:$0xf]  ;;  %v3829_v37 = vrot.slane %v3824_v36, 4  ;;  %v3881_v1 = vld [vmem:[#allocation4 + $0x20] sm:$0xf] }
 0x3a1   :  { %3866 = vst.msk [vmem:[#allocation5 + $0x10] sm:$0xf] %vm62_vm13, %v3792_v63  ;;  %3868 = vst.msk [vmem:[#allocation5 + $0x28] sm:$0xf] %vm62_vm13, %v3810_v8  ;;  %v3833_v3 = vrot.slane %v3831_v17, 7  ;;  %v3842_v38 = vrot.slane %v3840_v27, 7  ;;  %v3547_v29 = vor.u32 %v9228_v23, %v9205_v54  ;;  %v4079_v41 = vsel %vm6069_vm11, %v4070_v44, %v4078_v11 }
 0x3a2   :  { %v3629_v34 = vrot.slane %v3627_v33, 4  ;;  %v3630_v14 = vrot.slane %v3597_v20, 5  ;;  %v3681_v39 = vld [vmem:[#allocation4 + $0x1c] sm:$0xf]  ;;  %v3526_v33 = vrot.slane %v3524_v61, 4  ;;  %v3530_v19 = vshll.u32 %v3457_v30, 16 }
 0x3a3   :  { %3984 = vrot.lane.b32.xlu0 %v9161_v48, %s5841_s30  ;;  %v3818_v48 = vor.u32 %v3816_v62, %v3815_v6  ;;  %v3836_v49 = vor.u32 %v3834_v47, %v3833_v3  ;;  %v3845_v10 = vor.u32 %v3843_v45, %v3842_v38  ;;  %v3534_v15 = vshrl.u32 %v3457_v30, 16  ;;  %v3767_v31 = vld [vmem:[#allocation4 + $0x24] sm:$0xf]  ;;  %v9263_v61 = vld [vmem:[#allocation4 + $0x20] sm:$0xf] }
 0x3a4   :  { %3564 = vrot.lane.b32.xlu1 %v3523_v25, %s5840_s25  ;;  %v3820_v25 = vrot.slane %v3815_v6, 4  ;;  %v4080_v50 = vrot.slane %v4078_v11, 4  ;;  %v3631_v4 = vsel %vm5923_vm5, %v3629_v34, %v3630_v14  ;;  %v3713_v57 = vrot.slane %v3711_v55, 4  ;;  %v4019_v51 = vld [vmem:[#allocation4 + $0x20] sm:$0xf] }
 0x3a5   :  { %v3819_v24 = vsel %vm9196_vm4, %v3811_v7, %v3818_v48  ;;  %v3837_v40 = vsel %vm9196_vm4, %v3829_v37, %v3836_v49  ;;  %v3714_v44 = vrot.slane %v3681_v39, 7  ;;  %v3632_v22 = vrot.slane %v3630_v14, 4  ;;  %v9274_v7 = vld [vmem:[#allocation4 + $0x20] sm:$0xf]  ;;  %v4020_v48 = vld [vmem:[#allocation4 + $0x24] sm:$0xf] }
 0x3a6   :  { %v3828_v35 = vsel %vm9196_vm4, %v3820_v25, %v3827_v32  ;;  %3869 = vst.msk [vmem:[#allocation5 + $0x34] sm:$0xf] %vm62_vm13, %v3819_v24  ;;  %3871 = vst.msk [vmem:[#allocation5 + $0x4c] sm:$0xf] %vm62_vm13, %v3837_v40  ;;  %v3849_v13 = vshrl.u32 %v3767_v31, 16  ;;  %v3527_v16 = vor.u32 %v3526_v33, %v9166_v52  ;;  %v3532_v62 = vrot.slane %v3530_v19, 5 }
 0x3a7   :  { %3904 = vrot.lane.b32.xlu0 %v3880_v56, %s5840_s25  ;;  %3870 = vst.msk [vmem:[#allocation5 + $0x40] sm:$0xf] %vm62_vm13, %v3828_v35  ;;  %v3536_v43 = vrot.slane %v3534_v15, 4  ;;  %v3852_v2 = vshll.u32 %v3767_v31, 16  ;;  %v4089_v26 = vsel %vm6069_vm11, %v4080_v50, %v9247_v46  ;;  %v3633_v53 = vrot.slane %v9263_v61, 5 }
 0x3a8   :  { %3986 = vrot.lane.b32.xlu1 %v9179_v59, %s5841_s30  ;;  %v3838_v59 = vrot.slane %v3833_v3, 4  ;;  %v3847_v58 = vrot.slane %v3842_v38, 4  ;;  %v3851_v6 = vrot.slane %v3849_v13, 7  ;;  %v3715_v55 = vsel %vm6668_vm6, %v3713_v57, %v3714_v44  ;;  %v3935_v27 = vld [vmem:[#allocation4 + $0x20] sm:$0xf] }
 0x3a9   :  { %v3528_v36 = vrot.slane %v3527_v16, 4  ;;  %v3716_v17 = vrot.slane %v3714_v44, 4  ;;  %v3717_v47 = vrot.slane %v9274_v7, 7  ;;  %v3537_v20 = vor.u32 %v3536_v43, %v3532_v62  ;;  %v9298_v34 = vld [vmem:[#allocation4 + $0x24] sm:$0xf] }
 0x3aa   :  { %v3846_v63 = vsel %vm9196_vm4, %v3838_v59, %v3845_v10  ;;  %v3854_v52 = vor.u32 %v3852_v2, %v3851_v6  ;;  %v3634_v8 = vsel %vm5923_vm5, %v3632_v22, %v3633_v53  ;;  %v4092_v45 = vshrl.u32 %v4019_v51, 16  ;;  %v4730_v7 = vld [vmem:[#allocation8 + $0x1] sm:$0x1] }
 0x3ab   :  { %4128 = vrot.lane.b32.xlu0 %v4079_v41, %s5842_s13  ;;  %3872 = vst.msk [vmem:[#allocation5 + $0x58] sm:$0xf] %vm62_vm13, %v3846_v63  ;;  %v4095_v56 = vshll.u32 %v4019_v51, 16  ;;  %v3967_v25 = vrot.slane %v3965_v60, 4  ;;  %v3533_v32 = vsel %vm5992_vm8, %v3528_v36, %v3532_v62  ;;  %v3718_v30 = vsel %vm6668_vm6, %v3716_v17, %v3717_v47 }
 0x3ac   :  { %3906 = vrot.lane.b32.xlu1 %v3881_v1, %s5840_s25  ;;  %v3855_v11 = vsel %vm9196_vm4, %v3847_v58, %v3854_v52  ;;  %v3968_v21 = vrot.slane %v3935_v27, 6  ;;  %v3538_v37 = vrot.slane %v3537_v20, 4  ;;  %v4094_v3 = vrot.slane %v4092_v45, 6 }
 0x3ad   :  { %3873 = vst.msk [vmem:[#allocation5 + $0x64] sm:$0xf] %vm62_vm13, %v3855_v11  ;;  %v4097_v38 = vrot.slane %v4095_v56, 7  ;;  %v4102_v14 = vshrl.u32 %v4020_v48, 16  ;;  %v4105_v24 = vshll.u32 %v4020_v48, 16  ;;  %v4090_v60 = vrot.slane %v9247_v46, 4 }
 0x3ae   :  { %v3969_v12 = vsel %vm5913_vm3, %v3967_v25, %v3968_v21  ;;  %v3970_v35 = vrot.slane %v3968_v21, 4  ;;  %v3971_v1 = vrot.slane %v9298_v34, 6  ;;  %v3543_v39 = vsel %vm5992_vm8, %v3538_v37, %v9205_v54 }
 0x3af   :  { %3650 = vrot.lane.b32.xlu0 %v3631_v4, %s5841_s30  ;;  %v4098_v49 = vor.u32 %v4097_v38, %v4094_v3  ;;  %v4104_v59 = vrot.slane %v4102_v14, 6  ;;  %v4107_v10 = vrot.slane %v4105_v24, 7  ;;  %vm4723_vm13 = vcmask 1040896  }
 0x3b0   :  { %4130 = vrot.lane.b32.xlu1 %v4089_v26, %s5842_s13  ;;  %v3972_v46 = vsel %vm5913_vm3, %v3970_v35, %v3971_v1  ;;  %vm4777_vm0 = vsmask.f32 7938 }
 0x3b1   :  { %v4099_v33 = vsel %vm6069_vm11, %v4090_v60, %v4098_v49  ;;  %v4100_v19 = vrot.slane %v4098_v49, 4  ;;  %v9317_v15 = vor.u32 %v4107_v10, %v4104_v59  ;;  %vm9383_vm7 = vmand %vm4723_vm13, %vm4777_vm0 }
 0x3b3   :  { %3734 = vrot.lane.b32.xlu0 %v3715_v55, %s5842_s13  ;;  %v4109_v31 = vsel %vm6069_vm11, %v4100_v19, %v9317_v15 }
 0x3b4   :  { %3652 = vrot.lane.b32.xlu1 %v3634_v8, %s5841_s30 }
 0x3b7   :  { %3566 = vrot.lane.b32.xlu0 %v3533_v32, %s5840_s25 }
 0x3b8   :  { %3736 = vrot.lane.b32.xlu1 %v3718_v30, %s5842_s13 }
 0x3bb   :  { %3988 = vrot.lane.b32.xlu0 %v3969_v12, %s5841_s30 }
 0x3bc   :  { %3568 = vrot.lane.b32.xlu1 %v3543_v39, %s5840_s25 }
 0x3bf   :  { %4132 = vrot.lane.b32.xlu0 %v4099_v33, %s5842_s13 }
 0x3c0   :  { %3990 = vrot.lane.b32.xlu1 %v3972_v46, %s5841_s30 }
 0x3c4   :  { %4134 = vrot.lane.b32.xlu1 %v4109_v31, %s5842_s13 }
 0x3d5   :  { %v3893_v41 = vpop.permute.xlu0 %3892 }
 0x3d6   :  { %3919 = vst.msk [vmem:[#allocation5 + $0x4] sm:$0xf] %vm446_vm9, %v3893_v41 }
 0x3d9   :  { %v3639_v50 = vpop.permute.xlu0 %3638 }
 0x3da   :  { %v3895_v40 = vpop.permute.xlu1 %3894 }
 0x3db   :  { %3920 = vst.msk [vmem:[#allocation5 + $0x10] sm:$0xf] %vm446_vm9, %v3895_v40 }
 0x3dd   :  { %v3723_v63 = vpop.permute.xlu0 %3722 }
 0x3de   :  { %v3641_v4 = vpop.permute.xlu1 %3640 }
 0x3e1   :  { %v3555_v57 = vpop.permute.xlu0 %3554 }
 0x3e2   :  { %v3725_v44 = vpop.permute.xlu1 %3724  ;;  %3581 = vst.msk [vmem:[#allocation5] sm:$0xf] %vm446_vm9, %v3555_v57 }
 0x3e3   :  { %3665 = vst.msk [vmem:[#allocation5] sm:$0xf] %vm678_vm10, %v3639_v50 }
 0x3e4   :  { %3749 = vst.msk [vmem:[#allocation5] sm:$0xf] %vm907_vm12, %v3723_v63 }
 0x3e5   :  { %v3977_v22 = vpop.permute.xlu0 %3976 }
 0x3e6   :  { %v3557_v13 = vpop.permute.xlu1 %3556  ;;  %4003 = vst.msk [vmem:[#allocation5 + $0x4] sm:$0xf] %vm678_vm10, %v3977_v22 }
 0x3e7   :  { %3582 = vst.msk [vmem:[#allocation5 + $0xc] sm:$0xf] %vm446_vm9, %v3557_v13 }
 0x3e8   :  { %3666 = vst.msk [vmem:[#allocation5 + $0xc] sm:$0xf] %vm678_vm10, %v3641_v4 }
 0x3e9   :  { %3750 = vst.msk [vmem:[#allocation5 + $0xc] sm:$0xf] %vm907_vm12, %v3725_v44  ;;  %v3897_v62 = vpop.permute.xlu0 %3896 }
 0x3ea   :  { %v3979_v16 = vpop.permute.xlu1 %3978  ;;  %3921 = vst.msk [vmem:[#allocation5 + $0x1c] sm:$0xf] %vm446_vm9, %v3897_v62 }
 0x3eb   :  { %4004 = vst.msk [vmem:[#allocation5 + $0x10] sm:$0xf] %vm678_vm10, %v3979_v16 }
 0x3ed   :  { %v4121_v43 = vpop.permute.xlu0 %4120 }
 0x3ee   :  { %v3899_v2 = vpop.permute.xlu1 %3898  ;;  %4147 = vst.msk [vmem:[#allocation5 + $0x4] sm:$0xf] %vm907_vm12, %v4121_v43 }
 0x3ef   :  { %3922 = vst.msk [vmem:[#allocation5 + $0x28] sm:$0xf] %vm446_vm9, %v3899_v2 }
 0x3f0   :  { %v5781_v36 = vld [vmem:[#allocation5] ss:$12 sps:$4 sm:$0xff]  }
 0x3f1   :  { %v3643_v26 = vpop.permute.xlu0 %3642 }
 0x3f2   :  { %v4123_v58 = vpop.permute.xlu1 %4122 }
 0x3f3   :  { %4148 = vst.msk [vmem:[#allocation5 + $0x10] sm:$0xf] %vm907_vm12, %v4123_v58 }
 0x3f5   :  { %v3727_v6 = vpop.permute.xlu0 %3726 }
 0x3f6   :  { %v3645_v51 = vpop.permute.xlu1 %3644 }
 0x3f9   :  { %v3559_v55 = vpop.permute.xlu0 %3558 }
 0x3fa   :  { %v3729_v52 = vpop.permute.xlu1 %3728  ;;  %v5783_v17 = vld [vmem:[#allocation5 + $0x4] ss:$12 sps:$4 sm:$0xff]   ;;  %3583 = vst.msk [vmem:[#allocation5 + $0x18] sm:$0xf] %vm446_vm9, %v3559_v55 }
 0x3fb   :  { %3667 = vst.msk [vmem:[#allocation5 + $0x18] sm:$0xf] %vm678_vm10, %v3643_v26  ;;  %4508 = vmatprep.mubr.bf16.mxu0 %v5783_v17 }
 0x3fc   :  { %3751 = vst.msk [vmem:[#allocation5 + $0x18] sm:$0xf] %vm907_vm12, %v3727_v6  ;;  %4509 = vmatmul.mubr.bf16.vlgmr.msra.gmra.mxu0 %v5781_v36 }
 0x3fd   :  { %v3981_v20 = vpop.permute.xlu0 %3980 }
 0x3fe   :  { %v3561_v8 = vpop.permute.xlu1 %3560  ;;  %4005 = vst.msk [vmem:[#allocation5 + $0x1c] sm:$0xf] %vm678_vm10, %v3981_v20 }
 0x3ff   :  { %3584 = vst.msk [vmem:[#allocation5 + $0x24] sm:$0xf] %vm446_vm9, %v3561_v8 }
 0x400   :  { %3668 = vst.msk [vmem:[#allocation5 + $0x24] sm:$0xf] %vm678_vm10, %v3645_v51 }
 0x401   :  { %3752 = vst.msk [vmem:[#allocation5 + $0x24] sm:$0xf] %vm907_vm12, %v3729_v52  ;;  %v3901_v45 = vpop.permute.xlu0 %3900 }
 0x402   :  { %v3983_v27 = vpop.permute.xlu1 %3982  ;;  %3923 = vst.msk [vmem:[#allocation5 + $0x34] sm:$0xf] %vm446_vm9, %v3901_v45 }
 0x403   :  { %4006 = vst.msk [vmem:[#allocation5 + $0x28] sm:$0xf] %vm678_vm10, %v3983_v27 }
 0x405   :  { %v4125_v56 = vpop.permute.xlu0 %4124 }
 0x406   :  { %v3903_v11 = vpop.permute.xlu1 %3902  ;;  %4149 = vst.msk [vmem:[#allocation5 + $0x1c] sm:$0xf] %vm907_vm12, %v4125_v56 }
 0x407   :  { %3924 = vst.msk [vmem:[#allocation5 + $0x40] sm:$0xf] %vm446_vm9, %v3903_v11 }
 0x409   :  { %v3647_v48 = vpop.permute.xlu0 %3646 }
 0x40a   :  { %v4127_v25 = vpop.permute.xlu1 %4126 }
 0x40b   :  { %4150 = vst.msk [vmem:[#allocation5 + $0x28] sm:$0xf] %vm907_vm12, %v4127_v25 }
 0x40d   :  { %v3731_v32 = vpop.permute.xlu0 %3730  ;;  %v4226_v3 = vld [vmem:[#allocation5 + $0x18] sm:$0xff] }
 0x40e   :  { %v3649_v30 = vpop.permute.xlu1 %3648 }
 0x411   :  { %v3563_v21 = vpop.permute.xlu0 %3562 }
 0x412   :  { %v3733_v37 = vpop.permute.xlu1 %3732  ;;  %v4228_v38 = vld [vmem:[#allocation5 + $0x24] sm:$0xff]  ;;  %3585 = vst.msk [vmem:[#allocation5 + $0x30] sm:$0xf] %vm446_vm9, %v3563_v21 }
 0x413   :  { %v5784_v14 = vld [vmem:[#allocation5 + $0x1c] ss:$12 sps:$4 sm:$0xff]   ;;  %v5302_v24 = vcombine.low %v4226_v3, %v4228_v38  ;;  %3669 = vst.msk [vmem:[#allocation5 + $0x30] sm:$0xf] %vm678_vm10, %v3647_v48  ;;  %v9390_v38 = vld [vmem:[%s9593_s5] ss:$0 sm:$0xff] }
 0x414   :  { %4516 = vmatprep.mubr.bf16.mxu0 %v5784_v14  ;;  %3753 = vst.msk [vmem:[#allocation5 + $0x30] sm:$0xf] %vm907_vm12, %v3731_v32  ;;  %s5180_s5 = sshll.u32 %s5848_s16, 4  ;;  %s5181_s5 = int_to_ptr.vmem [resolvable:$true] %s5180_s5 }
 0x415   :  { %4517 = vmatmul.mubr.bf16.gmra.mxu0 %v5302_v24  ;;  %v3985_v12 = vpop.permute.xlu0 %3984  ;;  %p5823_p1 = scmp.lt.s32.totalorder %s5181_s5, %s5181_s5 }
 0x416   :  { %v3565_v60 = vpop.permute.xlu1 %3564  ;;  %4007 = vst.msk [vmem:[#allocation5 + $0x34] sm:$0xf] %vm678_vm10, %v3985_v12 }
 0x417   :  { %3586 = vst.msk [vmem:[#allocation5 + $0x3c] sm:$0xf] %vm446_vm9, %v3565_v60 }
 0x418   :  { %3670 = vst.msk [vmem:[#allocation5 + $0x3c] sm:$0xf] %vm678_vm10, %v3649_v30 }
 0x419   :  { %3754 = vst.msk [vmem:[#allocation5 + $0x3c] sm:$0xf] %vm907_vm12, %v3733_v37  ;;  %v3905_v39 = vpop.permute.xlu0 %3904  ;;  %v5810_v37 = vld [vmem:[%s9596_s8 + $0x30] sm:$0xff]  }
 0x41a   :  { %v3987_v35 = vpop.permute.xlu1 %3986  ;;  %3925 = vst.msk [vmem:[#allocation5 + $0x4c] sm:$0xf] %vm446_vm9, %v3905_v39 }
 0x41b   :  { %4008 = vst.msk [vmem:[#allocation5 + $0x40] sm:$0xf] %vm678_vm10, %v3987_v35 }
 0x41d   :  { %v4129_v49 = vpop.permute.xlu0 %4128 }
 0x41e   :  { %v3907_v59 = vpop.permute.xlu1 %3906  ;;  %4151 = vst.msk [vmem:[#allocation5 + $0x34] sm:$0xf] %vm907_vm12, %v4129_v49 }
 0x41f   :  { %3926 = vst.msk [vmem:[#allocation5 + $0x58] sm:$0xf] %vm446_vm9, %v3907_v59 }
 0x421   :  { %v3651_v10 = vpop.permute.xlu0 %3650 }
 0x422   :  { %v4131_v33 = vpop.permute.xlu1 %4130 }
 0x423   :  { %4152 = vst.msk [vmem:[#allocation5 + $0x40] sm:$0xf] %vm907_vm12, %v4131_v33 }
 0x425   :  { %v3735_v46 = vpop.permute.xlu0 %3734  ;;  %v4230_v50 = vld [vmem:[#allocation5 + $0x30] sm:$0xff] }
 0x426   :  { %v3653_v19 = vpop.permute.xlu1 %3652 }
 0x429   :  { %v3567_v31 = vpop.permute.xlu0 %3566 }
 0x42a   :  { %v3737_v41 = vpop.permute.xlu1 %3736  ;;  %v4232_v40 = vld [vmem:[#allocation5 + $0x3c] sm:$0xff]  ;;  %3587 = vst.msk [vmem:[#allocation5 + $0x48] sm:$0xf] %vm446_vm9, %v3567_v31 }
 0x42b   :  { %v5786_v63 = vld [vmem:[#allocation5 + $0x34] ss:$12 sps:$4 sm:$0xff]   ;;  %v5305_v4 = vcombine.low %v4230_v50, %v4232_v40  ;;  %3671 = vst.msk [vmem:[#allocation5 + $0x48] sm:$0xf] %vm678_vm10, %v3651_v10 }
 0x42c   :  { %4524 = vmatprep.mubr.bf16.mxu0 %v5786_v63  ;;  %3755 = vst.msk [vmem:[#allocation5 + $0x48] sm:$0xf] %vm907_vm12, %v3735_v46 }
 0x42d   :  { %4525 = vmatmul.mubr.bf16.gmra.mxu0 %v5305_v4  ;;  %v3989_v57 = vpop.permute.xlu0 %3988 }
 0x42e   :  { %v3569_v44 = vpop.permute.xlu1 %3568  ;;  %4009 = vst.msk [vmem:[#allocation5 + $0x4c] sm:$0xf] %vm678_vm10, %v3989_v57 }
 0x42f   :  { %3588 = vst.msk [vmem:[#allocation5 + $0x54] sm:$0xf] %vm446_vm9, %v3569_v44 }
 0x430   :  { %3672 = vst.msk [vmem:[#allocation5 + $0x54] sm:$0xf] %vm678_vm10, %v3653_v19 }
 0x431   :  { %3756 = vst.msk [vmem:[#allocation5 + $0x54] sm:$0xf] %vm907_vm12, %v3737_v41  ;;  %v4133_v22 = vpop.permute.xlu0 %4132 }
 0x432   :  { %v3991_v13 = vpop.permute.xlu1 %3990  ;;  %4153 = vst.msk [vmem:[#allocation5 + $0x4c] sm:$0xf] %vm907_vm12, %v4133_v22  ;;  %v5847_v22 = vmov 1966171168  }
 0x433   :  { %4010 = vst.msk [vmem:[#allocation5 + $0x58] sm:$0xf] %vm678_vm10, %v3991_v13  ;;  %v4707_v13 = vunpack.c.l.s4 %v5847_v22 }
 0x436   :  { %v4135_v16 = vpop.permute.xlu1 %4134  ;;  %v4582_v62 = vpop.f32.mrf.mxu1 }
 0x437   :  { %4154 = vst.msk [vmem:[#allocation5 + $0x58] sm:$0xf] %vm907_vm12, %v4135_v16  ;;  %v4709_v16 = vlaneseq }
 0x438   :  { %v5630_v43 = vpop.f32.mrf.mxu1  ;;  %v5790_v58 = vld [vmem:[#allocation5 + $0x48] ss:$12 sps:$4 sm:$0xff]  }
 0x43a   :  { %v4585_v2 = vpop.f32.mrf.mxu1 }
 0x43c   :  { %v5631_v6 = vpop.f32.mrf.mxu1 }
 0x43d   :  { %v4710_v6 = vshrl.u32 %v4709_v16, 7 }
 0x43e   :  { %v5788_v26 = vld [vmem:[#allocation5 + $0x4c] ss:$12 sps:$4 sm:$0xff]  }
 0x43f   :  { %4532 = vmatprep.mubr.bf16.mxu0 %v5788_v26  ;;  %v4590_v51 = vpop.f32.mrf.mxu1 }
 0x440   :  { %4533 = vmatmul.mubr.bf16.gmra.mxu0 %v5790_v58  ;;  %v4708_v58 = vunpack.c.0.s8 %v4707_v13 }
 0x441   :  { %v5634_v55 = vpop.f32.mrf.mxu1 }
 0x443   :  { %v4593_v52 = vpop.f32.mrf.mxu1 }
 0x445   :  { %v5635_v36 = vpop.f32.mrf.mxu1 }
 0x448   :  { %v9373_v17 = vpop.f32.mrf.mxu1 }
 0x44a   :  { %v5638_v20 = vpop.f32.mrf.mxu1 }
 0x44c   :  { %v9375_v8 = vpop.f32.mrf.mxu1 }
 0x44e   :  { %v5639_v27 = vpop.f32.mrf.mxu1 }
 0x454   :  { %v9377_v45 = vpop.f32.mrf.mxu1 }
 0x456   :  { %v5642_v56 = vpop.f32.mrf.mxu1 }
 0x457   :  { %v9399_v56 = vsub.s32 %v4708_v58, %v4710_v6 }
 0x458   :  { %v9379_v11 = vpop.f32.mrf.mxu1 }
 0x45a   :  { %v5643_v48 = vpop.f32.mrf.mxu1 }
 0x45b   :  { %v3459_v48 = vld [vmem:[#allocation4 + $0x24] sm:$0x1] }
 0x45c   :  { %v4614_v25 = vpop.f32.mrf.mxu1 }
 0x45d   :  { %v3973_v25 = vrot.slane %v3971_v1, 4 }
 0x45e   :  { %v5646_v32 = vpop.f32.mrf.mxu1 }
 0x460   :  { %v4617_v30 = vpop.f32.mrf.mxu1 }
 0x462   :  { %v5647_v21 = vpop.f32.mrf.mxu1 }
 0x463   :  { %v4700_v21 = vld [vmem:[#allocation8] sm:$0x1] }
 0x4bc   :  { %v5500_v3 = vpop.f32.mrf.mxu0 }
 0x4be   :  { %v5501_v14 = vpop.f32.mrf.mxu0 }
 0x4bf   :  { %v5502_v24 = vadd.f32 %v5501_v14, %v5500_v3 }
 0x4c0   :  { %v5503_v12 = vpop.f32.mrf.mxu0 }
 0x4c1   :  { %v4511_v60 = vadd.f32 %v5502_v24, %v9390_v38 }
 0x4c2   :  { %v5504_v35 = vpop.f32.mrf.mxu0 }
 0x4c3   :  { %v4583_v39 = vadd.f32 %v4582_v62, %v4511_v60  ;;  %v5505_v49 = vadd.f32 %v5504_v35, %v5503_v12  ;;  %v3550_v12 = vshll.u32 %v3459_v48, 16 }
 0x4c5   :  { %v4620_v59 = vmax.f32 %v4583_v39, 0.0  ;;  %v4514_v10 = vadd.f32 %v5505_v49, %v9390_v38  ;;  %v3552_v49 = vrot.slane %v3550_v12, 5  ;;  %v4110_v12 = vrot.slane %v9317_v15, 4  ;;  %v5795_v15 = vld [vmem:[%s9594_s6 + $0x70] sm:$0xff]  }
 0x4c7   :  { %4630 = vst.msk [vmem:[#allocation6] sm:$0xff] %vm4629_vm14, %v4620_v59  ;;  %v4586_v33 = vadd.f32 %v4585_v2, %v4514_v10  ;;  %v3599_v59 = vld [vmem:[#allocation4 + $0x24] sm:$0x1] }
 0x4c9   :  { %v4621_v46 = vmax.f32 %v4586_v33, 0.0 }
 0x4cb   :  { %4631 = vst.msk [vmem:[#allocation6 + $0x8] sm:$0xff] %vm4629_vm14, %v4621_v46 }
 0x4ce   :  { %v4639_v19 = vld [vmem:[#allocation6] sm:$0xff] }
 0x4d2   :  { %v4646_v31 = vld [vmem:[#allocation6 + $0x1] sm:$0xff] }
 0x4d3   :  { %v4660_v41 = vld [vmem:[#allocation6 + $0x6] sm:$0xff]  ;;  %v4653_v50 = vmax.f32 %v4639_v19, %v4646_v31 }
 0x4d4   :  { %v4667_v40 = vld [vmem:[#allocation6 + $0x7] sm:$0xff] }
 0x4d5   :  { %v4674_v63 = vmax.f32 %v4660_v41, %v4667_v40  ;;  %v5506_v4 = vpop.f32.mrf.mxu0  ;;  %v4640_v10 = vld [vmem:[#allocation6 + $0x8] sm:$0xff]  ;;  %v3635_v40 = vrot.slane %v3633_v53, 4 }
 0x4d7   :  { %v4681_v57 = vmax.f32 %v4653_v50, %v4674_v63  ;;  %v5507_v44 = vpop.f32.mrf.mxu0  ;;  %v3636_v63 = vrot.slane %v3599_v59, 5 }
 0x4d8   :  { %v5508_v62 = vadd.f32 %v5507_v44, %v5506_v4  ;;  %v3683_v4 = vld [vmem:[#allocation4 + $0x24] sm:$0x7] }
 0x4d9   :  { %4688 = vst.msk [vmem:[#allocation7] sm:$0xff] %vm4629_vm14, %v4681_v57  ;;  %v5509_v43 = vpop.f32.mrf.mxu0  ;;  %v3719_v57 = vrot.slane %v3717_v47, 4  ;;  %v3720_v44 = vrot.slane %v3683_v4, 7  ;;  %v5796_v4 = vld [vmem:[%s9594_s6 + $0x30] sm:$0xff]  }
 0x4da   :  { %v4519_v2 = vadd.f32 %v5508_v62, %v9390_v38 }
 0x4db   :  { %v5510_v26 = vpop.f32.mrf.mxu0  ;;  %v3721_v13 = vsel %vm6668_vm6, %v3719_v57, %v3720_v44  ;;  %v5799_v57 = vld [vmem:[%s9594_s6 + $0x60] sm:$0xff]  }
 0x4dc   :  { %v4591_v55 = vadd.f32 %v4590_v51, %v4519_v2  ;;  %v5511_v36 = vadd.f32 %v5510_v26, %v5509_v43 }
 0x4de   :  { %v4622_v20 = vmax.f32 %v4591_v55, 0.0  ;;  %v4522_v27 = vadd.f32 %v5511_v36, %v9390_v38  ;;  %v4021_v36 = vld [vmem:[#allocation4 + $0x28] sm:$0x7] }
 0x4df   :  { %v4112_v48 = vshrl.u32 %v4021_v36, 16 }
 0x4e0   :  { %4632 = vst.msk [vmem:[#allocation6 + $0x10] sm:$0xff] %vm4629_vm14, %v4622_v20  ;;  %v4594_v32 = vadd.f32 %v4593_v52, %v4522_v27  ;;  %v4703_v30 = vld [vmem:[#allocation7 + $0x2] sm:$0x1]  ;;  %v4696_v51 = vld [vmem:[#allocation7] sm:$0x1]  ;;  %v3548_v52 = vrot.slane %v3547_v29, 4  ;;  %v3637_v29 = vsel %vm5923_vm5, %v3635_v40, %v3636_v63  ;;  %vm9514_vm5 = vmand %vm4723_vm13, %vm3768_vm2 }
 0x4e1   :  { %v4704_v3 = vpack.c.bf16 %v4703_v30, %v4703_v30  ;;  %v4697_v14 = vpack.c.bf16 %v4696_v51, %v4696_v51  ;;  %v3937_v30 = vld [vmem:[#allocation4 + $0x28] sm:$0x3] }
 0x4e2   :  { %v4623_v24 = vmax.f32 %v4594_v32, 0.0  ;;  %v3553_v50 = vsel %vm5992_vm8, %v3548_v52, %v3552_v49  ;;  %v4115_v32 = vshll.u32 %v4021_v36, 16  ;;  %v3974_v51 = vrot.slane %v3937_v30, 6  ;;  %v5804_v36 = vld [vmem:[%s9594_s6 + $0x10] sm:$0xff]   ;;  %v5807_v30 = vld [vmem:[%s9594_s6 + $0x40] sm:$0xff]   ;;  %vm9525_vm8 = vmand %vm4698_vm15, %vm4777_vm0 }
 0x4e3   :  { %v4712_v60 = vrot.slane %v4704_v3, %v9399_v56  ;;  %v4701_v35 = vsel %vm9403_vm1, %v4697_v14, %v4700_v21  ;;  %v3882_v21 = vld [vmem:[#allocation4 + $0x24] sm:$0xf]  ;;  %v4114_v3 = vrot.slane %v4112_v48, 6  ;;  %v5806_v48 = vld [vmem:[%s9594_s6 + $0x8] sm:$0xff]  }
 0x4e4   :  { %4633 = vst.msk [vmem:[#allocation6 + $0x18] sm:$0xff] %vm4629_vm14, %v4623_v24  ;;  %4702 = vst [vmem:[#allocation8] sm:$0x1] %v4701_v35  ;;  %v4117_v14 = vrot.slane %v4115_v32, 7  ;;  %v3975_v24 = vsel %vm5913_vm3, %v3973_v25, %v3974_v51  ;;  %vm4694_vm3 = vcmask 518144  }
 0x4e5   :  { %v4719_v39 = vrot.slane %v4712_v60, %v9399_v56 }
 0x4e6   :  { %v4118_v60 = vor.u32 %v4117_v14, %v4114_v3 }
 0x4e7   :  { %v4647_v33 = vld [vmem:[#allocation6 + $0x9] sm:$0xff]  ;;  %4720 = vrot.lane.b32.xlu0 %v4719_v39, %s5841_s30 }
 0x4e8   :  { %v4661_v46 = vld [vmem:[#allocation6 + $0xe] sm:$0xff]  ;;  %v4654_v19 = vmax.f32 %v4640_v10, %v4647_v33 }
 0x4e9   :  { %v4668_v31 = vld [vmem:[#allocation6 + $0xf] sm:$0xff] }
 0x4ea   :  { %v4675_v41 = vmax.f32 %v4661_v46, %v4668_v31  ;;  %v5793_v46 = vld [vmem:[%s9594_s6 + $0x78] sm:$0xff]   ;;  %v4119_v31 = vsel %vm6069_vm11, %v4110_v12, %v4118_v60 }
 0x4eb   :  { %3570 = vrot.lane.b32.xlu0 %v3553_v50, %s5840_s25  ;;  %5537 = vmatprep.subr.bf16.mxu0 %v5793_v46 }
 0x4ec   :  { %v4682_v54 = vmax.f32 %v4654_v19, %v4675_v41  ;;  %5538 = vmatpush3.bf16.msra.mxu0 %v5794_v5 }
 0x4ed   :  { %v5512_v23 = vpop.f32.mrf.mxu0  ;;  %5539 = vmatprep.subr.bf16.mxu0 %v5795_v15 }
 0x4ee   :  { %4689 = vst.msk [vmem:[#allocation7 + $0x8] sm:$0xff] %vm4629_vm14, %v4682_v54 }
 0x4ef   :  { %3654 = vrot.lane.b32.xlu0 %v3637_v29, %s5841_s30  ;;  %v5513_v42 = vpop.f32.mrf.mxu0  ;;  %v5798_v29 = vld [vmem:[%s9594_s6 + $0x28] sm:$0xff]  }
 0x4f0   :  { %v5514_v61 = vadd.f32 %v5513_v42, %v5512_v23  ;;  %5540 = vmatpush3.bf16.msra.mxu0 %v5796_v4 }
 0x4f1   :  { %v5515_v53 = vpop.f32.mrf.mxu0  ;;  %5541 = vmatprep.subr.bf16.mxu0 %v5797_v28 }
 0x4f2   :  { %v4527_v22 = vadd.f32 %v5514_v61, %v9390_v38 }
 0x4f3   :  { %3738 = vrot.lane.b32.xlu0 %v3721_v13, %s5842_s13  ;;  %v5516_v16 = vpop.f32.mrf.mxu0 }
 0x4f4   :  { %v4599_v9 = vadd.f32 %v9373_v17, %v4527_v22  ;;  %v5517_v62 = vadd.f32 %v5516_v16, %v5515_v53  ;;  %5542 = vmatpush3.bf16.msra.mxu0 %v5798_v29 }
 0x4f5   :  { %v4733_v43 = vld [vmem:[#allocation7 + $0xe] sm:$0x1]  ;;  %v4728_v47 = vld [vmem:[#allocation7 + $0xc] sm:$0x1]  ;;  %5543 = vmatprep.subr.bf16.mxu0 %v5799_v57 }
 0x4f6   :  { %v4734_v2 = vpack.c.bf16 %v4733_v43, %v4733_v43  ;;  %v4729_v26 = vpack.c.bf16 %v4728_v47, %v4728_v47  ;;  %v4624_v58 = vmax.f32 %v4599_v9, 0.0  ;;  %v4530_v6 = vadd.f32 %v5517_v62, %v9390_v38 }
 0x4f8   :  { %v4742_v55 = vrot.slane %v4734_v2, %v9399_v56  ;;  %v4731_v0 = vsel %vm9403_vm1, %v4729_v26, %v4730_v7  ;;  %4634 = vst.msk [vmem:[#allocation6 + $0x20] sm:$0xff] %vm4629_vm14, %v4624_v58  ;;  %v4602_v20 = vadd.f32 %v9375_v8, %v4530_v6  ;;  %v5801_v2 = vld [vmem:[%s9594_s6 + $0x58] sm:$0xff]   ;;  %v5803_v58 = vld [vmem:[%s9594_s6 + $0x50] sm:$0xff]  }
 0x4f9   :  { %4732 = vst [vmem:[#allocation8 + $0x1] sm:$0x1] %v4731_v0  ;;  %v5802_v26 = vld [vmem:[%s9594_s6 + $0x18] sm:$0xff]  }
 0x4fa   :  { %v4749_v17 = vrot.slane %v4742_v55, %v9399_v56  ;;  %v4625_v27 = vmax.f32 %v4602_v20, 0.0  ;;  %v5805_v20 = vld [vmem:[%s9594_s6 + $0x48] sm:$0xff]  }
 0x4fc   :  { %4750 = vrot.lane.b32.xlu1 %v4749_v17, %s5841_s30  ;;  %4635 = vst.msk [vmem:[#allocation6 + $0x28] sm:$0xff] %vm4629_vm14, %v4625_v27 }
 0x4ff   :  { %v4643_v35 = vld [vmem:[#allocation6 + $0x20] sm:$0xff] }
 0x500   :  { %3908 = vrot.lane.b32.xlu1 %v3882_v21, %s5840_s25  ;;  %v5518_v8 = vpop.f32.mrf.mxu0  ;;  %v5808_v21 = vld [vmem:[%s9594_s6] sm:$0xff]   ;;  %v4753_v5 = vld [vmem:[#allocation8 + $0x1] sm:$0x1] }
 0x502   :  { %v5519_v49 = vpop.f32.mrf.mxu0 }
 0x503   :  { %v4650_v39 = vld [vmem:[#allocation6 + $0x21] sm:$0xff]  ;;  %v5520_v59 = vadd.f32 %v5519_v49, %v5518_v8  ;;  %v4725_v8 = vld [vmem:[#allocation8] sm:$0x1] }
 0x504   :  { %v4664_v52 = vld [vmem:[#allocation6 + $0x26] sm:$0xff]  ;;  %3992 = vrot.lane.b32.xlu1 %v3975_v24, %s5841_s30  ;;  %v4657_v34 = vmax.f32 %v4643_v35, %v4650_v39  ;;  %v5521_v33 = vpop.f32.mrf.mxu0 }
 0x505   :  { %v4671_v1 = vld [vmem:[#allocation6 + $0x27] sm:$0xff]  ;;  %v4535_v19 = vadd.f32 %v5520_v59, %v9390_v38 }
 0x506   :  { %v4678_v10 = vmax.f32 %v4664_v52, %v4671_v1  ;;  %v5522_v50 = vpop.f32.mrf.mxu0 }
 0x507   :  { %v4607_v40 = vadd.f32 %v9377_v45, %v4535_v19  ;;  %v5523_v63 = vadd.f32 %v5522_v50, %v5521_v33 }
 0x508   :  { %v4685_v41 = vmax.f32 %v4657_v34, %v4678_v10  ;;  %4136 = vrot.lane.b32.xlu1 %v4119_v31, %s5842_s13 }
 0x509   :  { %v4626_v54 = vmax.f32 %v4607_v40, 0.0  ;;  %v4538_v23 = vadd.f32 %v5523_v63, %v9390_v38  ;;  %v5800_v38 = vld [vmem:[%s9594_s6 + $0x20] sm:$0xff]  }
 0x50a   :  { %4692 = vst.msk [vmem:[#allocation7 + $0x20] sm:$0xff] %vm4629_vm14, %v4685_v41  ;;  %5544 = vmatpush3.bf16.msra.mxu0 %v5800_v38 }
 0x50b   :  { %4636 = vst.msk [vmem:[#allocation6 + $0x30] sm:$0xff] %vm4629_vm14, %v4626_v54  ;;  %v4610_v45 = vadd.f32 %v9379_v11, %v4538_v23  ;;  %5545 = vmatprep.subr.bf16.mxu0 %v5801_v2  ;;  %v5816_v2 = vld [vmem:[%s9596_s8] sm:$0xff]  }
 0x50d   :  { %v4627_v44 = vmax.f32 %v4610_v45, 0.0 }
 0x50e   :  { %5546 = vmatpush3.bf16.msra.mxu0 %v5802_v26 }
 0x50f   :  { %4637 = vst.msk [vmem:[#allocation6 + $0x38] sm:$0xff] %vm4629_vm14, %v4627_v44  ;;  %5547 = vmatprep.subr.bf16.mxu0 %v5803_v58 }
 0x511   :  { %v4782_v9 = vld [vmem:[#allocation7 + $0x26] sm:$0x1]  ;;  %v4756_v25 = vld [vmem:[#allocation7 + $0x24] sm:$0x1] }
 0x512   :  { %v4645_v11 = vld [vmem:[#allocation6 + $0x30] sm:$0x7]  ;;  %v4783_v62 = vpack.c.bf16 %v4782_v9, %v4782_v9  ;;  %5548 = vmatpush3.bf16.msra.mxu0 %v5804_v36  ;;  %v4757_v51 = vpack.c.bf16 %v4756_v25, %v4756_v25 }
 0x513   :  { %v4652_v42 = vld [vmem:[#allocation6 + $0x31] sm:$0x7]  ;;  %5549 = vmatprep.subr.bf16.mxu0 %v5805_v20 }
 0x514   :  { %v4659_v22 = vmax.f32 %v4645_v11, %v4652_v42  ;;  %v4791_v43 = vrot.slane %v4783_v62, %v9399_v56  ;;  %v4765_v24 = vrot.slane %v4757_v51, %v9399_v56  ;;  %v5809_v9 = vld [vmem:[%s9596_s8 + $0x38] sm:$0xff]   ;;  %v5811_v62 = vld [vmem:[%s9596_s8 + $0x28] sm:$0xff]  }
 0x515   :  { %5649 = vmatpush3.bf16.msra.mxu1 %v5809_v9 }
 0x516   :  { %v4666_v61 = vld [vmem:[#allocation6 + $0x36] sm:$0x7]  ;;  %v4798_v6 = vrot.slane %v4791_v43, %v9399_v56  ;;  %5550 = vmatpush3.bf16.msra.mxu0 %v5806_v48  ;;  %v4772_v60 = vrot.slane %v4765_v24, %v9399_v56  ;;  %5650 = vmatprep.subr.bf16.mxu1 %v9631_v18  ;;  %v5813_v43 = vld [vmem:[%s9596_s8 + $0x18] sm:$0xff]  }
 0x517   :  { %v4673_v53 = vld [vmem:[#allocation6 + $0x37] sm:$0x7]  ;;  %5551 = vmatprep.subr.bf16.mxu0 %v5807_v30 }
 0x518   :  { %v4680_v13 = vmax.f32 %v4666_v61, %v4673_v53  ;;  %v4800_v17 = vshll.u32 %v4798_v6, 16  ;;  %v4774_v52 = vshll.u32 %v4772_v60, 16 }
 0x519   :  { %5651 = vmatpush3.bf16.msra.mxu1 %v5810_v37 }
 0x51a   :  { %v4687_v16 = vmax.f32 %v4659_v22, %v4680_v13  ;;  %5552 = vmatpush3.bf16.msra.mxu0 %v5808_v21  ;;  %5652 = vmatprep.subr.bf16.mxu1 %v9631_v18 }
 0x51c   :  { %4695 = vst.msk [vmem:[#allocation7 + $0x30] sm:$0x7] %vm4694_vm3, %v4687_v16 }
 0x51d   :  { %5653 = vmatpush3.bf16.msra.mxu1 %v5811_v62 }
 0x51e   :  { %5654 = vmatprep.subr.bf16.mxu1 %v9631_v18 }
 0x523   :  { %v4833_v7 = vld [vmem:[#allocation7 + $0x32] sm:$0x1]  ;;  %v4809_v10 = vld [vmem:[#allocation7 + $0x30] sm:$0x1] }
 0x524   :  { %v4834_v47 = vpack.c.bf16 %v4833_v7, %v4833_v7  ;;  %v4810_v33 = vpack.c.bf16 %v4809_v10, %v4809_v10  ;;  %v5814_v7 = vld [vmem:[%s9596_s8 + $0x10] sm:$0xff]  }
 0x526   :  { %v4842_v55 = vrot.slane %v4834_v47, %v9399_v56  ;;  %v4818_v15 = vrot.slane %v4810_v33, %v9399_v56  ;;  %v5815_v47 = vld [vmem:[%s9596_s8 + $0x8] sm:$0xff]  }
 0x528   :  { %v4849_v0 = vrot.slane %v4842_v55, %v9399_v56  ;;  %v4825_v31 = vrot.slane %v4818_v15, %v9399_v56 }
 0x52a   :  { %v4851_v27 = vshll.u32 %v4849_v0, 16  ;;  %v4827_v50 = vshll.u32 %v4825_v31, 16  ;;  %v5337_v0 = vld [vmem:[%s9595_s7] ss:$0 sm:$0xff]  ;;  %s5818_s7 = scalar_lea.vmem %s5181_s5, 32 }
 0x52b   :  { %p5819_p0 = scmp.ne.s32.totalorder %s5181_s5, %s5818_s7  ;;  %p5824_p2 = scmp.lt.s32.totalorder %s5818_s7, %s5818_s7 }
 0x52c   :  { %v5677_v32 = vpack.i.bf16 %v4851_v27, %v4800_v17 }
 0x52d   :  { %p5825_p3 = por %p5824_p2, %p5823_p1 }
 0x52e   :  { %5678 = vrot.lane.b32.xlu0 %v5677_v32, %s5841_s30 }
 0x52f   :  { %p5826_p4 = pnand %p5825_p3, %p5819_p0 }
 0x559   :  { %v4721_v14 = vpop.permute.xlu0 %4720 }
 0x55a   :  { %v4726_v12 = vsel %vm9514_vm5, %v4721_v14, %v4725_v8 }
 0x55b   :  { %4727 = vst [vmem:[#allocation8] sm:$0x1] %v4726_v12 }
 0x55d   :  { %v3571_v35 = vpop.permute.xlu0 %3570 }
 0x55e   :  { %3589 = vst.msk [vmem:[#allocation5 + $0x60] sm:$0xf] %vm446_vm9, %v3571_v35 }
 0x561   :  { %v3655_v49 = vpop.permute.xlu0 %3654 }
 0x562   :  { %v4779_v34 = vld [vmem:[#allocation8] sm:$0x1]  ;;  %3673 = vst.msk [vmem:[#allocation5 + $0x60] sm:$0xf] %vm678_vm10, %v3655_v49 }
 0x563   :  { %v4780_v1 = vsel %vm9525_vm8, %v4774_v52, %v4779_v34 }
 0x564   :  { %4781 = vst [vmem:[#allocation8] sm:$0x1] %v4780_v1 }
 0x565   :  { %v3739_v59 = vpop.permute.xlu0 %3738 }
 0x566   :  { %3757 = vst.msk [vmem:[#allocation5 + $0x60] sm:$0xf] %vm907_vm12, %v3739_v59 }
 0x56b   :  { %v4806_v38 = vld [vmem:[#allocation8] sm:$0x1] }
 0x56e   :  { %v4751_v46 = vpop.permute.xlu1 %4750 }
 0x56f   :  { %v4754_v19 = vsel %vm9514_vm5, %v4751_v46, %v4753_v5 }
 0x570   :  { %4755 = vst [vmem:[#allocation8 + $0x1] sm:$0x1] %v4754_v19 }
 0x572   :  { %v3909_v41 = vpop.permute.xlu1 %3908 }
 0x573   :  { %3927 = vst.msk [vmem:[#allocation5 + $0x64] sm:$0xf] %vm446_vm9, %v3909_v41 }
 0x576   :  { %v3993_v40 = vpop.permute.xlu1 %3992 }
 0x577   :  { %v4830_v63 = vld [vmem:[#allocation8 + $0x1] sm:$0x1]  ;;  %4011 = vst.msk [vmem:[#allocation5 + $0x64] sm:$0xf] %vm678_vm10, %v3993_v40 }
 0x578   :  { %v4831_v4 = vsel %vm9525_vm8, %v4827_v50, %v4830_v63 }
 0x579   :  { %4832 = vst [vmem:[#allocation8 + $0x1] sm:$0x1] %v4831_v4 }
 0x57a   :  { %v4137_v28 = vpop.permute.xlu1 %4136 }
 0x57b   :  { %4155 = vst.msk [vmem:[#allocation5 + $0x64] sm:$0xf] %vm907_vm12, %v4137_v28 }
 0x580   :  { %v4856_v11 = vld [vmem:[#allocation8 + $0x1] sm:$0x1] }
 0x582   :  { %v4238_v54 = vld [vmem:[#allocation5 + $0x60] sm:$0xff] }
 0x583   :  { %v5312_v23 = vcombine.high %v4238_v54, %v4238_v54  ;;  %v5311_v45 = vcombine.low %v4238_v54, %v4238_v54 }
 0x585   :  { %4540 = vmatprep.mubr.bf16.mxu0 %v5312_v23 }
 0x586   :  { %4541 = vmatmul.mubr.bf16.gmra.mxu0 %v5311_v45 }
 0x5a0   :  { %v5679_v29 = vpop.permute.xlu0 %5678 }
 0x5a1   :  { %v5681_v57 = vunpack.i.h.bf16 %v5679_v29  ;;  %v5680_v44 = vunpack.i.l.bf16 %v5679_v29 }
 0x5a3   :  { %v4807_v42 = vsel %vm9383_vm7, %v5680_v44, %v4806_v38  ;;  %v4857_v61 = vsel %vm9383_vm7, %v5681_v57, %v4856_v11 }
 0x5a4   :  { %4808 = vst [vmem:[#allocation8] sm:$0x1] %v4807_v42  ;;  %4858 = vst [vmem:[#allocation8 + $0x1] sm:$0x1] %v4857_v61 }
 0x5ab   :  { %v5338_v53 = vld.sshfl [vmem:[#allocation8] sm:$0x11 pattern:$0x75316420] }
 0x5ac   :  { %v4907_v22 = vcombine.high %v5338_v53, %v5338_v53  ;;  %v4914_v16 = vrot.slane %v5338_v53, %v9399_v56 }
 0x5ae   :  { %v4921_v13 = vrot.slane %v4907_v22, %v9399_v56  ;;  %v5812_v56 = vld [vmem:[%s9596_s8 + $0x20] sm:$0xff]  }
 0x5af   :  { %5655 = vmatpush3.bf16.msra.mxu1 %v5812_v56 }
 0x5b0   :  { %5052 = vmatprep.mubr.bf16.mxu0 %v4921_v13  ;;  %5656 = vmatprep.subr.bf16.mxu1 %v9631_v18 }
 0x5b1   :  { %5053 = vmatmul.mubr.bf16.vlgmr.msra.gmra.mxu0 %v4914_v16 }
 0x5b3   :  { %5657 = vmatpush3.bf16.msra.mxu1 %v5813_v43 }
 0x5b4   :  { %5658 = vmatprep.subr.bf16.mxu1 %v9631_v18 }
 0x5b7   :  { %5659 = vmatpush3.bf16.msra.mxu1 %v5814_v7 }
 0x5b8   :  { %5660 = vmatprep.subr.bf16.mxu1 %v9631_v18 }
 0x5bb   :  { %5661 = vmatpush3.bf16.msra.mxu1 %v5815_v47 }
 0x5bc   :  { %5662 = vmatprep.subr.bf16.mxu1 %v9631_v18  ;;  %v5355_v18 = vld [vmem:[%s9597_s9] ss:$0 sm:$0xff] }
 0x5bf   :  { %5663 = vmatpush3.bf16.msra.mxu1 %v5816_v2 }
 0x646   :  { %v5524_v26 = vpop.f32.mrf.mxu0 }
 0x648   :  { %v5525_v58 = vpop.f32.mrf.mxu0 }
 0x64a   :  { %v5527_v6 = vpop.f32.mrf.mxu0 }
 0x64c   :  { %v5528_v55 = vpop.f32.mrf.mxu0 }
 0x671   :  { %v5553_v36 = vpop.f32.mrf.mxu0 }
 0x673   :  { %v5554_v20 = vpop.f32.mrf.mxu0 }
 0x674   :  { %v5555_v17 = vadd.f32 %v5554_v20, %v5553_v36 }
 0x675   :  { %v5556_v27 = vpop.f32.mrf.mxu0 }
 0x676   :  { %v5055_v48 = vadd.f32 %v5555_v17, %v5337_v0 }
 0x677   :  { %v5557_v32 = vpop.f32.mrf.mxu0 }
 0x678   :  { %v5060_v30 = vmax.f32 %v5055_v48, 0.0 }
 0x67a   :  { %v5061_v21 = vpack.c.bf16 %v5060_v30, %v5060_v30 }
 0x67c   :  { %5665 = vmatmul.mubr.bf16.vlgmr.msra.gmra.mxu1 %v5061_v21 }
 0x73c   :  { %v5167_v25 = vpop.f32.mrf.mxu1 }
 0x73d   :  { %v5168_v51 = vadd.f32 %v5355_v18, %v5167_v25 }
 0x73e   :  { %v5666_v3 = vpop.f32.mrf.mxu1 }
 0x73f   :  { %5173 = vst [vmem:[#allocation9] sm:$0x3] %v5168_v51 }
 0x740   :  { %v5170_v14 = vpop.f32.mrf.mxu1 }
 0x741   :  { %5829 = shalt.err (!%p5826_p4)
}
 0x742   :  { %5183 = dma.vmem_to_hbm [thread:$0]  %s5181_s5, 32, %s9598_s10, [#allocation10]   ;;  %v5667_v8 = vpop.f32.mrf.mxu1 }
 0x743   :  { %5838 = dma.done.wait [#allocation10], 32  }
 0x744   :  { %5839 = vsyncadd [#allocation10], 4294967264 }
 0x745   :  { %5187 = vsyncpa [#allocation10], 1 }

</bundles_post_ra>
